<compile_context>
chip_gen: v6e
topology: v6e:2x2x1
jax: 0.10.0
libtpu: 0.0.40
codegen_flags: <defaults>
</compile_context>

<pallas_src>
import functools
import math

import jax
import jax.numpy as jnp
from jax.experimental import pallas as pl
from jax.experimental.pallas import tpu as pltpu


def _self_attention_kernel(x_ref, wqkv_ref, bqkv_ref, wo_ref, bo_ref,
                           w1_ref, b1_ref, w2_ref, b2_ref,
                           o_ref, q_scr, k_scr, v_scr, *, eps):
    f32, bf16 = jnp.float32, jnp.bfloat16
    qi = pl.program_id(1)
    C = x_ref.shape[1]
    tq = o_ref.shape[2]

    # ---- fused QKV projection: once per sample, cached in bf16 VMEM scratch --------
    @pl.when(qi == 0)
    def _():
        xs = jnp.transpose(x_ref[0], (1, 0)).astype(bf16)             # (S, C)
        qkv = jnp.dot(xs, wqkv_ref[...],
                      preferred_element_type=f32) + bqkv_ref[...]     # (S, 3C) f32
        q_scr[...] = qkv[:, :C].astype(bf16)       # 1/sqrt(C) folded into W_q / b_q
        k_scr[...] = qkv[:, C:2 * C].astype(bf16)
        v_scr[...] = qkv[:, 2 * C:].astype(bf16)

    start = pl.multiple_of(qi * tq, tq)
    q = q_scr[pl.ds(start, tq), :]                                    # (tq, C) bf16
    k = k_scr[...]                                                    # (S,  C) bf16
    v = v_scr[...]                                                    # (S,  C) bf16

    # ---- single-head attention (scores already scaled via folded Q weights) --------
    s = jax.lax.dot_general(q, k, (((1,), (1,)), ((), ())),
                            preferred_element_type=f32)               # (tq, S) f32
    m = jnp.max(s, axis=-1, keepdims=True)
    p = jnp.exp(s - m)
    denom = jnp.sum(p, axis=-1, keepdims=True)
    p = p * pl.reciprocal(denom, approx=True)

    attn = jnp.dot(p.astype(bf16), v, preferred_element_type=f32)     # (tq, C) f32
    attn = jnp.dot(attn.astype(bf16), wo_ref[...],
                   preferred_element_type=f32) + bo_ref[...]          # out_proj

    # ---- ff_self: LayerNorm (affine folded into w1/b1) -> Linear -> GELU -> Linear --
    mu = jnp.mean(attn, axis=-1, keepdims=True)
    ctr = attn - mu
    var = jnp.mean(ctr * ctr, axis=-1, keepdims=True)                 # two-pass stats
    h = ctr * jax.lax.rsqrt(var + eps)

    h1 = jnp.dot(h.astype(bf16), w1_ref[...],
                 preferred_element_type=f32) + b1_ref[...]
    # GELU (tanh approximation).
    # TODO(synk): PyTorch nn.GELU() defaults to the exact erf-based GELU; erf has no
    # guaranteed Mosaic lowering, so the tanh approximation is used (max diff ~1e-3).
    c0 = 0.7978845608028654  # sqrt(2/pi)
    g = 0.5 * h1 * (1.0 + jnp.tanh(c0 * (h1 + 0.044715 * h1 * h1 * h1)))
    h2 = jnp.dot(g.astype(bf16), w2_ref[...],
                 preferred_element_type=f32) + b2_ref[...]

    # residual is around ff_self only (matches PyTorch forward); output block is
    # (1, C, tq): lane-dense on tq, and no wrapper-side transpose is needed.
    o_ref[0] = jnp.transpose(h2 + attn, (1, 0)).astype(o_ref.dtype)


def self_attention_forward(x, params, *, eps=1e-5, q_tile=None):
    """Pallas forward. x: (N, C, H, W); params use PyTorch (out, in) weight layout."""
    N, C, H, W = x.shape
    S = H * W
    x_cs = x.reshape(N, C, S)            # contiguous view: no HBM transpose pass

    if q_tile is None:
        # Whole sequence in one tile when small; otherwise 256-row query tiles
        # (fills v6e/v7x's 256-wide MXU).  K/V are cached in VMEM scratch at qi == 0,
        # so query tiling never recomputes them.
        if S <= 512 or S % 256 != 0:
            q_tile = S
        else:
            q_tile = 256
    assert S % q_tile == 0
    nq = S // q_tile

    f32, bf16 = jnp.float32, jnp.bfloat16
    scale = 1.0 / math.sqrt(C)

    # ---- parameter prep: (in, out) layout, fuse QKV, fold scale + LN affine ----
    w_in = params["in_proj_weight"].astype(f32)          # (3C, C)
    b_in = params["in_proj_bias"].astype(f32)            # (3C,)
    wqkv = jnp.concatenate(
        [w_in[:C].T * scale, w_in[C:2 * C].T, w_in[2 * C:].T], axis=1)     # (C, 3C)
    bqkv = jnp.concatenate([b_in[:C] * scale, b_in[C:]]).reshape(1, 3 * C)

    wo = params["out_proj_weight"].astype(f32).T
    bo = params["out_proj_bias"].astype(f32).reshape(1, C)

    lnw = params["ff_ln_weight"].astype(f32)
    lnb = params["ff_ln_bias"].astype(f32)
    w1_t = params["ff_w1"].astype(f32).T
    w1f = lnw[:, None] * w1_t                                          # fold LN scale
    b1f = (lnb @ w1_t + params["ff_b1"].astype(f32)).reshape(1, C)     # fold LN shift
    w2_t = params["ff_w2"].astype(f32).T
    b2 = params["ff_b2"].astype(f32).reshape(1, C)

    x_spec = pl.BlockSpec((1, C, S), lambda n, qi: (n, 0, 0))   # const over qi: no re-DMA
    o_spec = pl.BlockSpec((1, C, q_tile), lambda n, qi: (n, 0, qi))
    cc = lambda n, qi: (0, 0)

    out = pl.pallas_call(
        functools.partial(_self_attention_kernel, eps=eps),
        out_shape=jax.ShapeDtypeStruct((N, C, S), x.dtype),
        grid_spec=pltpu.PrefetchScalarGridSpec(
            num_scalar_prefetch=0,
            grid=(N, nq),
            in_specs=[x_spec,
                      pl.BlockSpec((C, 3 * C), cc), pl.BlockSpec((1, 3 * C), cc),
                      pl.BlockSpec((C, C), cc), pl.BlockSpec((1, C), cc),
                      pl.BlockSpec((C, C), cc), pl.BlockSpec((1, C), cc),
                      pl.BlockSpec((C, C), cc), pl.BlockSpec((1, C), cc)],
            out_specs=o_spec,
            scratch_shapes=[pltpu.VMEM((S, C), bf16)] * 3),   # Q / K / V caches
        compiler_params=pltpu.CompilerParams(
            dimension_semantics=("parallel", "arbitrary")),
    )(x_cs,
      wqkv.astype(bf16), bqkv,
      wo.astype(bf16), bo,
      w1f.astype(bf16), b1f,
      w2_t.astype(bf16), b2)

    return out.reshape(N, C, H, W)


def self_attention_ref(x, params, eps=1e-5):
    """Pure-JAX f32 reference mirroring the PyTorch module (unfolded parameters)."""
    N, C, H, W = x.shape
    S = H * W
    xs = jnp.transpose(x.reshape(N, C, S), (0, 2, 1)).astype(jnp.float32)

    w_in = params["in_proj_weight"].astype(jnp.float32)
    b_in = params["in_proj_bias"].astype(jnp.float32)
    wq, wk, wv = w_in[:C], w_in[C:2 * C], w_in[2 * C:]
    bq, bk, bv = b_in[:C], b_in[C:2 * C], b_in[2 * C:]

    q = jnp.einsum("nsc,dc->nsd", xs, wq) + bq
    k = jnp.einsum("nsc,dc->nsd", xs, wk) + bk
    v = jnp.einsum("nsc,dc->nsd", xs, wv) + bv
    s = jnp.einsum("nqd,nkd->nqk", q, k) / math.sqrt(C)
    p = jax.nn.softmax(s, axis=-1)
    attn = jnp.einsum("nqk,nkd->nqd", p, v)
    attn = (jnp.einsum("nsc,dc->nsd", attn, params["out_proj_weight"].astype(jnp.float32))
            + params["out_proj_bias"].astype(jnp.float32))

    mu = attn.mean(-1, keepdims=True)
    var = ((attn - mu) ** 2).mean(-1, keepdims=True)
    h = (attn - mu) * jax.lax.rsqrt(var + eps)
    h = h * params["ff_ln_weight"] + params["ff_ln_bias"]
    h1 = jnp.einsum("nsc,dc->nsd", h, params["ff_w1"].astype(jnp.float32)) + params["ff_b1"]
    g = jax.nn.gelu(h1, approximate=True)   # matches the kernel's tanh-GELU
    h2 = jnp.einsum("nsc,dc->nsd", g, params["ff_w2"].astype(jnp.float32)) + params["ff_b2"]
    y = h2 + attn
    return jnp.transpose(y, (0, 2, 1)).reshape(N, C, H, W).astype(x.dtype)


if __name__ == "__main__":
    N, C, H, W = 2, 128, 16, 16            # S = H*W = 256, single attention head

    key = jax.random.PRNGKey(0)
    ks = jax.random.split(key, 11)
    std = 1.0 / math.sqrt(C)
    x = jax.random.normal(ks[0], (N, C, H, W), jnp.float32)
    params = {
        "in_proj_weight": std * jax.random.normal(ks[1], (3 * C, C), jnp.float32),
        "in_proj_bias": 0.02 * jax.random.normal(ks[2], (3 * C,), jnp.float32),
        "out_proj_weight": std * jax.random.normal(ks[3], (C, C), jnp.float32),
        "out_proj_bias": 0.02 * jax.random.normal(ks[4], (C,), jnp.float32),
        "ff_ln_weight": 1.0 + 0.1 * jax.random.normal(ks[5], (C,), jnp.float32),
        "ff_ln_bias": 0.1 * jax.random.normal(ks[6], (C,), jnp.float32),
        "ff_w1": std * jax.random.normal(ks[7], (C, C), jnp.float32),
        "ff_b1": 0.02 * jax.random.normal(ks[8], (C,), jnp.float32),
        "ff_w2": std * jax.random.normal(ks[9], (C, C), jnp.float32),
        "ff_b2": 0.02 * jax.random.normal(ks[10], (C,), jnp.float32),
    }

    out = self_attention_forward(x, params)
    jax.block_until_ready(out)
    ref = self_attention_ref(x, params)

    assert out.shape == (N, C, H, W) and out.dtype == x.dtype
    # Tolerance accommodates bf16 MXU operands (f32 accumulation) vs. the f32 reference.
    max_err = jnp.max(jnp.abs(out - ref))
    assert jnp.allclose(out, ref, atol=5e-2, rtol=5e-2), f"max abs err = {max_err}"

    print("KERNEL_OK")
</pallas_src>

<mosaic_0001>
module attributes {stable_mosaic.version = 11 : i64} {
  func.func @_self_attention_kernel(%arg0: i32, %arg1: i32, %arg2: memref<1x128x256xf32, #tpu.memory_space<vmem>>, %arg3: memref<128x384xbf16, #tpu.memory_space<vmem>>, %arg4: memref<1x384xf32, #tpu.memory_space<vmem>>, %arg5: memref<128x128xbf16, #tpu.memory_space<vmem>>, %arg6: memref<1x128xf32, #tpu.memory_space<vmem>>, %arg7: memref<128x128xbf16, #tpu.memory_space<vmem>>, %arg8: memref<1x128xf32, #tpu.memory_space<vmem>>, %arg9: memref<128x128xbf16, #tpu.memory_space<vmem>>, %arg10: memref<1x128xf32, #tpu.memory_space<vmem>>, %arg11: memref<1x128x256xf32, #tpu.memory_space<vmem>>, %arg12: memref<256x128xbf16, #tpu.memory_space<vmem>>, %arg13: memref<256x128xbf16, #tpu.memory_space<vmem>>, %arg14: memref<256x128xbf16, #tpu.memory_space<vmem>>) attributes {dimension_semantics = [#tpu.dimension_semantics<parallel>, #tpu.dimension_semantics<arbitrary>], iteration_bounds = array<i64: 2, 1>, scalar_prefetch = 0 : i64, scratch_operands = 3 : i64, tpu.core_type = #tpu.core_type<tc>, window_params = [{transform_indices = @transform_0, window_bounds = array<i64: 1, 128, 256>}, {pipeline_mode = #tpu.pipeline_mode<synchronous>, transform_indices = @transform_1, window_bounds = array<i64: 128, 384>}, {pipeline_mode = #tpu.pipeline_mode<synchronous>, transform_indices = @transform_2, window_bounds = array<i64: 1, 384>}, {pipeline_mode = #tpu.pipeline_mode<synchronous>, transform_indices = @transform_3, window_bounds = array<i64: 128, 128>}, {pipeline_mode = #tpu.pipeline_mode<synchronous>, transform_indices = @transform_4, window_bounds = array<i64: 1, 128>}, {pipeline_mode = #tpu.pipeline_mode<synchronous>, transform_indices = @transform_5, window_bounds = array<i64: 128, 128>}, {pipeline_mode = #tpu.pipeline_mode<synchronous>, transform_indices = @transform_6, window_bounds = array<i64: 1, 128>}, {pipeline_mode = #tpu.pipeline_mode<synchronous>, transform_indices = @transform_7, window_bounds = array<i64: 128, 128>}, {pipeline_mode = #tpu.pipeline_mode<synchronous>, transform_indices = @transform_8, window_bounds = array<i64: 1, 128>}, {transform_indices = @transform_9, window_bounds = array<i64: 1, 128, 256>}]} {
    %c0_i32 = arith.constant 0 : i32
    %0 = arith.cmpi eq, %arg1, %c0_i32 : i32
    %1 = arith.extui %0 : i1 to i32
    %c0_i32_0 = arith.constant 0 : i32
    %2 = arith.cmpi ne, %1, %c0_i32_0 : i32
    scf.if %2 {
      %c0_35 = arith.constant 0 : index
      %c0_36 = arith.constant 0 : index
      %c0_37 = arith.constant 0 : index
      %74 = vector.load %arg2[%c0_35, %c0_36, %c0_37] : memref<1x128x256xf32, #tpu.memory_space<vmem>>, vector<1x128x256xf32>
      %75 = vector.shape_cast %74 : vector<1x128x256xf32> to vector<128x256xf32>
      %76 = tpu.transpose %75, [1, 0] : vector<128x256xf32> -> vector<256x128xf32>
      %77 = arith.truncf %76 : vector<256x128xf32> to vector<256x128xbf16>
      %c0_38 = arith.constant 0 : index
      %c0_39 = arith.constant 0 : index
      %78 = vector.load %arg3[%c0_38, %c0_39] : memref<128x384xbf16, #tpu.memory_space<vmem>>, vector<128x384xbf16>
      %cst_40 = arith.constant dense<0.000000e+00> : vector<256x384xf32>
      %79 = tpu.matmul %77, %78, %cst_40 {dimension_numbers = #tpu.dot_dimension_numbers<[1], [0], [0], [1], [0, 0, 1, 1], [], []>} : vector<256x128xbf16>, vector<128x384xbf16>, vector<256x384xf32> -> vector<256x384xf32>
      %c0_41 = arith.constant 0 : index
      %c0_42 = arith.constant 0 : index
      %80 = vector.load %arg4[%c0_41, %c0_42] : memref<1x384xf32, #tpu.memory_space<vmem>>, vector<1x384xf32>
      %81 = vector.broadcast %80 : vector<1x384xf32> to vector<256x384xf32>
      %82 = arith.addf %79, %81 : vector<256x384xf32>
      %83 = vector.extract_strided_slice %82 {offsets = [0, 0], sizes = [256, 128], strides = [1, 1]} : vector<256x384xf32> to vector<256x128xf32>
      %84 = arith.truncf %83 : vector<256x128xf32> to vector<256x128xbf16>
      %c0_43 = arith.constant 0 : index
      %c0_44 = arith.constant 0 : index
      %85 = vector.load %arg12[%c0_43, %c0_44] : memref<256x128xbf16, #tpu.memory_space<vmem>>, vector<256x128xbf16>
      tpu.vector_store %arg12[%c0_43, %c0_44], %84 {strides = array<i32>} : memref<256x128xbf16, #tpu.memory_space<vmem>>, vector<256x128xbf16>,
      %86 = vector.extract_strided_slice %82 {offsets = [0, 128], sizes = [256, 128], strides = [1, 1]} : vector<256x384xf32> to vector<256x128xf32>
      %87 = arith.truncf %86 : vector<256x128xf32> to vector<256x128xbf16>
      %c0_45 = arith.constant 0 : index
      %c0_46 = arith.constant 0 : index
      %88 = vector.load %arg13[%c0_45, %c0_46] : memref<256x128xbf16, #tpu.memory_space<vmem>>, vector<256x128xbf16>
      tpu.vector_store %arg13[%c0_45, %c0_46], %87 {strides = array<i32>} : memref<256x128xbf16, #tpu.memory_space<vmem>>, vector<256x128xbf16>,
      %89 = vector.extract_strided_slice %82 {offsets = [0, 256], sizes = [256, 128], strides = [1, 1]} : vector<256x384xf32> to vector<256x128xf32>
      %90 = arith.truncf %89 : vector<256x128xf32> to vector<256x128xbf16>
      %c0_47 = arith.constant 0 : index
      %c0_48 = arith.constant 0 : index
      %91 = vector.load %arg14[%c0_47, %c0_48] : memref<256x128xbf16, #tpu.memory_space<vmem>>, vector<256x128xbf16>
      tpu.vector_store %arg14[%c0_47, %c0_48], %90 {strides = array<i32>} : memref<256x128xbf16, #tpu.memory_space<vmem>>, vector<256x128xbf16>,
    } else {
    }
    %c256_i32 = arith.constant 256 : i32
    %3 = arith.muli %arg1, %c256_i32 : i32
    %4 = tpu.assume_multiple %3, 256 : i32
    %5 = arith.index_cast %4 : i32 to index
    %c0 = arith.constant 0 : index
    %6 = vector.load %arg12[%5, %c0] : memref<256x128xbf16, #tpu.memory_space<vmem>>, vector<256x128xbf16>
    %c0_1 = arith.constant 0 : index
    %c0_2 = arith.constant 0 : index
    %7 = vector.load %arg13[%c0_1, %c0_2] : memref<256x128xbf16, #tpu.memory_space<vmem>>, vector<256x128xbf16>
    %c0_3 = arith.constant 0 : index
    %c0_4 = arith.constant 0 : index
    %8 = vector.load %arg14[%c0_3, %c0_4] : memref<256x128xbf16, #tpu.memory_space<vmem>>, vector<256x128xbf16>
    %cst = arith.constant dense<0.000000e+00> : vector<256x256xf32>
    %9 = tpu.matmul %6, %7, %cst {dimension_numbers = #tpu.dot_dimension_numbers<[1], [1], [0], [0], [0, 0, 1, 0], [], []>} : vector<256x128xbf16>, vector<256x128xbf16>, vector<256x256xf32> -> vector<256x256xf32>
    %cst_5 = arith.constant dense<0xFF800000> : vector<256xf32>
    %10 = vector.multi_reduction <maximumf>, %9, %cst_5 [1] : vector<256x256xf32> to vector<256xf32>
    %11 = vector.shape_cast %10 : vector<256xf32> to vector<256x1xf32>
    %12 = vector.broadcast %11 : vector<256x1xf32> to vector<256x256xf32>
    %13 = arith.subf %9, %12 : vector<256x256xf32>
    %14 = math.exp %13 : vector<256x256xf32>
    %cst_6 = arith.constant dense<0.000000e+00> : vector<256xf32>
    %15 = vector.multi_reduction <add>, %14, %cst_6 [1] : vector<256x256xf32> to vector<256xf32>
    %16 = vector.shape_cast %15 : vector<256xf32> to vector<256x1xf32>
    %17 = tpu.reciprocal %16 {approx = true} : vector<256x1xf32> -> vector<256x1xf32>
    %18 = vector.broadcast %17 : vector<256x1xf32> to vector<256x256xf32>
    %19 = arith.mulf %14, %18 : vector<256x256xf32>
    %20 = arith.truncf %19 : vector<256x256xf32> to vector<256x256xbf16>
    %cst_7 = arith.constant dense<0.000000e+00> : vector<256x128xf32>
    %21 = tpu.matmul %20, %8, %cst_7 {dimension_numbers = #tpu.dot_dimension_numbers<[1], [0], [0], [1], [0, 0, 1, 1], [], []>} : vector<256x256xbf16>, vector<256x128xbf16>, vector<256x128xf32> -> vector<256x128xf32>
    %22 = arith.truncf %21 : vector<256x128xf32> to vector<256x128xbf16>
    %c0_8 = arith.constant 0 : index
    %c0_9 = arith.constant 0 : index
    %23 = vector.load %arg5[%c0_8, %c0_9] : memref<128x128xbf16, #tpu.memory_space<vmem>>, vector<128x128xbf16>
    %cst_10 = arith.constant dense<0.000000e+00> : vector<256x128xf32>
    %24 = tpu.matmul %22, %23, %cst_10 {dimension_numbers = #tpu.dot_dimension_numbers<[1], [0], [0], [1], [0, 0, 1, 1], [], []>} : vector<256x128xbf16>, vector<128x128xbf16>, vector<256x128xf32> -> vector<256x128xf32>
    %c0_11 = arith.constant 0 : index
    %c0_12 = arith.constant 0 : index
    %25 = vector.load %arg6[%c0_11, %c0_12] : memref<1x128xf32, #tpu.memory_space<vmem>>, vector<1x128xf32>
    %26 = vector.broadcast %25 : vector<1x128xf32> to vector<256x128xf32>
    %27 = arith.addf %24, %26 : vector<256x128xf32>
    %cst_13 = arith.constant dense<0.000000e+00> : vector<256xf32>
    %28 = vector.multi_reduction <add>, %27, %cst_13 [1] : vector<256x128xf32> to vector<256xf32>
    %29 = vector.shape_cast %28 : vector<256xf32> to vector<256x1xf32>
    %cst_14 = arith.constant 1.280000e+02 : f32
    %30 = vector.broadcast %cst_14 : f32 to vector<256x1xf32>
    %31 = arith.divf %29, %30 : vector<256x1xf32>
    %32 = vector.broadcast %31 : vector<256x1xf32> to vector<256x128xf32>
    %33 = arith.subf %27, %32 : vector<256x128xf32>
    %34 = arith.mulf %33, %33 : vector<256x128xf32>
    %cst_15 = arith.constant dense<0.000000e+00> : vector<256xf32>
    %35 = vector.multi_reduction <add>, %34, %cst_15 [1] : vector<256x128xf32> to vector<256xf32>
    %36 = vector.shape_cast %35 : vector<256xf32> to vector<256x1xf32>
    %cst_16 = arith.constant 1.280000e+02 : f32
    %37 = vector.broadcast %cst_16 : f32 to vector<256x1xf32>
    %38 = arith.divf %36, %37 : vector<256x1xf32>
    %cst_17 = arith.constant 9.99999974E-6 : f32
    %39 = vector.broadcast %cst_17 : f32 to vector<256x1xf32>
    %40 = arith.addf %38, %39 : vector<256x1xf32>
    %41 = math.rsqrt %40 : vector<256x1xf32>
    %42 = vector.broadcast %41 : vector<256x1xf32> to vector<256x128xf32>
    %43 = arith.mulf %33, %42 : vector<256x128xf32>
    %44 = arith.truncf %43 : vector<256x128xf32> to vector<256x128xbf16>
    %c0_18 = arith.constant 0 : index
    %c0_19 = arith.constant 0 : index
    %45 = vector.load %arg7[%c0_18, %c0_19] : memref<128x128xbf16, #tpu.memory_space<vmem>>, vector<128x128xbf16>
    %cst_20 = arith.constant dense<0.000000e+00> : vector<256x128xf32>
    %46 = tpu.matmul %44, %45, %cst_20 {dimension_numbers = #tpu.dot_dimension_numbers<[1], [0], [0], [1], [0, 0, 1, 1], [], []>} : vector<256x128xbf16>, vector<128x128xbf16>, vector<256x128xf32> -> vector<256x128xf32>
    %c0_21 = arith.constant 0 : index
    %c0_22 = arith.constant 0 : index
    %47 = vector.load %arg8[%c0_21, %c0_22] : memref<1x128xf32, #tpu.memory_space<vmem>>, vector<1x128xf32>
    %48 = vector.broadcast %47 : vector<1x128xf32> to vector<256x128xf32>
    %49 = arith.addf %46, %48 : vector<256x128xf32>
    %cst_23 = arith.constant 5.000000e-01 : f32
    %50 = vector.broadcast %cst_23 : f32 to vector<256x128xf32>
    %51 = arith.mulf %50, %49 : vector<256x128xf32>
    %cst_24 = arith.constant 4.471500e-02 : f32
    %52 = vector.broadcast %cst_24 : f32 to vector<256x128xf32>
    %53 = arith.mulf %52, %49 : vector<256x128xf32>
    %54 = arith.mulf %53, %49 : vector<256x128xf32>
    %55 = arith.mulf %54, %49 : vector<256x128xf32>
    %56 = arith.addf %49, %55 : vector<256x128xf32>
    %cst_25 = arith.constant 0.797884583 : f32
    %57 = vector.broadcast %cst_25 : f32 to vector<256x128xf32>
    %58 = arith.mulf %57, %56 : vector<256x128xf32>
    %59 = math.tanh %58 : vector<256x128xf32>
    %cst_26 = arith.constant 1.000000e+00 : f32
    %60 = vector.broadcast %cst_26 : f32 to vector<256x128xf32>
    %61 = arith.addf %60, %59 : vector<256x128xf32>
    %62 = arith.mulf %51, %61 : vector<256x128xf32>
    %63 = arith.truncf %62 : vector<256x128xf32> to vector<256x128xbf16>
    %c0_27 = arith.constant 0 : index
    %c0_28 = arith.constant 0 : index
    %64 = vector.load %arg9[%c0_27, %c0_28] : memref<128x128xbf16, #tpu.memory_space<vmem>>, vector<128x128xbf16>
    %cst_29 = arith.constant dense<0.000000e+00> : vector<256x128xf32>
    %65 = tpu.matmul %63, %64, %cst_29 {dimension_numbers = #tpu.dot_dimension_numbers<[1], [0], [0], [1], [0, 0, 1, 1], [], []>} : vector<256x128xbf16>, vector<128x128xbf16>, vector<256x128xf32> -> vector<256x128xf32>
    %c0_30 = arith.constant 0 : index
    %c0_31 = arith.constant 0 : index
    %66 = vector.load %arg10[%c0_30, %c0_31] : memref<1x128xf32, #tpu.memory_space<vmem>>, vector<1x128xf32>
    %67 = vector.broadcast %66 : vector<1x128xf32> to vector<256x128xf32>
    %68 = arith.addf %65, %67 : vector<256x128xf32>
    %69 = arith.addf %68, %27 : vector<256x128xf32>
    %70 = tpu.transpose %69, [1, 0] : vector<256x128xf32> -> vector<128x256xf32>
    %c0_32 = arith.constant 0 : index
    %c0_33 = arith.constant 0 : index
    %c0_34 = arith.constant 0 : index
    %71 = vector.load %arg11[%c0_32, %c0_33, %c0_34] : memref<1x128x256xf32, #tpu.memory_space<vmem>>, vector<1x128x256xf32>
    %72 = vector.shape_cast %71 : vector<1x128x256xf32> to vector<128x256xf32>
    %73 = vector.shape_cast %70 : vector<128x256xf32> to vector<1x128x256xf32>
    tpu.vector_store %arg11[%c0_32, %c0_33, %c0_34], %73 {strides = array<i32>} : memref<1x128x256xf32, #tpu.memory_space<vmem>>, vector<1x128x256xf32>,
    return
  }
  func.func @transform_0(%arg0: i32, %arg1: i32) -> (i32, i32, i32) {
    %c0_i32 = arith.constant 0 : i32
    %c0_i32_0 = arith.constant 0 : i32
    %c0_i32_1 = arith.constant 0 : i32
    return %arg0, %c0_i32, %c0_i32_0 : i32, i32, i32
  }
  func.func @transform_1(%arg0: i32, %arg1: i32) -> (i32, i32) {
    %c0_i32 = arith.constant 0 : i32
    %c0_i32_0 = arith.constant 0 : i32
    %c0_i32_1 = arith.constant 0 : i32
    return %c0_i32, %c0_i32_0 : i32, i32
  }
  func.func @transform_2(%arg0: i32, %arg1: i32) -> (i32, i32) {
    %c0_i32 = arith.constant 0 : i32
    %c0_i32_0 = arith.constant 0 : i32
    %c0_i32_1 = arith.constant 0 : i32
    return %c0_i32, %c0_i32_0 : i32, i32
  }
  func.func @transform_3(%arg0: i32, %arg1: i32) -> (i32, i32) {
    %c0_i32 = arith.constant 0 : i32
    %c0_i32_0 = arith.constant 0 : i32
    %c0_i32_1 = arith.constant 0 : i32
    return %c0_i32, %c0_i32_0 : i32, i32
  }
  func.func @transform_4(%arg0: i32, %arg1: i32) -> (i32, i32) {
    %c0_i32 = arith.constant 0 : i32
    %c0_i32_0 = arith.constant 0 : i32
    %c0_i32_1 = arith.constant 0 : i32
    return %c0_i32, %c0_i32_0 : i32, i32
  }
  func.func @transform_5(%arg0: i32, %arg1: i32) -> (i32, i32) {
    %c0_i32 = arith.constant 0 : i32
    %c0_i32_0 = arith.constant 0 : i32
    %c0_i32_1 = arith.constant 0 : i32
    return %c0_i32, %c0_i32_0 : i32, i32
  }
  func.func @transform_6(%arg0: i32, %arg1: i32) -> (i32, i32) {
    %c0_i32 = arith.constant 0 : i32
    %c0_i32_0 = arith.constant 0 : i32
    %c0_i32_1 = arith.constant 0 : i32
    return %c0_i32, %c0_i32_0 : i32, i32
  }
  func.func @transform_7(%arg0: i32, %arg1: i32) -> (i32, i32) {
    %c0_i32 = arith.constant 0 : i32
    %c0_i32_0 = arith.constant 0 : i32
    %c0_i32_1 = arith.constant 0 : i32
    return %c0_i32, %c0_i32_0 : i32, i32
  }
  func.func @transform_8(%arg0: i32, %arg1: i32) -> (i32, i32) {
    %c0_i32 = arith.constant 0 : i32
    %c0_i32_0 = arith.constant 0 : i32
    %c0_i32_1 = arith.constant 0 : i32
    return %c0_i32, %c0_i32_0 : i32, i32
  }
  func.func @transform_9(%arg0: i32, %arg1: i32) -> (i32, i32, i32) {
    %c0_i32 = arith.constant 0 : i32
    %c0_i32_0 = arith.constant 0 : i32
    return %arg0, %c0_i32, %arg1 : i32, i32, i32
  }
}

</mosaic_0001>

<bundles_post_ra>
// kernel: tpu_custom_call.1
= control target key start
LH: loop header
LB: loop body
LE: loop exit
PB: predicated region body
PF: predicated region fallthrough
CT: control target
= control target key end

     0   :  { %s7866_s0 = inlined_call_operand.hbm [shape: f32[2,128,256], index: 0, kind: input, shape index: {}]   ;;  %s7867_s1 = inlined_call_operand.hbm [shape: bf16[128,384], index: 1, kind: input, shape index: {}]   ;;  %s7868_s2 = inlined_call_operand.vmem [shape: f32[1,384], index: 2, kind: input, shape index: {}]   ;;  %s7869_s3 = inlined_call_operand.hbm [shape: bf16[128,128], index: 3, kind: input, shape index: {}]   ;;  %s7870_s4 = inlined_call_operand.vmem [shape: f32[1,128], index: 4, kind: input, shape index: {}]   ;;  %s7871_s5 = inlined_call_operand.hbm [shape: bf16[128,128], index: 5, kind: input, shape index: {}]   ;;  %s7872_s6 = inlined_call_operand.vmem [shape: f32[1,128], index: 6, kind: input, shape index: {}]   ;;  %s7873_s7 = inlined_call_operand.hbm [shape: bf16[128,128], index: 7, kind: input, shape index: {}]   ;;  %s7874_s8 = inlined_call_operand.vmem [shape: f32[1,128], index: 8, kind: input, shape index: {}]   ;;  %s7875_s9 = inlined_call_operand.hbm [shape: f32[2,128,256], index: 9, kind: output, shape index: {}]  }
   0x1   :  { %7915 = sst [smem:[#allocation41_spill]] %s7867_s1 }
   0x2   :  { %7916 = sst [smem:[#allocation42_spill]] %s7869_s3 }
   0x3   :  { %7917 = sst [smem:[#allocation43_spill]] %s7871_s5 }
   0x4   :  { %14 = vsyncpa [#allocation6], 0 }
   0x5   :  { %16 = vsyncpa [#allocation6 + $0x1], 0 }
   0x6   :  { %17 = vsyncpa [#allocation9], 0 }
   0x7   :  { %18 = vsyncpa [#allocation12], 0 }
   0x8   :  { %19 = vsyncpa [#allocation7], 0 }
   0x9   :  { %21 = vsyncpa [#allocation7 + $0x1], 0  ;;  %s6332_s30 = smov 0   ;;  %s6334_s10 = smov 0  }
   0xa   :  { %s6336_s11 = smov 0   ;;  %s6338_s12 = smov 0  }
   0xb   :  { %s6340_s13 = smov 0   ;;  %s6342_s14 = smov 0  }
   0xc LB: > { %7918 = sst [smem:[#allocation19_spill]] %s6245_s30  ;;  %s4460_s15 = sadd.s32 4294967295, %s6265_s14   ;;  %s6265_s14 = sphi %s6342_s14, %s27_s14   ;;  %s6261_s13 = sphi %s6340_s13, %s8010_s13   ;;  %s6257_s12 = sphi %s6338_s12, %s8009_s12   ;;  %s6253_s11 = sphi %s6336_s11, %s8008_s11   ;;  %s6249_s10 = sphi %s6334_s10, %s8007_s10   ;;  %s6245_s30 = sphi %s6332_s30, %s8006_s30  }
   0xd   : > { %s4461_s16 = sadd.s32 4294967294, %s6265_s14   ;;  %p59_p0 = scmp.ne.s32.totalorder %s6249_s10, %s6245_s30 }
   0xe   : > { %p6366_p1 = scmp.eq.s32.totalorder %s4460_s15, 0  ;;  %p6370_p2 = scmp.eq.s32.totalorder %s4460_s15, 1 }
   0xf   : > { %p259_p3 = scmp.eq.s32.totalorder %s4461_s16, 1  ;;  %p4462_p5 = scmp.ge.s32.totalorder %s6265_s14, 1 }
  0x10   : > { %s7919_s17 = scalar_select %p6366_p1, 1, 0 }
  0x11   : > { %p6376_p4 = por %p6366_p1, %p59_p0  ;;  %p6381_p6 = por %p259_p3, %p59_p0 }
  0x12   : > { %p266_p7 = scmp.lt.s32.totalorder %s6265_s14, 3  ;;  %s6267_s22 = smov [#allocation8]  }
  0x13   : > { %s7922_s20 = scalar_select %p6381_p6, 1, 0 }
  0x14   : > { %p6386_p8 = pnand %p4462_p5, %p266_p7  ;;  %s278_s23 = sshll.u32 %s6267_s22, 4  ;;  %s279_s23 = int_to_ptr.vmem [resolvable:$true] %s278_s23 }
  0x15   : > { %7923 = sst [smem:[#allocation20_spill]] %s7922_s20  ;;  %s6268_s25 = smov [#allocation11]  }
  0x16   : > { %p5529_p9 = pneg %p6386_p8  ;;  %s310_s26 = sshll.u32 %s6268_s25, 4  ;;  %s311_s26 = int_to_ptr.vmem [resolvable:$true] %s310_s26 }
  0x17   : > { %s6056_s27 = scalar_lea.vmem %s279_s23, 3072  ;;  %p6064_p5 = scmp.lt.s32.totalorder %s279_s23, %s279_s23 }
  0x18   : > { %p6395_p11 = pnand %p5529_p9, %p6366_p1  ;;  %p6057_p13 = scmp.ne.s32.totalorder %s279_s23, %s6056_s27 }
  0x19   : > { %p6065_p7 = scmp.lt.s32.totalorder %s6056_s27, %s6056_s27 }
  0x1a   : > { %p6047_p12 = pneg %p6395_p11 }
  0x1b   : > { %p6066_p10 = por %p6065_p7, %p6064_p5 }
  0x1c   : > { %p6059_p0 = pnand %p6057_p13, %p6047_p12 }
  0x1e   : > { %p6060_p3 = pneg %p6059_p0 }
  0x20   : > { %p6067_p6 = pnand %p6066_p10, %p6060_p3 }
  0x22   : > { %6070 = shalt.err (!%p6067_p6)
}
  0x23   : > { %s6269_s28 = smov 192   ;;  %s6270_s29 = smov 12  }
  0x24   : > { %s7926_s1 = sld [smem:[#allocation41_spill]]  ;;  %s6271_s22 = smov [#allocation10]  }
  0x25   : > { %s294_s25 = sshll.u32 %s6271_s22, 4  ;;  %s6082_s20 = scalar_lea.vmem %s311_s26, 1024  ;;  %s295_s25 = int_to_ptr.vmem [resolvable:$true] %s294_s25 }
  0x26   : > { %p6083_p9 = scmp.ne.s32.totalorder %s311_s26, %s6082_s20  ;;  %p6090_p10 = scmp.lt.s32.totalorder %s311_s26, %s311_s26 }
  0x27   : > { %p6091_p6 = scmp.lt.s32.totalorder %s6082_s20, %s6082_s20 }
  0x28   : > { %p6085_p13 = pnand %p6083_p9, %p6047_p12 }
  0x29   : > { %p6092_p3 = por %p6091_p6, %p6090_p10 }
  0x2a   : > { %5532 = dma.hbm_to_vmem [thread:$0]  (!%p6395_p11), %s7926_s1, 3072, %s279_s23, [#allocation9], %s6269_s28, %s6269_s28, %s6270_s29  }
  0x2b   : > { %p6086_p0 = pneg %p6085_p13 }
  0x2d   : > { %p6093_p5 = pnand %p6092_p3, %p6086_p0 }
  0x2f   : > { %6096 = shalt.err (!%p6093_p5)
}
  0x30   : > { %s6272_s27 = smov 64   ;;  %s6273_s30 = smov 4  }
  0x31   : > { %s7927_s5 = sld [smem:[#allocation43_spill]]  ;;  %s6108_s29 = scalar_lea.vmem %s295_s25, 1024 }
  0x32   : > { %p6109_p7 = scmp.ne.s32.totalorder %s295_s25, %s6108_s29  ;;  %p6116_p1 = scmp.lt.s32.totalorder %s295_s25, %s295_s25 }
  0x33   : > { %p6117_p10 = scmp.lt.s32.totalorder %s6108_s29, %s6108_s29 }
  0x34   : > { %p6111_p9 = pnand %p6109_p7, %p6047_p12 }
  0x35   : > { %p6118_p0 = por %p6117_p10, %p6116_p1 }
  0x36   : > { %p6112_p13 = pneg %p6111_p9 }
  0x37   : > { %5538 = dma.hbm_to_vmem [thread:$0]  (!%p6395_p11), %s7927_s5, 1024, %s311_s26, [#allocation12], %s6272_s27, %s6272_s27, %s6273_s30  }
  0x38   : > { %p6119_p6 = pnand %p6118_p0, %p6112_p13 }
  0x3a   : > { %6122 = shalt.err (!%p6119_p6)
}
  0x3b   : > { %s7928_s3 = sld [smem:[#allocation42_spill]]  ;;  %s6274_s26 = smov [#allocation13]  }
  0x3c   : > { %s326_s16 = sshll.u32 %s6274_s26, 4  ;;  %s327_s16 = int_to_ptr.vmem [resolvable:$true] %s326_s16 }
  0x3d   : > { %s6134_s22 = scalar_lea.vmem %s327_s16, 1024  ;;  %p6142_p9 = scmp.lt.s32.totalorder %s327_s16, %s327_s16 }
  0x3e   : > { %p6135_p3 = scmp.ne.s32.totalorder %s327_s16, %s6134_s22  ;;  %p6143_p1 = scmp.lt.s32.totalorder %s6134_s22, %s6134_s22 }
  0x40   : > { %p6137_p5 = pnand %p6135_p3, %p6047_p12  ;;  %p6144_p13 = por %p6143_p1, %p6142_p9 }
  0x41   : > { %5535 = dma.hbm_to_vmem [thread:$0]  (!%p6395_p11), %s7928_s3, 1024, %s295_s25, [#allocation9], %s6272_s27, %s6272_s27, %s6273_s30  }
  0x42   : > { %p6138_p7 = pneg %p6137_p5 }
  0x44   : > { %p6145_p10 = pnand %p6144_p13, %p6138_p7 }
  0x46   : > { %6148 = shalt.err (!%p6145_p10)
}
  0x47   : > { %5541 = dma.hbm_to_vmem [thread:$0]  (!%p6395_p11), %s7873_s7, 1024, %s327_s16, [#allocation12], %s6272_s27, %s6272_s27, %s6273_s30  }
  0x48   : > { %s39_s25 = sadd.s32 1, %s6261_s13  ;;  %s46_s29 = sadd.s32 1, %s6253_s11 }
  0x49   : > { %p41_p12 = scmp.ge.s32.totalorder %s39_s25, 2  ;;  %p53_p0 = scmp.ne.s32.totalorder %s6253_s11, %s6249_s10 }
  0x4a   : > { %p54_p6 = scmp.eq.s32.totalorder %s6265_s14, 0  ;;  %p5554_p3 = scmp.lt.s32.totalorder %s6265_s14, 2 }
  0x4b   : > { %s8012_s25 = smov (%p41_p12, %s39_s25), 0  ;;  %p6443_p7 = por %p6370_p2, %p53_p0 }
  0x4c   : > { %p55_p5 = por %p54_p6, %p53_p0  ;;  %s43_s20 = ssub.s32 %s6261_s13, %s8012_s25 }
  0x4d   : > { %s343_s15 = sand.u32 1, %s6253_s11   ;;  %p44_p9 = scmp.eq.s32.totalorder %s43_s20, 0 }
  0x4e   : > { %s4468_s30 = sshll.u32 %s343_s15, 8  ;;  %s4678_s27 = sshll.u32 %s6261_s13, 12 }
  0x4f   : > { %s6452_s26 = scalar_select %p44_p9, %s6253_s11, %s46_s29  }
  0x50   : > { %s353_s23 = scalar_lea.hbm %s7866_s0, %s4678_s27  ;;  %s347_s28 = scalar_lea.vmem [#allocation5], %s4468_s30 }
  0x51   : > { %s354_s1 = sshll.u32 %s347_s28, 4  ;;  %p6459_p11 = pnand %p5554_p3, %p55_p5  ;;  %s355_s1 = int_to_ptr.vmem [resolvable:$true] %s354_s1 }
  0x52   : > { %s344_s3 = scalar_lea.sflag [#allocation6], %s343_s15  ;;  %s6162_s20 = scalar_lea.vmem %s355_s1, 4096 }
  0x53   : > { %p6151_p2 = pneg %p6459_p11  ;;  %p6163_p1 = scmp.ne.s32.totalorder %s355_s1, %s6162_s20 }
  0x54   : > { %s6275_s29 = smov [#allocation5]  }
  0x55   : > { %p6165_p13 = pnand %p6163_p1, %p6151_p2  ;;  %s6167_s5 = sshll.u32 %s6275_s29, 4  ;;  %s6168_s5 = int_to_ptr.vmem [resolvable:$false] %s6167_s5 }
  0x56   : > { %s6169_s27 = scalar_lea.vmem %s6168_s5, 8192  ;;  %p6170_p12 = scmp.lt.s32.totalorder %s355_s1, %s6168_s5 }
  0x57   : > { %p6166_p10 = pneg %p6165_p13  ;;  %p6171_p0 = scmp.lt.s32.totalorder %s6169_s27, %s6162_s20 }
  0x59   : > { %p6172_p6 = por %p6171_p0, %p6170_p12 }
  0x5b   : > { %p6173_p3 = pnand %p6172_p6, %p6166_p10 }
  0x5d   : > { %6176 = shalt.err (!%p6173_p3)
}
  0x5e   : > { %s6276_s30 = smov 256   ;;  %s6277_s16 = smov 16  }
  0x5f   : > { %5545 = dma.hbm_to_vmem [thread:$0]  (!%p6459_p11), %s353_s23, 4096, %s355_s1, %s344_s3, %s6276_s30, %s6276_s30, %s6277_s16  }
  0x60   : > { %366 = sbr.rel (%p6386_p8) target bundleno = 2635 (0xa4b), region = 56 }
  0x65   : > { %s6470_s15 = sand.u32 1, %s6249_s10  }
  0x66   : > { %s4472_s5 = sshll.u32 %s6470_s15, 8  ;;  %s369_s22 = scalar_lea.sflag [#allocation6], %s6470_s15 }
  0x67   : > { %s6476_s28 = scalar_lea.vmem [#allocation5], %s4472_s5 }
  0x68   : > { %6228 = dma.done.wait (%p6376_p4), %s369_s22, 4096  }
  0x69   : > { %6230 = vsyncadd (%p6376_p4), %s369_s22, 4294963200  ;;  %p7931_p5 = scmp.ne.s32.totalorder %s7919_s17, 0 }
  0x6b   : > { %6232 = dma.done.wait (%p7931_p5), [#allocation9], 4096  }
  0x6c   : > { %6234 = vsyncadd (%p7931_p5), [#allocation9], 4294963200 }
  0x6d   : > { %6236 = dma.done.wait (%p7931_p5), [#allocation12], 2048  }
  0x6e   : > { %6238 = vsyncadd (%p7931_p5), [#allocation12], 4294965248  ;;  %v429_v0 = vld [vmem:[%s6476_s28] sm:$0xff]  ;;  %v431_v1 = vld [vmem:[%s6476_s28 + $0x10] sm:$0xff]  ;;  %v6278_v3 = vmov 0   ;;  %s7768_s29 = scalar_lea.vmem [#allocation14], %s4472_s5 }
  0x6f   : > { %461 = vxpose.xlu0.b32.start [1/16] %v429_v0, 128  ;;  %v430_v2 = vld [vmem:[%s6476_s28 + $0x8] sm:$0xff]  ;;  %750 = vmatprep.mubr.bf16.mxu0 %v6278_v3  ;;  %v432_v4 = vld [vmem:[%s6476_s28 + $0x18] sm:$0xff]  ;;  %v433_v5 = vld [vmem:[%s6476_s28 + $0x20] sm:$0xff]  ;;  %s4775_s27 = sshll.u32 %s6257_s12, 12  ;;  %s4336_s30 = sshll.u32 %s7768_s29, 4  ;;  %s7817_s30 = int_to_ptr.vmem [resolvable:$true] %s4336_s30 }
  0x70   : > { %493 = vxpose.xlu1.b32.start [1/16] %v430_v2, 128  ;;  %v434_v6 = vld [vmem:[%s6476_s28 + $0x28] sm:$0xff]  ;;  %v435_v7 = vld [vmem:[%s6476_s28 + $0x30] sm:$0xff]  ;;  %v436_v8 = vld [vmem:[%s6476_s28 + $0x38] sm:$0xff]  ;;  %s7815_s22 = scalar_lea.hbm %s7875_s9, %s4775_s27  ;;  %s6177_s1 = scalar_lea.vmem %s7817_s30, 4096 }
  0x71   : > { %v5621_v9 = vld [vmem:[#allocation8 + $0xac] ss:$12 sps:$4 sm:$0xff]   ;;  %v5623_v10 = vld [vmem:[#allocation8 + $0xa8] ss:$12 sps:$4 sm:$0xff]   ;;  %v437_v12 = vld [vmem:[%s6476_s28 + $0x40] sm:$0xff]  ;;  %p6178_p4 = scmp.ne.s32.totalorder %s7817_s30, %s6177_s1  ;;  %s6279_s12 = smov [#allocation14]  }
  0x72   : > { %v5624_v11 = vld [vmem:[#allocation8 + $0x94] ss:$12 sps:$4 sm:$0xff]   ;;  %718 = vmatprep.subr.bf16.mxu0 %v5621_v9  ;;  %v5626_v13 = vld [vmem:[#allocation8 + $0x90] ss:$12 sps:$4 sm:$0xff]   ;;  %v438_v16 = vld [vmem:[%s6476_s28 + $0x48] sm:$0xff]  ;;  %s6181_s3 = sshll.u32 %s6279_s12, 4  ;;  %s6182_s3 = int_to_ptr.vmem [resolvable:$false] %s6181_s3 }
  0x73   : > { %462 = vxpose.xlu0.b32.cont [2/16] %v431_v1, 128  ;;  %719 = vmatpush1.bf16.msra.mxu0 %v5623_v10  ;;  %v5627_v14 = vld [vmem:[#allocation8 + $0x7c] ss:$12 sps:$4 sm:$0xff]   ;;  %v439_v17 = vld [vmem:[%s6476_s28 + $0x50] sm:$0xff]  ;;  %v5633_v18 = vld [vmem:[#allocation8 + $0x98] ss:$12 sps:$4 sm:$0xff]   ;;  %p6179_p8 = pnand %p6178_p4, %p6443_p7  ;;  %s6183_s17 = scalar_lea.vmem %s6182_s3, 8192 }
  0x74   : > { %494 = vxpose.xlu1.b32.cont [2/16] %v432_v4, 128  ;;  %720 = vmatprep.subr.bf16.mxu0 %v5624_v11  ;;  %v5629_v15 = vld [vmem:[#allocation8 + $0xb0] ss:$12 sps:$4 sm:$0xff]   ;;  %v5630_v20 = vld [vmem:[#allocation8 + $0x78] ss:$12 sps:$4 sm:$0xff]   ;;  %v5637_v22 = vld [vmem:[#allocation8 + $0x80] ss:$12 sps:$4 sm:$0xff]   ;;  %p6184_p11 = scmp.lt.s32.totalorder %s7817_s30, %s6182_s3  ;;  %p6185_p2 = scmp.lt.s32.totalorder %s6183_s17, %s6177_s1 }
  0x75   : > { %5317 = vmatprep.subr.bf16.mxu1 %v5629_v15  ;;  %v440_v19 = vld [vmem:[%s6476_s28 + $0x58] sm:$0xff]  ;;  %v5631_v21 = vld [vmem:[#allocation8 + $0x64] ss:$12 sps:$4 sm:$0xff]   ;;  %v5634_v24 = vld [vmem:[#allocation8 + $0x60] ss:$12 sps:$4 sm:$0xff]   ;;  %p6180_p9 = pneg %p6179_p8 }
  0x76   : > { %5318 = vmatpush3.bf16.msra.mxu1 %v5629_v15  ;;  %v441_v23 = vld [vmem:[%s6476_s28 + $0x60] sm:$0xff]  ;;  %v5635_v25 = vld [vmem:[#allocation8 + $0x4c] ss:$12 sps:$4 sm:$0xff]   ;;  %v5641_v27 = vld [vmem:[#allocation8 + $0x68] ss:$12 sps:$4 sm:$0xff]   ;;  %p6186_p1 = por %p6185_p2, %p6184_p11 }
  0x77   : > { %463 = vxpose.xlu0.b32.cont [3/16] %v433_v5, 128  ;;  %721 = vmatpush1.bf16.msra.mxu0 %v5626_v13  ;;  %v442_v26 = vld [vmem:[%s6476_s28 + $0x68] sm:$0xff]  ;;  %v443_v28 = vld [vmem:[%s6476_s28 + $0x70] sm:$0xff]  ;;  %v444_v29 = vld [vmem:[%s6476_s28 + $0x78] sm:$0xff] }
  0x78   : > { %495 = vxpose.xlu1.b32.cont [3/16] %v434_v6, 128  ;;  %722 = vmatprep.subr.bf16.mxu0 %v5627_v14  ;;  %v5638_v30 = vld [vmem:[#allocation8 + $0x48] ss:$12 sps:$4 sm:$0xff]   ;;  %v445_v32 = vld [vmem:[%s6476_s28 + $0x80] sm:$0xff]  ;;  %v5642_v33 = vld [vmem:[#allocation8 + $0x30] ss:$12 sps:$4 sm:$0xff]   ;;  %p6187_p13 = pnand %p6186_p1, %p6180_p9 }
  0x79   : > { %5319 = vmatprep.subr.bf16.mxu1 %v5633_v18  ;;  %v5639_v31 = vld [vmem:[#allocation8 + $0x34] ss:$12 sps:$4 sm:$0xff]   ;;  %v5645_v34 = vld [vmem:[#allocation8 + $0x50] ss:$12 sps:$4 sm:$0xff]   ;;  %v446_v36 = vld [vmem:[%s6476_s28 + $0x88] sm:$0xff] }
  0x7a   : > { %5320 = vmatpush3.bf16.msra.mxu1 %v5633_v18  ;;  %v5643_v35 = vld [vmem:[#allocation8 + $0x1c] ss:$12 sps:$4 sm:$0xff]   ;;  %v5649_v37 = vld [vmem:[#allocation8 + $0x38] ss:$12 sps:$4 sm:$0xff]   ;;  %v447_v38 = vld [vmem:[%s6476_s28 + $0x90] sm:$0xff] }
  0x7b   : > { %464 = vxpose.xlu0.b32.cont [4/16] %v435_v7, 128  ;;  %723 = vmatpush1.bf16.msra.mxu0 %v5630_v20  ;;  %v5646_v39 = vld [vmem:[#allocation8 + $0x18] ss:$12 sps:$4 sm:$0xff]   ;;  %v5651_v42 = vld [vmem:[#allocation8 + $0x20] ss:$12 sps:$4 sm:$0xff]   ;;  %v5652_v45 = vld [vmem:[#allocation8 + $0x8] ss:$12 sps:$4 sm:$0xff]  }
  0x7c   : > { %496 = vxpose.xlu1.b32.cont [4/16] %v436_v8, 128  ;;  %724 = vmatprep.subr.bf16.mxu0 %v5631_v21  ;;  %v5647_v40 = vld [vmem:[#allocation8 + $0x4] ss:$12 sps:$4 sm:$0xff]   ;;  %v448_v41 = vld [vmem:[%s6476_s28 + $0x98] sm:$0xff]  ;;  %v5650_v44 = vld [vmem:[#allocation8] ss:$12 sps:$4 sm:$0xff]  }
  0x7d   : > { %5321 = vmatprep.subr.bf16.mxu1 %v5637_v22  ;;  %v449_v43 = vld [vmem:[%s6476_s28 + $0xa0] sm:$0xff]  ;;  %v450_v46 = vld [vmem:[%s6476_s28 + $0xa8] sm:$0xff]  ;;  %v451_v47 = vld [vmem:[%s6476_s28 + $0xb0] sm:$0xff] }
  0x7e   : > { %5322 = vmatpush3.bf16.msra.mxu1 %v5637_v22  ;;  %v452_v48 = vld [vmem:[%s6476_s28 + $0xb8] sm:$0xff]  ;;  %v453_v49 = vld [vmem:[%s6476_s28 + $0xc0] sm:$0xff]  ;;  %v454_v50 = vld [vmem:[%s6476_s28 + $0xc8] sm:$0xff] }
  0x7f   : > { %465 = vxpose.xlu0.b32.cont [5/16] %v437_v12, 128  ;;  %725 = vmatpush1.bf16.msra.mxu0 %v5634_v24  ;;  %v455_v51 = vld [vmem:[%s6476_s28 + $0xd0] sm:$0xff]  ;;  %v456_v52 = vld [vmem:[%s6476_s28 + $0xd8] sm:$0xff]  ;;  %v457_v53 = vld [vmem:[%s6476_s28 + $0xe0] sm:$0xff] }
  0x80   : > { %497 = vxpose.xlu1.b32.cont [5/16] %v438_v16, 128  ;;  %726 = vmatprep.subr.bf16.mxu0 %v5635_v25  ;;  %v458_v54 = vld [vmem:[%s6476_s28 + $0xe8] sm:$0xff]  ;;  %v459_v55 = vld [vmem:[%s6476_s28 + $0xf0] sm:$0xff]  ;;  %v460_v56 = vld [vmem:[%s6476_s28 + $0xf8] sm:$0xff]  ;;  %s4321_s28 = scalar_lea.sflag [#allocation7], %s6470_s15 }
  0x81   : > { %5323 = vmatprep.subr.bf16.mxu1 %v5641_v27 }
  0x82   : > { %5324 = vmatpush3.bf16.msra.mxu1 %v5641_v27 }
  0x83   : > { %466 = vxpose.xlu0.b32.cont [6/16] %v439_v17, 128  ;;  %727 = vmatpush1.bf16.msra.mxu0 %v5638_v30 }
  0x84   : > { %498 = vxpose.xlu1.b32.cont [6/16] %v440_v19, 128  ;;  %728 = vmatprep.subr.bf16.mxu0 %v5639_v31 }
  0x85   : > { %5325 = vmatprep.subr.bf16.mxu1 %v5645_v34 }
  0x86   : > { %5326 = vmatpush3.bf16.msra.mxu1 %v5645_v34 }
  0x87   : > { %467 = vxpose.xlu0.b32.cont [7/16] %v441_v23, 128  ;;  %729 = vmatpush1.bf16.msra.mxu0 %v5642_v33 }
  0x88   : > { %499 = vxpose.xlu1.b32.cont [7/16] %v442_v26, 128  ;;  %730 = vmatprep.subr.bf16.mxu0 %v5643_v35 }
  0x89   : > { %5327 = vmatprep.subr.bf16.mxu1 %v5649_v37 }
  0x8a   : > { %5328 = vmatpush3.bf16.msra.mxu1 %v5649_v37 }
  0x8b   : > { %468 = vxpose.xlu0.b32.cont [8/16] %v443_v28, 128  ;;  %731 = vmatpush1.bf16.msra.mxu0 %v5646_v39 }
  0x8c   : > { %500 = vxpose.xlu1.b32.cont [8/16] %v444_v29, 128  ;;  %732 = vmatprep.subr.bf16.mxu0 %v5647_v40 }
  0x8d   : > { %5329 = vmatprep.subr.bf16.mxu1 %v5651_v42 }
  0x8e   : > { %5330 = vmatpush3.bf16.msra.mxu1 %v5651_v42  ;;  %v575_v42 = vlaneseq }
  0x8f   : > { %469 = vxpose.xlu0.b32.cont [9/16] %v445_v32, 128  ;;  %733 = vmatpush1.bf16.msra.mxu0 %v5650_v44 }
  0x90   : > { %501 = vxpose.xlu1.b32.cont [9/16] %v446_v36, 128  ;;  %5331 = vmatprep.subr.bf16.mxu1 %v5652_v45 }
  0x92   : > { %5332 = vmatpush3.bf16.msra.mxu1 %v5652_v45  ;;  %v573_v45 = vld [vmem:[%s7868_s2] sm:$0x7] }
  0x93   : > { %470 = vxpose.xlu0.b32.cont [10/16] %v447_v38, 128 }
  0x94   : > { %502 = vxpose.xlu1.b32.cont [10/16] %v448_v41, 128 }
  0x97   : > { %471 = vxpose.xlu0.b32.cont [11/16] %v449_v43, 128  ;;  %v576_v43 = vshrl.u32 %v575_v42, 7 }
  0x98   : > { %503 = vxpose.xlu1.b32.cont [11/16] %v450_v46, 128 }
  0x99   : > { %v577_v44 = vsub.s32 0, %v576_v43  ;;  %v581_v46 = vsub.s32 1, %v576_v43 }
  0x9b   : > { %472 = vxpose.xlu0.b32.cont [12/16] %v451_v47, 128 }
  0x9c   : > { %504 = vxpose.xlu1.b32.cont [12/16] %v452_v48, 128  ;;  %v6541_v48 = vrot.slane %v573_v45, %v577_v44 }
  0x9f   : > { %473 = vxpose.xlu0.b32.cont [13/16] %v453_v49, 128 }
  0xa0   : > { %505 = vxpose.xlu1.b32.cont [13/16] %v454_v50, 128  ;;  %v6543_v50 = vrot.slane %v573_v45, %v581_v46 }
  0xa3   : > { %474 = vxpose.xlu0.b32.cont [14/16] %v455_v51, 128 }
  0xa4   : > { %506 = vxpose.xlu1.b32.cont [14/16] %v456_v52, 128 }
  0xa7   : > { %475 = vxpose.xlu0.b32.cont [15/16] %v457_v53, 128  ;;  %v585_v53 = vsub.s32 2, %v576_v43 }
  0xa8   : > { %507 = vxpose.xlu1.b32.cont [15/16] %v458_v54, 128 }
  0xab   : > { %476 = vxpose.xlu0.b32.end [16/16] %v459_v55, 128 }
  0xac   : > { %508 = vxpose.xlu1.b32.end [16/16] %v460_v56, 128 }
  0xeb   : > { %v477_v57 = vpop.trf.xlu0 }
  0xec   : > { %v509_v58 = vpop.trf.xlu1 }
  0xef   : > { %v478_v59 = vpop.trf.xlu0 }
  0xf0   : > { %v525_v60 = vpack.c.bf16 %v478_v59, %v477_v57  ;;  %v510_v61 = vpop.trf.xlu1 }
  0xf1   : > { %v533_v27 = vpack.c.bf16 %v510_v61, %v509_v58  ;;  %v6549_v61 = vrot.slane %v573_v45, %v585_v53 }
  0xf2   : > { %751 = vmatmul.mubr.bf16.vlgmr.msra.gmra.mxu0 %v525_v60  ;;  %5333 = vmatprep.mubr.bf16.mxu1 %v525_v60 }
  0xf3   : > { %v479_v62 = vpop.trf.xlu0  ;;  %760 = vmatprep.mubr.bf16.mxu0 %v6278_v3 }
  0xf4   : > { %v511_v63 = vpop.trf.xlu1 }
  0xf7   : > { %v480_v0 = vpop.trf.xlu0 }
  0xf8   : > { %v526_v1 = vpack.c.bf16 %v480_v0, %v479_v62  ;;  %v512_v4 = vpop.trf.xlu1 }
  0xf9   : > { %v534_v31 = vpack.c.bf16 %v512_v4, %v511_v63 }
  0xfa   : > { %761 = vmatmul.mubr.bf16.gmra.mxu0 %v526_v1  ;;  %5334 = vmatmul.mubr.bf16.vlgmr.msra.gmra.mxu1 %v526_v1 }
  0xfb   : > { %v481_v2 = vpop.trf.xlu0  ;;  %770 = vmatprep.mubr.bf16.mxu0 %v6278_v3 }
  0xfc   : > { %v513_v7 = vpop.trf.xlu1 }
  0xff   : > { %v482_v5 = vpop.trf.xlu0 }
 0x100   : > { %v527_v6 = vpack.c.bf16 %v482_v5, %v481_v2  ;;  %v514_v10 = vpop.trf.xlu1 }
 0x101   : > { %v535_v32 = vpack.c.bf16 %v514_v10, %v513_v7 }
 0x102   : > { %771 = vmatmul.mubr.bf16.gmra.mxu0 %v527_v6  ;;  %5337 = vmatprep.mubr.bf16.mxu1 %v527_v6 }
 0x103   : > { %v483_v8 = vpop.trf.xlu0  ;;  %780 = vmatprep.mubr.bf16.mxu0 %v6278_v3 }
 0x104   : > { %v515_v13 = vpop.trf.xlu1 }
 0x107   : > { %v484_v9 = vpop.trf.xlu0 }
 0x108   : > { %v528_v11 = vpack.c.bf16 %v484_v9, %v483_v8  ;;  %v516_v17 = vpop.trf.xlu1 }
 0x109   : > { %v536_v34 = vpack.c.bf16 %v516_v17, %v515_v13 }
 0x10a   : > { %781 = vmatmul.mubr.bf16.gmra.mxu0 %v528_v11  ;;  %5338 = vmatmul.mubr.bf16.gmra.mxu1 %v528_v11 }
 0x10b   : > { %v485_v12 = vpop.trf.xlu0  ;;  %790 = vmatprep.mubr.bf16.mxu0 %v6278_v3 }
 0x10c   : > { %v517_v20 = vpop.trf.xlu1 }
 0x10f   : > { %v486_v14 = vpop.trf.xlu0 }
 0x110   : > { %v529_v15 = vpack.c.bf16 %v486_v14, %v485_v12  ;;  %v518_v23 = vpop.trf.xlu1 }
 0x111   : > { %v537_v35 = vpack.c.bf16 %v518_v23, %v517_v20 }
 0x112   : > { %791 = vmatmul.mubr.bf16.gmra.mxu0 %v529_v15  ;;  %5341 = vmatprep.mubr.bf16.mxu1 %v529_v15 }
 0x113   : > { %v487_v16 = vpop.trf.xlu0  ;;  %800 = vmatprep.mubr.bf16.mxu0 %v6278_v3 }
 0x114   : > { %v519_v26 = vpop.trf.xlu1 }
 0x117   : > { %v488_v18 = vpop.trf.xlu0 }
 0x118   : > { %v530_v19 = vpack.c.bf16 %v488_v18, %v487_v16  ;;  %v520_v30 = vpop.trf.xlu1 }
 0x119   : > { %v538_v38 = vpack.c.bf16 %v520_v30, %v519_v26 }
 0x11a   : > { %801 = vmatmul.mubr.bf16.gmra.mxu0 %v530_v19  ;;  %5342 = vmatmul.mubr.bf16.gmra.mxu1 %v530_v19 }
 0x11b   : > { %v489_v21 = vpop.trf.xlu0  ;;  %810 = vmatprep.mubr.bf16.mxu0 %v6278_v3 }
 0x11c   : > { %v521_v33 = vpop.trf.xlu1 }
 0x11f   : > { %v490_v22 = vpop.trf.xlu0 }
 0x120   : > { %v531_v24 = vpack.c.bf16 %v490_v22, %v489_v21  ;;  %v522_v36 = vpop.trf.xlu1 }
 0x121   : > { %v539_v39 = vpack.c.bf16 %v522_v36, %v521_v33 }
 0x122   : > { %811 = vmatmul.mubr.bf16.gmra.mxu0 %v531_v24  ;;  %5345 = vmatprep.mubr.bf16.mxu1 %v531_v24 }
 0x123   : > { %v491_v25 = vpop.trf.xlu0  ;;  %820 = vmatprep.mubr.bf16.mxu0 %v6278_v3 }
 0x124   : > { %v523_v37 = vpop.trf.xlu1 }
 0x127   : > { %v492_v28 = vpop.trf.xlu0 }
 0x128   : > { %v532_v29 = vpack.c.bf16 %v492_v28, %v491_v25  ;;  %v524_v40 = vpop.trf.xlu1 }
 0x129   : > { %v540_v41 = vpack.c.bf16 %v524_v40, %v523_v37 }
 0x12a   : > { %821 = vmatmul.mubr.bf16.gmra.mxu0 %v532_v29  ;;  %5346 = vmatmul.mubr.bf16.gmra.mxu1 %v532_v29 }
 0x12b   : > { %5349 = vmatprep.mubr.bf16.mxu1 %v533_v27  ;;  %830 = vmatprep.mubr.bf16.mxu0 %v6278_v3 }
 0x132   : > { %831 = vmatmul.mubr.bf16.gmra.mxu0 %v533_v27  ;;  %5350 = vmatmul.mubr.bf16.gmra.mxu1 %v534_v31 }
 0x133   : > { %840 = vmatprep.mubr.bf16.mxu0 %v6278_v3  ;;  %5353 = vmatprep.mubr.bf16.mxu1 %v535_v32 }
 0x13a   : > { %841 = vmatmul.mubr.bf16.gmra.mxu0 %v534_v31  ;;  %5354 = vmatmul.mubr.bf16.gmra.mxu1 %v536_v34 }
 0x13b   : > { %850 = vmatprep.mubr.bf16.mxu0 %v6278_v3  ;;  %5357 = vmatprep.mubr.bf16.mxu1 %v537_v35 }
 0x142   : > { %851 = vmatmul.mubr.bf16.gmra.mxu0 %v535_v32  ;;  %5358 = vmatmul.mubr.bf16.gmra.mxu1 %v538_v38 }
 0x143   : > { %860 = vmatprep.mubr.bf16.mxu0 %v6278_v3  ;;  %5361 = vmatprep.mubr.bf16.mxu1 %v539_v39 }
 0x14a   : > { %861 = vmatmul.mubr.bf16.gmra.mxu0 %v536_v34  ;;  %5362 = vmatmul.mubr.bf16.gmra.mxu1 %v540_v41 }
 0x14b   : > { %870 = vmatprep.mubr.bf16.mxu0 %v6278_v3 }
 0x152   : > { %871 = vmatmul.mubr.bf16.gmra.mxu0 %v537_v35 }
 0x153   : > { %880 = vmatprep.mubr.bf16.mxu0 %v6278_v3 }
 0x15a   : > { %881 = vmatmul.mubr.bf16.gmra.mxu0 %v538_v38 }
 0x15b   : > { %890 = vmatprep.mubr.bf16.mxu0 %v6278_v3 }
 0x162   : > { %891 = vmatmul.mubr.bf16.gmra.mxu0 %v539_v39 }
 0x163   : > { %900 = vmatprep.mubr.bf16.mxu0 %v6278_v3 }
 0x16a   : > { %901 = vmatmul.mubr.bf16.gmra.mxu0 %v540_v41 }
 0x1b2   : > { %v752_v47 = vpop.f32.mrf.mxu0 }
 0x1b3   : > { %v753_v52 = vadd.f32 %v752_v47, %v6541_v48 }
 0x1b4   : > { %v754_v49 = vpop.f32.mrf.mxu0 }
 0x1b5   : > { %v755_v55 = vadd.f32 %v754_v49, %v6543_v50 }
 0x1b6   : > { %v756_v51 = vpop.f32.mrf.mxu0 }
 0x1b7   : > { %v757_v3 = vadd.f32 %v756_v51, %v6541_v48 }
 0x1b8   : > { %v758_v54 = vpop.f32.mrf.mxu0 }
 0x1b9   : > { %v4779_v56 = vpack.c.bf16 %v757_v3, %v753_v52  ;;  %v759_v57 = vadd.f32 %v758_v54, %v6543_v50 }
 0x1ba   : > { %v762_v58 = vpop.f32.mrf.mxu0  ;;  %v5335_v59 = vpop.f32.mrf.mxu1 }
 0x1bb   : > { %4780 = vst [vmem:[#allocation2] sm:$0xff] %v4779_v56   ;;  %v4859_v60 = vpack.c.bf16 %v759_v57, %v755_v55  ;;  %v763_v2 = vadd.f32 %v762_v58, %v6541_v48  ;;  %v954_v4 = vadd.f32 %v5335_v59, %v6549_v61 }
 0x1bc   : > { %v764_v62 = vpop.f32.mrf.mxu0  ;;  %v945_v63 = vpop.f32.mrf.mxu1 }
 0x1bd   : > { %4860 = vst [vmem:[#allocation3] sm:$0xff] %v4859_v60   ;;  %v765_v7 = vadd.f32 %v764_v62, %v6543_v50  ;;  %v946_v8 = vadd.f32 %v945_v63, %v6549_v61 }
 0x1be   : > { %v766_v0 = vpop.f32.mrf.mxu0  ;;  %v5336_v1 = vpop.f32.mrf.mxu1 }
 0x1bf   : > { %v767_v5 = vadd.f32 %v766_v0, %v6541_v48  ;;  %v957_v6 = vadd.f32 %v5336_v1, %v6549_v61 }
 0x1c0   : > { %v768_v9 = vpop.f32.mrf.mxu0  ;;  %v948_v10 = vpop.f32.mrf.mxu1 }
 0x1c1   : > { %v4784_v11 = vpack.c.bf16 %v767_v5, %v763_v2  ;;  %v4944_v12 = vpack.c.bf16 %v957_v6, %v954_v4  ;;  %v769_v13 = vadd.f32 %v768_v9, %v6543_v50  ;;  %v949_v14 = vadd.f32 %v948_v10, %v6549_v61 }
 0x1c2   : > { %v772_v15 = vpop.f32.mrf.mxu0  ;;  %v6559_v16 = vld [vmem:[#allocation2] sm:$0xff]  }
 0x1c3   : > { %5016 = vst [vmem:[#allocation2 + $0x8] sm:$0xff] %v4784_v11   ;;  %5046 = vst [vmem:[#allocation4 + $0x8] sm:$0xff] %v4944_v12   ;;  %v4864_v17 = vpack.c.bf16 %v769_v13, %v765_v7  ;;  %v4939_v18 = vpack.c.bf16 %v949_v14, %v946_v8  ;;  %5101 = vmatprep.mubr.bf16.mxu1 %v6559_v16  ;;  %v773_v21 = vadd.f32 %v772_v15, %v6541_v48 }
 0x1c4   : > { %v774_v19 = vpop.f32.mrf.mxu0 }
 0x1c5   : > { %5031 = vst [vmem:[#allocation3 + $0x8] sm:$0xff] %v4864_v17   ;;  %4940 = vst [vmem:[#allocation4] sm:$0xff] %v4939_v18   ;;  %v775_v24 = vadd.f32 %v774_v19, %v6543_v50 }
 0x1c6   : > { %v776_v20 = vpop.f32.mrf.mxu0 }
 0x1c7   : > { %v777_v22 = vadd.f32 %v776_v20, %v6541_v48 }
 0x1c8   : > { %v778_v23 = vpop.f32.mrf.mxu0 }
 0x1c9   : > { %v4789_v25 = vpack.c.bf16 %v777_v22, %v773_v21  ;;  %v779_v26 = vadd.f32 %v778_v23, %v6543_v50 }
 0x1ca   : > { %v782_v27 = vpop.f32.mrf.mxu0  ;;  %v5339_v28 = vpop.f32.mrf.mxu1 }
 0x1cb   : > { %5017 = vst [vmem:[#allocation2 + $0x10] sm:$0xff] %v4789_v25   ;;  %v4869_v29 = vpack.c.bf16 %v779_v26, %v775_v24  ;;  %v783_v34 = vadd.f32 %v782_v27, %v6541_v48  ;;  %v970_v35 = vadd.f32 %v5339_v28, %v6549_v61 }
 0x1cc   : > { %v784_v30 = vpop.f32.mrf.mxu0  ;;  %v961_v31 = vpop.f32.mrf.mxu1 }
 0x1cd   : > { %5032 = vst [vmem:[#allocation3 + $0x10] sm:$0xff] %v4869_v29   ;;  %v785_v38 = vadd.f32 %v784_v30, %v6543_v50  ;;  %v962_v39 = vadd.f32 %v961_v31, %v6549_v61 }
 0x1ce   : > { %v786_v32 = vpop.f32.mrf.mxu0  ;;  %v5340_v33 = vpop.f32.mrf.mxu1 }
 0x1cf   : > { %v787_v36 = vadd.f32 %v786_v32, %v6541_v48  ;;  %v973_v37 = vadd.f32 %v5340_v33, %v6549_v61 }
 0x1d0   : > { %v788_v40 = vpop.f32.mrf.mxu0  ;;  %v964_v41 = vpop.f32.mrf.mxu1 }
 0x1d1   : > { %v4794_v42 = vpack.c.bf16 %v787_v36, %v783_v34  ;;  %v4954_v43 = vpack.c.bf16 %v973_v37, %v970_v35  ;;  %v789_v44 = vadd.f32 %v788_v40, %v6543_v50  ;;  %v965_v45 = vadd.f32 %v964_v41, %v6549_v61 }
 0x1d2   : > { %v792_v46 = vpop.f32.mrf.mxu0 }
 0x1d3   : > { %5018 = vst [vmem:[#allocation2 + $0x18] sm:$0xff] %v4794_v42   ;;  %5048 = vst [vmem:[#allocation4 + $0x18] sm:$0xff] %v4954_v43   ;;  %v4874_v47 = vpack.c.bf16 %v789_v44, %v785_v38  ;;  %v4949_v49 = vpack.c.bf16 %v965_v45, %v962_v39  ;;  %v793_v3 = vadd.f32 %v792_v46, %v6541_v48 }
 0x1d4   : > { %v794_v51 = vpop.f32.mrf.mxu0 }
 0x1d5   : > { %5033 = vst [vmem:[#allocation3 + $0x18] sm:$0xff] %v4874_v47   ;;  %5047 = vst [vmem:[#allocation4 + $0x10] sm:$0xff] %v4949_v49   ;;  %v795_v55 = vadd.f32 %v794_v51, %v6543_v50 }
 0x1d6   : > { %v796_v52 = vpop.f32.mrf.mxu0 }
 0x1d7   : > { %v797_v53 = vadd.f32 %v796_v52, %v6541_v48 }
 0x1d8   : > { %v798_v54 = vpop.f32.mrf.mxu0 }
 0x1d9   : > { %v4799_v56 = vpack.c.bf16 %v797_v53, %v793_v3  ;;  %v799_v57 = vadd.f32 %v798_v54, %v6543_v50 }
 0x1da   : > { %v802_v58 = vpop.f32.mrf.mxu0  ;;  %v5343_v59 = vpop.f32.mrf.mxu1 }
 0x1db   : > { %5019 = vst [vmem:[#allocation2 + $0x20] sm:$0xff] %v4799_v56   ;;  %v4879_v60 = vpack.c.bf16 %v799_v57, %v795_v55  ;;  %v803_v2 = vadd.f32 %v802_v58, %v6541_v48  ;;  %v986_v4 = vadd.f32 %v5343_v59, %v6549_v61 }
 0x1dc   : > { %v804_v62 = vpop.f32.mrf.mxu0  ;;  %v977_v63 = vpop.f32.mrf.mxu1 }
 0x1dd   : > { %5034 = vst [vmem:[#allocation3 + $0x20] sm:$0xff] %v4879_v60   ;;  %v805_v7 = vadd.f32 %v804_v62, %v6543_v50  ;;  %v978_v8 = vadd.f32 %v977_v63, %v6549_v61 }
 0x1de   : > { %v806_v0 = vpop.f32.mrf.mxu0  ;;  %v5344_v1 = vpop.f32.mrf.mxu1 }
 0x1df   : > { %v807_v5 = vadd.f32 %v806_v0, %v6541_v48  ;;  %v989_v6 = vadd.f32 %v5344_v1, %v6549_v61 }
 0x1e0   : > { %v808_v9 = vpop.f32.mrf.mxu0  ;;  %v980_v10 = vpop.f32.mrf.mxu1 }
 0x1e1   : > { %v4804_v11 = vpack.c.bf16 %v807_v5, %v803_v2  ;;  %v4964_v12 = vpack.c.bf16 %v989_v6, %v986_v4  ;;  %v809_v13 = vadd.f32 %v808_v9, %v6543_v50  ;;  %v981_v14 = vadd.f32 %v980_v10, %v6549_v61 }
 0x1e2   : > { %v812_v15 = vpop.f32.mrf.mxu0 }
 0x1e3   : > { %5020 = vst [vmem:[#allocation2 + $0x28] sm:$0xff] %v4804_v11   ;;  %5050 = vst [vmem:[#allocation4 + $0x28] sm:$0xff] %v4964_v12   ;;  %v4884_v17 = vpack.c.bf16 %v809_v13, %v805_v7  ;;  %v4959_v18 = vpack.c.bf16 %v981_v14, %v978_v8  ;;  %v813_v21 = vadd.f32 %v812_v15, %v6541_v48 }
 0x1e4   : > { %v814_v19 = vpop.f32.mrf.mxu0 }
 0x1e5   : > { %5035 = vst [vmem:[#allocation3 + $0x28] sm:$0xff] %v4884_v17   ;;  %5049 = vst [vmem:[#allocation4 + $0x20] sm:$0xff] %v4959_v18   ;;  %v815_v24 = vadd.f32 %v814_v19, %v6543_v50 }
 0x1e6   : > { %v816_v20 = vpop.f32.mrf.mxu0 }
 0x1e7   : > { %v817_v22 = vadd.f32 %v816_v20, %v6541_v48 }
 0x1e8   : > { %v818_v23 = vpop.f32.mrf.mxu0 }
 0x1e9   : > { %v4809_v25 = vpack.c.bf16 %v817_v22, %v813_v21  ;;  %v819_v26 = vadd.f32 %v818_v23, %v6543_v50 }
 0x1ea   : > { %v822_v27 = vpop.f32.mrf.mxu0  ;;  %v5347_v28 = vpop.f32.mrf.mxu1 }
 0x1eb   : > { %5021 = vst [vmem:[#allocation2 + $0x30] sm:$0xff] %v4809_v25   ;;  %v4889_v29 = vpack.c.bf16 %v819_v26, %v815_v24  ;;  %v823_v34 = vadd.f32 %v822_v27, %v6541_v48  ;;  %v1002_v35 = vadd.f32 %v5347_v28, %v6549_v61 }
 0x1ec   : > { %v824_v30 = vpop.f32.mrf.mxu0  ;;  %v993_v31 = vpop.f32.mrf.mxu1 }
 0x1ed   : > { %5036 = vst [vmem:[#allocation3 + $0x30] sm:$0xff] %v4889_v29   ;;  %v825_v38 = vadd.f32 %v824_v30, %v6543_v50  ;;  %v994_v39 = vadd.f32 %v993_v31, %v6549_v61 }
 0x1ee   : > { %v826_v32 = vpop.f32.mrf.mxu0  ;;  %v5348_v33 = vpop.f32.mrf.mxu1 }
 0x1ef   : > { %v827_v36 = vadd.f32 %v826_v32, %v6541_v48  ;;  %v1005_v37 = vadd.f32 %v5348_v33, %v6549_v61 }
 0x1f0   : > { %v828_v40 = vpop.f32.mrf.mxu0  ;;  %v996_v41 = vpop.f32.mrf.mxu1 }
 0x1f1   : > { %v4814_v42 = vpack.c.bf16 %v827_v36, %v823_v34  ;;  %v4974_v43 = vpack.c.bf16 %v1005_v37, %v1002_v35  ;;  %v829_v44 = vadd.f32 %v828_v40, %v6543_v50  ;;  %v997_v45 = vadd.f32 %v996_v41, %v6549_v61 }
 0x1f2   : > { %v832_v46 = vpop.f32.mrf.mxu0  ;;  %v5351_v47 = vpop.f32.mrf.mxu1 }
 0x1f3   : > { %5022 = vst [vmem:[#allocation2 + $0x38] sm:$0xff] %v4814_v42   ;;  %5052 = vst [vmem:[#allocation4 + $0x38] sm:$0xff] %v4974_v43   ;;  %v4894_v49 = vpack.c.bf16 %v829_v44, %v825_v38  ;;  %v4969_v51 = vpack.c.bf16 %v997_v45, %v994_v39  ;;  %v1018_v53 = vadd.f32 %v5351_v47, %v6549_v61 }
 0x1f4   : > { %v834_v52 = vpop.f32.mrf.mxu0  ;;  %v1009_v3 = vpop.f32.mrf.mxu1  ;;  %v833_v56 = vadd.f32 %v832_v46, %v6541_v48 }
 0x1f5   : > { %5037 = vst [vmem:[#allocation3 + $0x38] sm:$0xff] %v4894_v49   ;;  %5051 = vst [vmem:[#allocation4 + $0x30] sm:$0xff] %v4969_v51   ;;  %v835_v59 = vadd.f32 %v834_v52, %v6543_v50  ;;  %v1010_v60 = vadd.f32 %v1009_v3, %v6549_v61 }
 0x1f6   : > { %v836_v54 = vpop.f32.mrf.mxu0  ;;  %v5352_v55 = vpop.f32.mrf.mxu1 }
 0x1f7   : > { %v837_v57 = vadd.f32 %v836_v54, %v6541_v48  ;;  %v1021_v58 = vadd.f32 %v5352_v55, %v6549_v61 }
 0x1f8   : > { %v838_v62 = vpop.f32.mrf.mxu0  ;;  %v1012_v63 = vpop.f32.mrf.mxu1 }
 0x1f9   : > { %v4819_v0 = vpack.c.bf16 %v837_v57, %v833_v56  ;;  %v4984_v1 = vpack.c.bf16 %v1021_v58, %v1018_v53  ;;  %v839_v2 = vadd.f32 %v838_v62, %v6543_v50  ;;  %v1013_v4 = vadd.f32 %v1012_v63, %v6549_v61 }
 0x1fa   : > { %v842_v5 = vpop.f32.mrf.mxu0  ;;  %v5355_v6 = vpop.f32.mrf.mxu1 }
 0x1fb   : > { %5023 = vst [vmem:[#allocation2 + $0x40] sm:$0xff] %v4819_v0   ;;  %5054 = vst [vmem:[#allocation4 + $0x48] sm:$0xff] %v4984_v1   ;;  %v4899_v7 = vpack.c.bf16 %v839_v2, %v835_v59  ;;  %v4979_v8 = vpack.c.bf16 %v1013_v4, %v1010_v60  ;;  %v1034_v11 = vadd.f32 %v5355_v6, %v6549_v61 }
 0x1fc   : > { %v844_v9 = vpop.f32.mrf.mxu0  ;;  %v1025_v10 = vpop.f32.mrf.mxu1  ;;  %v843_v14 = vadd.f32 %v842_v5, %v6541_v48 }
 0x1fd   : > { %5038 = vst [vmem:[#allocation3 + $0x40] sm:$0xff] %v4899_v7   ;;  %5053 = vst [vmem:[#allocation4 + $0x40] sm:$0xff] %v4979_v8   ;;  %v1026_v15 = vadd.f32 %v1025_v10, %v6549_v61  ;;  %v845_v19 = vadd.f32 %v844_v9, %v6543_v50 }
 0x1fe   : > { %v846_v12 = vpop.f32.mrf.mxu0  ;;  %v5356_v13 = vpop.f32.mrf.mxu1 }
 0x1ff   : > { %v847_v17 = vadd.f32 %v846_v12, %v6541_v48  ;;  %v1037_v18 = vadd.f32 %v5356_v13, %v6549_v61 }
 0x200   : > { %v848_v20 = vpop.f32.mrf.mxu0  ;;  %v1028_v21 = vpop.f32.mrf.mxu1 }
 0x201   : > { %v4824_v22 = vpack.c.bf16 %v847_v17, %v843_v14  ;;  %v4994_v23 = vpack.c.bf16 %v1037_v18, %v1034_v11  ;;  %v849_v24 = vadd.f32 %v848_v20, %v6543_v50  ;;  %v1029_v25 = vadd.f32 %v1028_v21, %v6549_v61 }
 0x202   : > { %v852_v26 = vpop.f32.mrf.mxu0  ;;  %v5359_v27 = vpop.f32.mrf.mxu1 }
 0x203   : > { %5024 = vst [vmem:[#allocation2 + $0x48] sm:$0xff] %v4824_v22   ;;  %5056 = vst [vmem:[#allocation4 + $0x58] sm:$0xff] %v4994_v23   ;;  %v4904_v28 = vpack.c.bf16 %v849_v24, %v845_v19  ;;  %v4989_v29 = vpack.c.bf16 %v1029_v25, %v1026_v15  ;;  %v1050_v32 = vadd.f32 %v5359_v27, %v6549_v61  ;;  %v5655_v19 = vld [vmem:[#allocation4 + $0x38] sm:$0xff]  }
 0x204   : > { %v854_v30 = vpop.f32.mrf.mxu0  ;;  %v1041_v31 = vpop.f32.mrf.mxu1  ;;  %v853_v35 = vadd.f32 %v852_v26, %v6541_v48  ;;  %v5657_v26 = vld [vmem:[#allocation4 + $0x30] sm:$0xff]  }
 0x205   : > { %5039 = vst [vmem:[#allocation3 + $0x48] sm:$0xff] %v4904_v28   ;;  %5055 = vst [vmem:[#allocation4 + $0x50] sm:$0xff] %v4989_v29   ;;  %v1042_v36 = vadd.f32 %v1041_v31, %v6549_v61  ;;  %v855_v39 = vadd.f32 %v854_v30, %v6543_v50 }
 0x206   : > { %v856_v33 = vpop.f32.mrf.mxu0  ;;  %v5360_v34 = vpop.f32.mrf.mxu1 }
 0x207   : > { %v857_v37 = vadd.f32 %v856_v33, %v6541_v48  ;;  %v1053_v38 = vadd.f32 %v5360_v34, %v6549_v61  ;;  %v5659_v33 = vld [vmem:[#allocation4 + $0x28] sm:$0xff]  }
 0x208   : > { %v858_v40 = vpop.f32.mrf.mxu0  ;;  %v1044_v41 = vpop.f32.mrf.mxu1 }
 0x209   : > { %v4829_v42 = vpack.c.bf16 %v857_v37, %v853_v35  ;;  %v5004_v43 = vpack.c.bf16 %v1053_v38, %v1050_v32  ;;  %v859_v44 = vadd.f32 %v858_v40, %v6543_v50  ;;  %v1045_v45 = vadd.f32 %v1044_v41, %v6549_v61 }
 0x20a   : > { %v862_v46 = vpop.f32.mrf.mxu0  ;;  %v5363_v47 = vpop.f32.mrf.mxu1  ;;  %v5662_v41 = vld [vmem:[#allocation4 + $0x58] sm:$0xff]  }
 0x20b   : > { %5025 = vst [vmem:[#allocation2 + $0x50] sm:$0xff] %v4829_v42   ;;  %5058 = vst [vmem:[#allocation4 + $0x68] sm:$0xff] %v5004_v43   ;;  %v4909_v49 = vpack.c.bf16 %v859_v44, %v855_v39  ;;  %v4999_v51 = vpack.c.bf16 %v1045_v45, %v1042_v36  ;;  %v1066_v53 = vadd.f32 %v5363_v47, %v6549_v61  ;;  %v5661_v39 = vld [vmem:[#allocation4 + $0x20] sm:$0xff]   ;;  %v5663_v47 = vld [vmem:[#allocation4 + $0x18] sm:$0xff]  }
 0x20c   : > { %v864_v52 = vpop.f32.mrf.mxu0  ;;  %v1057_v3 = vpop.f32.mrf.mxu1  ;;  %v863_v56 = vadd.f32 %v862_v46, %v6541_v48 }
 0x20d   : > { %5040 = vst [vmem:[#allocation3 + $0x50] sm:$0xff] %v4909_v49   ;;  %5057 = vst [vmem:[#allocation4 + $0x60] sm:$0xff] %v4999_v51   ;;  %v1058_v57 = vadd.f32 %v1057_v3, %v6549_v61  ;;  %v865_v60 = vadd.f32 %v864_v52, %v6543_v50  ;;  %v5664_v51 = vld [vmem:[#allocation4 + $0x50] sm:$0xff]  }
 0x20e   : > { %v866_v54 = vpop.f32.mrf.mxu0  ;;  %v5364_v55 = vpop.f32.mrf.mxu1 }
 0x20f   : > { %v867_v58 = vadd.f32 %v866_v54, %v6541_v48  ;;  %v1069_v59 = vadd.f32 %v5364_v55, %v6549_v61  ;;  %v5665_v54 = vld [vmem:[#allocation4 + $0x10] sm:$0xff]  }
 0x210   : > { %v868_v62 = vpop.f32.mrf.mxu0  ;;  %v1060_v63 = vpop.f32.mrf.mxu1 }
 0x211   : > { %v4834_v0 = vpack.c.bf16 %v867_v58, %v863_v56  ;;  %v5014_v1 = vpack.c.bf16 %v1069_v59, %v1066_v53  ;;  %v869_v2 = vadd.f32 %v868_v62, %v6543_v50  ;;  %v1061_v4 = vadd.f32 %v1060_v63, %v6549_v61  ;;  %v5666_v56 = vld [vmem:[#allocation4 + $0x48] sm:$0xff]   ;;  %v5668_v63 = vld [vmem:[#allocation4 + $0x40] sm:$0xff]  }
 0x212   : > { %v872_v5 = vpop.f32.mrf.mxu0  ;;  %v5658_v23 = vld [vmem:[#allocation4 + $0x68] sm:$0xff]  }
 0x213   : > { %5026 = vst [vmem:[#allocation2 + $0x58] sm:$0xff] %v4834_v0   ;;  %5060 = vst [vmem:[#allocation4 + $0x78] sm:$0xff] %v5014_v1   ;;  %v4914_v6 = vpack.c.bf16 %v869_v2, %v865_v60  ;;  %v5009_v7 = vpack.c.bf16 %v1061_v4, %v1058_v57  ;;  %v873_v10 = vadd.f32 %v872_v5, %v6541_v48  ;;  %v5667_v62 = vld [vmem:[#allocation4 + $0x8] sm:$0xff]   ;;  %v5669_v0 = vld [vmem:[#allocation4] sm:$0xff]  }
 0x214   : > { %v874_v8 = vpop.f32.mrf.mxu0  ;;  %v5660_v35 = vld [vmem:[#allocation4 + $0x60] sm:$0xff]   ;;  %v5671_v1 = vld [vmem:[#allocation3 + $0x38] sm:$0xff]   ;;  %v5673_v4 = vld [vmem:[#allocation3 + $0x30] sm:$0xff]  }
 0x215   : > { %5041 = vst [vmem:[#allocation3 + $0x58] sm:$0xff] %v4914_v6   ;;  %5059 = vst [vmem:[#allocation4 + $0x70] sm:$0xff] %v5009_v7   ;;  %v875_v13 = vadd.f32 %v874_v8, %v6543_v50  ;;  %v5677_v7 = vld [vmem:[#allocation3 + $0x20] sm:$0xff]  }
 0x216   : > { %v876_v9 = vpop.f32.mrf.mxu0 }
 0x217   : > { %v877_v11 = vadd.f32 %v876_v9, %v6541_v48  ;;  %v5679_v9 = vld [vmem:[#allocation3 + $0x18] sm:$0xff]  }
 0x218   : > { %v878_v12 = vpop.f32.mrf.mxu0 }
 0x219   : > { %v4839_v14 = vpack.c.bf16 %v877_v11, %v873_v10  ;;  %v879_v15 = vadd.f32 %v878_v12, %v6543_v50  ;;  %v5680_v10 = vld [vmem:[#allocation3 + $0x50] sm:$0xff]   ;;  %v5682_v12 = vld [vmem:[#allocation3 + $0x48] sm:$0xff]  }
 0x21a   : > { %v882_v61 = vpop.f32.mrf.mxu0  ;;  %v5654_v17 = vld [vmem:[#allocation4 + $0x78] sm:$0xff]   ;;  %v5681_v11 = vld [vmem:[#allocation3 + $0x10] sm:$0xff]  }
 0x21b   : > { %5027 = vst [vmem:[#allocation2 + $0x60] sm:$0xff] %v4839_v14   ;;  %v4919_v18 = vpack.c.bf16 %v879_v15, %v875_v13  ;;  %5133 = vmatprep.subr.bf16.mxu0 %v5654_v17  ;;  %v883_v24 = vadd.f32 %v882_v61, %v6541_v48  ;;  %v5683_v13 = vld [vmem:[#allocation3 + $0x8] sm:$0xff]   ;;  %v5684_v14 = vld [vmem:[#allocation3 + $0x40] sm:$0xff]   ;;  %v5687_v17 = vld [vmem:[#allocation2 + $0x10] sm:$0xff]  }
 0x21c   : > { %v884_v20 = vpop.f32.mrf.mxu0  ;;  %v5656_v21 = vld [vmem:[#allocation4 + $0x70] sm:$0xff]   ;;  %5134 = vmatpush3.bf16.msra.mxu0 %v5655_v19  ;;  %v5678_v8 = vld [vmem:[#allocation3 + $0x58] sm:$0xff]   ;;  %v5685_v15 = vld [vmem:[#allocation3] sm:$0xff]  }
 0x21d   : > { %5042 = vst [vmem:[#allocation3 + $0x60] sm:$0xff] %v4919_v18   ;;  %5135 = vmatprep.subr.bf16.mxu0 %v5656_v21  ;;  %v885_v28 = vadd.f32 %v884_v20, %v6543_v50  ;;  %v5686_v61 = vld [vmem:[#allocation2 + $0x8] sm:$0xff]   ;;  %v5688_v18 = vld [vmem:[#allocation2 + $0x18] sm:$0xff]   ;;  %v5689_v19 = vld [vmem:[#allocation2 + $0x20] sm:$0xff]  }
 0x21e   : > { %v886_v22 = vpop.f32.mrf.mxu0  ;;  %v5690_v20 = vld [vmem:[#allocation2 + $0x28] sm:$0xff]   ;;  %v5691_v21 = vld [vmem:[#allocation2 + $0x30] sm:$0xff]  }
 0x21f   : > { %v887_v25 = vadd.f32 %v886_v22, %v6541_v48  ;;  %v5692_v22 = vld [vmem:[#allocation2 + $0x38] sm:$0xff]  }
 0x220   : > { %v888_v27 = vpop.f32.mrf.mxu0  ;;  %5136 = vmatpush3.bf16.msra.mxu0 %v5657_v26 }
 0x221   : > { %v4844_v29 = vpack.c.bf16 %v887_v25, %v883_v24  ;;  %v889_v30 = vadd.f32 %v888_v27, %v6543_v50  ;;  %5137 = vmatprep.subr.bf16.mxu0 %v5658_v23  ;;  %v5694_v23 = vld [vmem:[#allocation2 + $0x48] sm:$0xff]   ;;  %v5695_v24 = vld [vmem:[#allocation2 + $0x50] sm:$0xff]   ;;  %v5696_v25 = vld [vmem:[#allocation2 + $0x58] sm:$0xff]  }
 0x222   : > { %v892_v31 = vpop.f32.mrf.mxu0  ;;  %v5697_v26 = vld [vmem:[#allocation2 + $0x60] sm:$0xff]  }
 0x223   : > { %5028 = vst [vmem:[#allocation2 + $0x68] sm:$0xff] %v4844_v29   ;;  %v4924_v32 = vpack.c.bf16 %v889_v30, %v885_v28  ;;  %v893_v37 = vadd.f32 %v892_v31, %v6541_v48 }
 0x224   : > { %v894_v34 = vpop.f32.mrf.mxu0  ;;  %5138 = vmatpush3.bf16.msra.mxu0 %v5659_v33  ;;  %v5676_v6 = vld [vmem:[#allocation3 + $0x60] sm:$0xff]  }
 0x225   : > { %5043 = vst [vmem:[#allocation3 + $0x68] sm:$0xff] %v4924_v32   ;;  %5139 = vmatprep.subr.bf16.mxu0 %v5660_v35  ;;  %v895_v42 = vadd.f32 %v894_v34, %v6543_v50 }
 0x226   : > { %v896_v36 = vpop.f32.mrf.mxu0 }
 0x227   : > { %v897_v38 = vadd.f32 %v896_v36, %v6541_v48 }
 0x228   : > { %v898_v40 = vpop.f32.mrf.mxu0  ;;  %5140 = vmatpush3.bf16.msra.mxu0 %v5661_v39 }
 0x229   : > { %v4849_v43 = vpack.c.bf16 %v897_v38, %v893_v37  ;;  %v899_v44 = vadd.f32 %v898_v40, %v6543_v50  ;;  %5141 = vmatprep.subr.bf16.mxu0 %v5662_v41 }
 0x22a   : > { %v902_v45 = vpop.f32.mrf.mxu0  ;;  %v5698_v27 = vld [vmem:[#allocation2 + $0x68] sm:$0xff]  }
 0x22b   : > { %5029 = vst [vmem:[#allocation2 + $0x70] sm:$0xff] %v4849_v43   ;;  %v4929_v46 = vpack.c.bf16 %v899_v44, %v895_v42  ;;  %v903_v3 = vadd.f32 %v902_v45, %v6541_v48 }
 0x22c   : > { %v904_v49 = vpop.f32.mrf.mxu0  ;;  %5142 = vmatpush3.bf16.msra.mxu0 %v5663_v47  ;;  %v5674_v5 = vld [vmem:[#allocation3 + $0x68] sm:$0xff]  }
 0x22d   : > { %5044 = vst [vmem:[#allocation3 + $0x70] sm:$0xff] %v4929_v46   ;;  %5143 = vmatprep.subr.bf16.mxu0 %v5664_v51  ;;  %v905_v57 = vadd.f32 %v904_v49, %v6543_v50 }
 0x22e   : > { %v906_v52 = vpop.f32.mrf.mxu0 }
 0x22f   : > { %v907_v53 = vadd.f32 %v906_v52, %v6541_v48 }
 0x230   : > { %v908_v55 = vpop.f32.mrf.mxu0  ;;  %5144 = vmatpush3.bf16.msra.mxu0 %v5665_v54 }
 0x231   : > { %v4854_v58 = vpack.c.bf16 %v907_v53, %v903_v3  ;;  %v909_v59 = vadd.f32 %v908_v55, %v6543_v50  ;;  %5145 = vmatprep.subr.bf16.mxu0 %v5666_v56  ;;  %v5675_v50 = vld [vmem:[#allocation3 + $0x28] sm:$0xff]  }
 0x232   : > { %v5699_v28 = vld [vmem:[#allocation2 + $0x70] sm:$0xff]  }
 0x233   : > { %5030 = vst [vmem:[#allocation2 + $0x78] sm:$0xff] %v4854_v58   ;;  %v4934_v60 = vpack.c.bf16 %v909_v59, %v905_v57 }
 0x234   : > { %5146 = vmatpush3.bf16.msra.mxu0 %v5667_v62  ;;  %v5672_v2 = vld [vmem:[#allocation3 + $0x70] sm:$0xff]  }
 0x235   : > { %5045 = vst [vmem:[#allocation3 + $0x78] sm:$0xff] %v4934_v60   ;;  %5147 = vmatprep.subr.bf16.mxu0 %v5668_v63 }
 0x238   : > { %5148 = vmatpush3.bf16.msra.mxu0 %v5669_v0 }
 0x23a   : > { %v5700_v29 = vld [vmem:[#allocation2 + $0x78] sm:$0xff]  }
 0x23c   : > { %v5670_v48 = vld [vmem:[#allocation3 + $0x78] sm:$0xff]  }
 0x23d   : > { %5085 = vmatprep.subr.bf16.mxu1 %v5670_v48 }
 0x23e   : > { %5086 = vmatpush3.bf16.xpose.msra.mxu1 %v5671_v1 }
 0x23f   : > { %5087 = vmatprep.subr.bf16.mxu1 %v5672_v2 }
 0x246   : > { %5088 = vmatpush3.bf16.xpose.msra.mxu1 %v5673_v4 }
 0x247   : > { %5089 = vmatprep.subr.bf16.mxu1 %v5674_v5 }
 0x24e   : > { %5090 = vmatpush3.bf16.xpose.msra.mxu1 %v5675_v50 }
 0x24f   : > { %5091 = vmatprep.subr.bf16.mxu1 %v5676_v6 }
 0x256   : > { %5092 = vmatpush3.bf16.xpose.msra.mxu1 %v5677_v7 }
 0x257   : > { %5093 = vmatprep.subr.bf16.mxu1 %v5678_v8 }
 0x25e   : > { %5094 = vmatpush3.bf16.xpose.msra.mxu1 %v5679_v9 }
 0x25f   : > { %5095 = vmatprep.subr.bf16.mxu1 %v5680_v10 }
 0x266   : > { %5096 = vmatpush3.bf16.xpose.msra.mxu1 %v5681_v11 }
 0x267   : > { %5097 = vmatprep.subr.bf16.mxu1 %v5682_v12 }
 0x26e   : > { %5098 = vmatpush3.bf16.xpose.msra.mxu1 %v5683_v13 }
 0x26f   : > { %5099 = vmatprep.subr.bf16.mxu1 %v5684_v14 }
 0x276   : > { %5100 = vmatpush3.bf16.xpose.msra.mxu1 %v5685_v15 }
 0x27d   : > { %5102 = vmatmul.mubr.bf16.vlgmr.msra.gmra.mxu1 %v6559_v16  ;;  %v5693_v16 = vld [vmem:[#allocation2 + $0x40] sm:$0xff]  }
 0x27e   : > { %5103 = vmatprep.mubr.bf16.mxu1 %v5686_v61 }
 0x285   : > { %5104 = vmatmul.mubr.bf16.gmra.mxu1 %v5686_v61 }
 0x286   : > { %5105 = vmatprep.mubr.bf16.mxu1 %v5687_v17 }
 0x28d   : > { %5106 = vmatmul.mubr.bf16.gmra.mxu1 %v5687_v17 }
 0x28e   : > { %5107 = vmatprep.mubr.bf16.mxu1 %v5688_v18 }
 0x295   : > { %5108 = vmatmul.mubr.bf16.gmra.mxu1 %v5688_v18 }
 0x296   : > { %5109 = vmatprep.mubr.bf16.mxu1 %v5689_v19 }
 0x29d   : > { %5110 = vmatmul.mubr.bf16.gmra.mxu1 %v5689_v19 }
 0x29e   : > { %5111 = vmatprep.mubr.bf16.mxu1 %v5690_v20 }
 0x2a5   : > { %5112 = vmatmul.mubr.bf16.gmra.mxu1 %v5690_v20 }
 0x2a6   : > { %5113 = vmatprep.mubr.bf16.mxu1 %v5691_v21 }
 0x2ad   : > { %5114 = vmatmul.mubr.bf16.gmra.mxu1 %v5691_v21 }
 0x2ae   : > { %5115 = vmatprep.mubr.bf16.mxu1 %v5692_v22 }
 0x2b5   : > { %5116 = vmatmul.mubr.bf16.gmra.mxu1 %v5692_v22 }
 0x2b6   : > { %5117 = vmatprep.mubr.bf16.mxu1 %v5693_v16 }
 0x2bd   : > { %5118 = vmatmul.mubr.bf16.gmra.mxu1 %v5693_v16 }
 0x2be   : > { %5119 = vmatprep.mubr.bf16.mxu1 %v5694_v23 }
 0x2c5   : > { %5120 = vmatmul.mubr.bf16.gmra.mxu1 %v5694_v23 }
 0x2c6   : > { %5121 = vmatprep.mubr.bf16.mxu1 %v5695_v24 }
 0x2cd   : > { %5122 = vmatmul.mubr.bf16.gmra.mxu1 %v5695_v24 }
 0x2ce   : > { %5123 = vmatprep.mubr.bf16.mxu1 %v5696_v25 }
 0x2d5   : > { %5124 = vmatmul.mubr.bf16.gmra.mxu1 %v5696_v25 }
 0x2d6   : > { %5125 = vmatprep.mubr.bf16.mxu1 %v5697_v26 }
 0x2dd   : > { %5126 = vmatmul.mubr.bf16.gmra.mxu1 %v5697_v26 }
 0x2de   : > { %5127 = vmatprep.mubr.bf16.mxu1 %v5698_v27 }
 0x2e5   : > { %5128 = vmatmul.mubr.bf16.gmra.mxu1 %v5698_v27 }
 0x2e6   : > { %5129 = vmatprep.mubr.bf16.mxu1 %v5699_v28 }
 0x2ed   : > { %5130 = vmatmul.mubr.bf16.gmra.mxu1 %v5699_v28 }
 0x2ee   : > { %5131 = vmatprep.mubr.bf16.mxu1 %v5700_v29 }
 0x2f5   : > { %5132 = vmatmul.mubr.bf16.gmra.mxu1 %v5700_v29 }
 0x33d   : > { %v6647_v30 = vpop.f32.mrf.mxu1 }
 0x33f   : > { %v6649_v31 = vpop.f32.mrf.mxu1 }
 0x340   : > { %v2038_v32 = vmax.f32 %v6647_v30, %v6649_v31 }
 0x341   : > { %v6653_v33 = vpop.f32.mrf.mxu1 }
 0x342   : > { %2039 = vmax.xlane.f32.xlu0 %v2038_v32 }
 0x343   : > { %v6655_v34 = vpop.f32.mrf.mxu1 }
 0x344   : > { %v2041_v35 = vmax.f32 %v6653_v33, %v6655_v34 }
 0x345   : > { %v6659_v36 = vpop.f32.mrf.mxu1 }
 0x346   : > { %2042 = vmax.xlane.f32.xlu1 %v2041_v35 }
 0x347   : > { %v6661_v37 = vpop.f32.mrf.mxu1 }
 0x348   : > { %v2044_v38 = vmax.f32 %v6659_v36, %v6661_v37 }
 0x349   : > { %v6665_v39 = vpop.f32.mrf.mxu1 }
 0x34a   : > { %2045 = vmax.xlane.f32.xlu1 %v2044_v38 }
 0x34b   : > { %v6667_v40 = vpop.f32.mrf.mxu1 }
 0x34c   : > { %v2047_v41 = vmax.f32 %v6665_v39, %v6667_v40 }
 0x34d   : > { %v6671_v42 = vpop.f32.mrf.mxu1 }
 0x34e   : > { %2048 = vmax.xlane.f32.xlu1 %v2047_v41 }
 0x34f   : > { %v6673_v43 = vpop.f32.mrf.mxu1 }
 0x350   : > { %v2050_v44 = vmax.f32 %v6671_v42, %v6673_v43 }
 0x351   : > { %v6677_v45 = vpop.f32.mrf.mxu1 }
 0x352   : > { %2051 = vmax.xlane.f32.xlu0 %v2050_v44 }
 0x353   : > { %v6679_v46 = vpop.f32.mrf.mxu1 }
 0x354   : > { %v2053_v47 = vmax.f32 %v6677_v45, %v6679_v46 }
 0x355   : > { %v6683_v49 = vpop.f32.mrf.mxu1 }
 0x356   : > { %2054 = vmax.xlane.f32.xlu1 %v2053_v47 }
 0x357   : > { %v6685_v51 = vpop.f32.mrf.mxu1 }
 0x358   : > { %v2056_v52 = vmax.f32 %v6683_v49, %v6685_v51 }
 0x359   : > { %v6689_v3 = vpop.f32.mrf.mxu1 }
 0x35a   : > { %2057 = vmax.xlane.f32.xlu0 %v2056_v52 }
 0x35b   : > { %v6691_v53 = vpop.f32.mrf.mxu1 }
 0x35c   : > { %v2059_v54 = vmax.f32 %v6689_v3, %v6691_v53 }
 0x35d   : > { %v6695_v55 = vpop.f32.mrf.mxu1 }
 0x35e   : > { %2060 = vmax.xlane.f32.xlu1 %v2059_v54 }
 0x35f   : > { %v6697_v56 = vpop.f32.mrf.mxu1 }
 0x360   : > { %v2062_v57 = vmax.f32 %v6695_v55, %v6697_v56 }
 0x361   : > { %v6701_v58 = vpop.f32.mrf.mxu1 }
 0x362   : > { %2063 = vmax.xlane.f32.xlu0 %v2062_v57 }
 0x363   : > { %v6703_v59 = vpop.f32.mrf.mxu1 }
 0x364   : > { %v2065_v60 = vmax.f32 %v6701_v58, %v6703_v59 }
 0x365   : > { %v6707_v62 = vpop.f32.mrf.mxu1 }
 0x366   : > { %2066 = vmax.xlane.f32.xlu1 %v2065_v60 }
 0x367   : > { %v6709_v63 = vpop.f32.mrf.mxu1 }
 0x368   : > { %v2068_v0 = vmax.f32 %v6707_v62, %v6709_v63 }
 0x369   : > { %v6713_v48 = vpop.f32.mrf.mxu1 }
 0x36a   : > { %2069 = vmax.xlane.f32.xlu0 %v2068_v0 }
 0x36b   : > { %v6715_v1 = vpop.f32.mrf.mxu1 }
 0x36c   : > { %v2071_v2 = vmax.f32 %v6713_v48, %v6715_v1 }
 0x36d   : > { %v6719_v4 = vpop.f32.mrf.mxu1 }
 0x36e   : > { %2072 = vmax.xlane.f32.xlu1 %v2071_v2 }
 0x36f   : > { %v6721_v5 = vpop.f32.mrf.mxu1 }
 0x370   : > { %v2074_v50 = vmax.f32 %v6719_v4, %v6721_v5 }
 0x371   : > { %v6725_v6 = vpop.f32.mrf.mxu1 }
 0x372   : > { %2075 = vmax.xlane.f32.xlu0 %v2074_v50 }
 0x373   : > { %v6727_v7 = vpop.f32.mrf.mxu1 }
 0x374   : > { %v2077_v8 = vmax.f32 %v6725_v6, %v6727_v7 }
 0x375   : > { %v6731_v9 = vpop.f32.mrf.mxu1 }
 0x376   : > { %2078 = vmax.xlane.f32.xlu1 %v2077_v8 }
 0x377   : > { %v6733_v10 = vpop.f32.mrf.mxu1 }
 0x378   : > { %v2080_v11 = vmax.f32 %v6731_v9, %v6733_v10 }
 0x379   : > { %v6737_v12 = vpop.f32.mrf.mxu1 }
 0x37a   : > { %2081 = vmax.xlane.f32.xlu0 %v2080_v11 }
 0x37b   : > { %v6739_v13 = vpop.f32.mrf.mxu1 }
 0x37c   : > { %v2083_v14 = vmax.f32 %v6737_v12, %v6739_v13 }
 0x37d   : > { %v6743_v15 = vpop.f32.mrf.mxu1 }
 0x37e   : > { %2084 = vmax.xlane.f32.xlu1 %v2083_v14 }
 0x37f   : > { %v6745_v61 = vpop.f32.mrf.mxu1 }
 0x380   : > { %v2086_v17 = vmax.f32 %v6743_v15, %v6745_v61 }
 0x381   : > { %v6749_v18 = vpop.f32.mrf.mxu1 }
 0x382   : > { %2087 = vmax.xlane.f32.xlu0 %v2086_v17 }
 0x383   : > { %v6751_v19 = vpop.f32.mrf.mxu1 }
 0x384   : > { %v2089_v20 = vmax.f32 %v6749_v18, %v6751_v19 }
 0x385   : > { %v6755_v21 = vpop.f32.mrf.mxu1 }
 0x386   : > { %2090 = vmax.xlane.f32.xlu1 %v2089_v20 }
 0x387   : > { %v6757_v22 = vpop.f32.mrf.mxu1 }
 0x388   : > { %v2092_v16 = vmax.f32 %v6755_v21, %v6757_v22 }
 0x389   : > { %v6761_v23 = vpop.f32.mrf.mxu1 }
 0x38a   : > { %2093 = vmax.xlane.f32.xlu0 %v2092_v16 }
 0x38b   : > { %v6763_v24 = vpop.f32.mrf.mxu1 }
 0x38c   : > { %v2095_v25 = vmax.f32 %v6761_v23, %v6763_v24 }
 0x38d   : > { %v6767_v26 = vpop.f32.mrf.mxu1 }
 0x38e   : > { %2096 = vmax.xlane.f32.xlu1 %v2095_v25 }
 0x38f   : > { %v6769_v27 = vpop.f32.mrf.mxu1 }
 0x390   : > { %v2098_v28 = vmax.f32 %v6767_v26, %v6769_v27 }
 0x391   : > { %v6773_v29 = vpop.f32.mrf.mxu1 }
 0x392   : > { %2099 = vmax.xlane.f32.xlu0 %v2098_v28 }
 0x393   : > { %v6775_v32 = vpop.f32.mrf.mxu1 }
 0x394   : > { %v2101_v35 = vmax.f32 %v6773_v29, %v6775_v32 }
 0x395   : > { %v6779_v38 = vpop.f32.mrf.mxu1 }
 0x396   : > { %2102 = vmax.xlane.f32.xlu1 %v2101_v35 }
 0x397   : > { %v6781_v41 = vpop.f32.mrf.mxu1 }
 0x398   : > { %v2104_v44 = vmax.f32 %v6779_v38, %v6781_v41 }
 0x399   : > { %v6785_v47 = vpop.f32.mrf.mxu1 }
 0x39a   : > { %2105 = vmax.xlane.f32.xlu0 %v2104_v44 }
 0x39b   : > { %v6787_v52 = vpop.f32.mrf.mxu1 }
 0x39c   : > { %7932 = vst [vmem:[#allocation21_spill] sm:$0xff] %v6787_v52  ;;  %v2107_v54 = vmax.f32 %v6785_v47, %v6787_v52 }
 0x39d   : > { %v6791_v57 = vpop.f32.mrf.mxu1 }
 0x39e   : > { %2108 = vmax.xlane.f32.xlu1 %v2107_v54 }
 0x39f   : > { %v6793_v60 = vpop.f32.mrf.mxu1 }
 0x3a1   : > { %v6795_v0 = vpop.f32.mrf.mxu1 }
 0x3a3   : > { %v6797_v50 = vpop.f32.mrf.mxu1 }
 0x3a5   : > { %v6801_v16 = vpop.f32.mrf.mxu1 }
 0x3a7   : > { %v6805_v52 = vpop.f32.mrf.mxu1 }
 0x3cb   : > { %v2040_v2 = vpop.xlane.xlu0 %2039 }
 0x3cc   : > { %v2134_v8 = vsub.f32 %v6647_v30, %v2040_v2  ;;  %v2135_v11 = vsub.f32 %v6649_v31, %v2040_v2 }
 0x3ce   : > { %v2198_v14 = vmul.f32 1.442695, %v2134_v8  ;;  %v2200_v17 = vmul.f32 1.442695, %v2135_v11 }
 0x3cf   : > { %v2043_v20 = vpop.xlane.xlu1 %2042 }
 0x3d0   : > { %5725 = vpow2.f32 %v2198_v14  ;;  %v2136_v25 = vsub.f32 %v6653_v33, %v2043_v20  ;;  %v2137_v28 = vsub.f32 %v6655_v34, %v2043_v20  ;;  %v6809_v14 = vpop.f32.mrf.mxu1 }
 0x3d1   : > { %5727 = vpow2.f32 %v2200_v17 }
 0x3d2   : > { %v2202_v35 = vmul.f32 1.442695, %v2136_v25  ;;  %v2204_v44 = vmul.f32 1.442695, %v2137_v28  ;;  %v6813_v28 = vpop.f32.mrf.mxu1 }
 0x3d3   : > { %v2046_v54 = vpop.xlane.xlu1 %2045 }
 0x3d4   : > { %5729 = vpow2.f32 %v2202_v35  ;;  %v2138_v30 = vsub.f32 %v6659_v36, %v2046_v54  ;;  %v2139_v31 = vsub.f32 %v6661_v37, %v2046_v54 }
 0x3d5   : > { %5731 = vpow2.f32 %v2204_v44 }
 0x3d6   : > { %v2206_v2 = vmul.f32 1.442695, %v2138_v30  ;;  %v2208_v8 = vmul.f32 1.442695, %v2139_v31  ;;  %v6823_v31 = vpop.f32.mrf.mxu1 }
 0x3d7   : > { %v2049_v11 = vpop.xlane.xlu1 %2048 }
 0x3d8   : > { %5733 = vpow2.f32 %v2206_v2  ;;  %v2140_v33 = vsub.f32 %v6665_v39, %v2049_v11  ;;  %v2141_v34 = vsub.f32 %v6667_v40, %v2049_v11 }
 0x3d9   : > { %5735 = vpow2.f32 %v2208_v8 }
 0x3da   : > { %v2210_v17 = vmul.f32 1.442695, %v2140_v33  ;;  %v2212_v20 = vmul.f32 1.442695, %v2141_v34 }
 0x3db   : > { %v2052_v25 = vpop.xlane.xlu0 %2051 }
 0x3dc   : > { %5737 = vpow2.f32 %v2210_v17  ;;  %v2142_v36 = vsub.f32 %v6671_v42, %v2052_v25  ;;  %v2143_v37 = vsub.f32 %v6673_v43, %v2052_v25  ;;  %v6835_v25 = vpop.f32.mrf.mxu1 }
 0x3dd   : > { %v6817_v35 = vpop.eup %5725  ;;  %5739 = vpow2.f32 %v2212_v20  ;;  %v2110_v20 = vmax.f32 %v6791_v57, %v6793_v60 }
 0x3de   : > { %v6819_v44 = vpop.eup %5727  ;;  %v2214_v54 = vmul.f32 1.442695, %v2142_v36  ;;  %v2216_v39 = vmul.f32 1.442695, %v2143_v37 }
 0x3df   : > { %v2055_v30 = vpop.xlane.xlu1 %2054  ;;  %v2326_v40 = vadd.f32 %v6819_v44, %v6817_v35 }
 0x3e0   : > { %5741 = vpow2.f32 %v2214_v54  ;;  %v2144_v2 = vsub.f32 %v6677_v45, %v2055_v30  ;;  %v2145_v42 = vsub.f32 %v6679_v46, %v2055_v30 }
 0x3e1   : > { %v6827_v8 = vpop.eup %5729  ;;  %5743 = vpow2.f32 %v2216_v39  ;;  %2327 = vadd.xlane.f32.xlu0 %v2326_v40 }
 0x3e2   : > { %v6829_v43 = vpop.eup %5731  ;;  %v2218_v11 = vmul.f32 1.442695, %v2144_v2  ;;  %v2220_v33 = vmul.f32 1.442695, %v2145_v42  ;;  %v2113_v2 = vmax.f32 %v6795_v0, %v6797_v50  ;;  %v6847_v42 = vpop.f32.mrf.mxu1 }
 0x3e3   : > { %v2058_v34 = vpop.xlane.xlu0 %2057  ;;  %v2329_v17 = vadd.f32 %v6829_v43, %v6827_v8 }
 0x3e4   : > { %5745 = vpow2.f32 %v2218_v11  ;;  %v2146_v45 = vsub.f32 %v6683_v49, %v2058_v34  ;;  %v2147_v46 = vsub.f32 %v6685_v51, %v2058_v34 }
 0x3e5   : > { %v6839_v36 = vpop.eup %5733  ;;  %5747 = vpow2.f32 %v2220_v33  ;;  %2330 = vadd.xlane.f32.xlu1 %v2329_v17  ;;  %2111 = vmax.xlane.f32.xlu0 %v2110_v20 }
 0x3e6   : > { %v6841_v37 = vpop.eup %5735  ;;  %v2222_v54 = vmul.f32 1.442695, %v2146_v45  ;;  %v2224_v39 = vmul.f32 1.442695, %v2147_v46  ;;  %v2116_v46 = vmax.f32 %v6801_v16, %v6805_v52 }
 0x3e7   : > { %v2061_v30 = vpop.xlane.xlu1 %2060  ;;  %v2332_v40 = vadd.f32 %v6841_v37, %v6839_v36 }
 0x3e8   : > { %5749 = vpow2.f32 %v2222_v54  ;;  %v2148_v49 = vsub.f32 %v6689_v3, %v2061_v30  ;;  %v2149_v51 = vsub.f32 %v6691_v53, %v2061_v30  ;;  %v6859_v54 = vpop.f32.mrf.mxu1 }
 0x3e9   : > { %v6851_v11 = vpop.eup %5737  ;;  %5751 = vpow2.f32 %v2224_v39  ;;  %2333 = vadd.xlane.f32.xlu0 %v2332_v40  ;;  %2114 = vmax.xlane.f32.xlu1 %v2113_v2 }
 0x3ea   : > { %7933 = vst [vmem:[#allocation22_spill] sm:$0xff] %v6851_v11  ;;  %v6853_v33 = vpop.eup %5739  ;;  %v2226_v34 = vmul.f32 1.442695, %v2148_v49  ;;  %v2228_v17 = vmul.f32 1.442695, %v2149_v51 }
 0x3eb   : > { %v2064_v20 = vpop.xlane.xlu0 %2063  ;;  %v2335_v45 = vadd.f32 %v6853_v33, %v6851_v11  ;;  %v6871_v11 = vpop.f32.mrf.mxu1 }
 0x3ec   : > { %5753 = vpow2.f32 %v2226_v34  ;;  %v2150_v3 = vsub.f32 %v6695_v55, %v2064_v20  ;;  %v2151_v53 = vsub.f32 %v6697_v56, %v2064_v20  ;;  %v2119_v34 = vmax.f32 %v6809_v14, %v6813_v28 }
 0x3ed   : > { %v6863_v39 = vpop.eup %5741  ;;  %5755 = vpow2.f32 %v2228_v17  ;;  %2336 = vadd.xlane.f32.xlu1 %v2335_v45  ;;  %2117 = vmax.xlane.f32.xlu0 %v2116_v46 }
 0x3ee   : > { %7934 = vst [vmem:[#allocation23_spill] sm:$0xff] %v6863_v39  ;;  %v6865_v30 = vpop.eup %5743  ;;  %v2230_v40 = vmul.f32 1.442695, %v2150_v3  ;;  %v2232_v2 = vmul.f32 1.442695, %v2151_v53 }
 0x3ef   : > { %v2067_v49 = vpop.xlane.xlu1 %2066  ;;  %v2338_v51 = vadd.f32 %v6865_v30, %v6863_v39  ;;  %v6883_v39 = vpop.f32.mrf.mxu1 }
 0x3f0   : > { %5757 = vpow2.f32 %v2230_v40  ;;  %v2152_v55 = vsub.f32 %v6701_v58, %v2067_v49  ;;  %v2153_v56 = vsub.f32 %v6703_v59, %v2067_v49  ;;  %v2122_v40 = vmax.f32 %v6823_v31, %v6835_v25 }
 0x3f1   : > { %v6875_v17 = vpop.eup %5745  ;;  %5759 = vpow2.f32 %v2232_v2  ;;  %2339 = vadd.xlane.f32.xlu0 %v2338_v51  ;;  %2120 = vmax.xlane.f32.xlu1 %v2119_v34 }
 0x3f2   : > { %7935 = vst [vmem:[#allocation24_spill] sm:$0xff] %v6875_v17  ;;  %v6877_v20 = vpop.eup %5747  ;;  %v2234_v45 = vmul.f32 1.442695, %v2152_v55  ;;  %v2236_v46 = vmul.f32 1.442695, %v2153_v56 }
 0x3f3   : > { %v2070_v3 = vpop.xlane.xlu0 %2069  ;;  %v2341_v53 = vadd.f32 %v6877_v20, %v6875_v17  ;;  %v6895_v17 = vpop.f32.mrf.mxu1 }
 0x3f4   : > { %5761 = vpow2.f32 %v2234_v45  ;;  %v2154_v58 = vsub.f32 %v6707_v62, %v2070_v3  ;;  %v2155_v59 = vsub.f32 %v6709_v63, %v2070_v3  ;;  %v2125_v45 = vmax.f32 %v6847_v42, %v6859_v54 }
 0x3f5   : > { %v6887_v2 = vpop.eup %5749  ;;  %5763 = vpow2.f32 %v2236_v46  ;;  %2342 = vadd.xlane.f32.xlu1 %v2341_v53  ;;  %2123 = vmax.xlane.f32.xlu0 %v2122_v40 }
 0x3f6   : > { %7936 = vst [vmem:[#allocation25_spill] sm:$0xff] %v6887_v2  ;;  %v6889_v49 = vpop.eup %5751  ;;  %v2238_v51 = vmul.f32 1.442695, %v2154_v58  ;;  %v2240_v34 = vmul.f32 1.442695, %v2155_v59 }
 0x3f7   : > { %v2073_v55 = vpop.xlane.xlu1 %2072  ;;  %v2344_v56 = vadd.f32 %v6889_v49, %v6887_v2  ;;  %v6907_v2 = vpop.f32.mrf.mxu1 }
 0x3f8   : > { %5765 = vpow2.f32 %v2238_v51  ;;  %v2156_v62 = vsub.f32 %v6713_v48, %v2073_v55  ;;  %v2157_v63 = vsub.f32 %v6715_v1, %v2073_v55  ;;  %v2128_v51 = vmax.f32 %v6871_v11, %v6883_v39 }
 0x3f9   : > { %v6899_v46 = vpop.eup %5753  ;;  %5767 = vpow2.f32 %v2240_v34  ;;  %2345 = vadd.xlane.f32.xlu0 %v2344_v56  ;;  %2126 = vmax.xlane.f32.xlu1 %v2125_v45 }
 0x3fa   : > { %v6901_v3 = vpop.eup %5755  ;;  %v2242_v53 = vmul.f32 1.442695, %v2156_v62  ;;  %v2244_v40 = vmul.f32 1.442695, %v2157_v63 }
 0x3fb   : > { %v2076_v58 = vpop.xlane.xlu0 %2075  ;;  %v2347_v59 = vadd.f32 %v6901_v3, %v6899_v46 }
 0x3fc   : > { %5769 = vpow2.f32 %v2242_v53  ;;  %v2158_v48 = vsub.f32 %v6719_v4, %v2076_v58  ;;  %v2159_v1 = vsub.f32 %v6721_v5, %v2076_v58  ;;  %v2131_v53 = vmax.f32 %v6895_v17, %v6907_v2 }
 0x3fd   : > { %v6911_v34 = vpop.eup %5757  ;;  %5771 = vpow2.f32 %v2244_v40  ;;  %2348 = vadd.xlane.f32.xlu1 %v2347_v59  ;;  %2129 = vmax.xlane.f32.xlu0 %v2128_v51 }
 0x3fe   : > { %7937 = vst [vmem:[#allocation26_spill] sm:$0xff] %v6911_v34  ;;  %v6913_v55 = vpop.eup %5759  ;;  %v2246_v56 = vmul.f32 1.442695, %v2158_v48  ;;  %v2248_v45 = vmul.f32 1.442695, %v2159_v1 }
 0x3ff   : > { %v2079_v62 = vpop.xlane.xlu1 %2078  ;;  %v2350_v63 = vadd.f32 %v6913_v55, %v6911_v34 }
 0x400   : > { %5773 = vpow2.f32 %v2246_v56  ;;  %v2160_v4 = vsub.f32 %v6725_v6, %v2079_v62  ;;  %v2161_v5 = vsub.f32 %v6727_v7, %v2079_v62 }
 0x401   : > { %v6921_v58 = vpop.eup %5761  ;;  %5775 = vpow2.f32 %v2248_v45  ;;  %2351 = vadd.xlane.f32.xlu0 %v2350_v63  ;;  %2132 = vmax.xlane.f32.xlu1 %v2131_v53 }
 0x402   : > { %v6923_v40 = vpop.eup %5763  ;;  %v2250_v59 = vmul.f32 1.442695, %v2160_v4  ;;  %v2252_v51 = vmul.f32 1.442695, %v2161_v5 }
 0x403   : > { %v2082_v48 = vpop.xlane.xlu0 %2081  ;;  %v2353_v1 = vadd.f32 %v6923_v40, %v6921_v58 }
 0x404   : > { %5777 = vpow2.f32 %v2250_v59  ;;  %v2162_v56 = vsub.f32 %v6731_v9, %v2082_v48  ;;  %v2163_v6 = vsub.f32 %v6733_v10, %v2082_v48 }
 0x405   : > { %v6929_v34 = vpop.eup %5765  ;;  %5779 = vpow2.f32 %v2252_v51  ;;  %2354 = vadd.xlane.f32.xlu1 %v2353_v1 }
 0x406   : > { %v6931_v7 = vpop.eup %5767  ;;  %v2254_v45 = vmul.f32 1.442695, %v2162_v56  ;;  %v2256_v62 = vmul.f32 1.442695, %v2163_v6 }
 0x407   : > { %v2085_v63 = vpop.xlane.xlu1 %2084  ;;  %v2356_v53 = vadd.f32 %v6931_v7, %v6929_v34 }
 0x408   : > { %5781 = vpow2.f32 %v2254_v45  ;;  %v2164_v4 = vsub.f32 %v6737_v12, %v2085_v63  ;;  %v2165_v5 = vsub.f32 %v6739_v13, %v2085_v63 }
 0x409   : > { %v6937_v9 = vpop.eup %5769  ;;  %5783 = vpow2.f32 %v2256_v62  ;;  %2357 = vadd.xlane.f32.xlu0 %v2356_v53 }
 0x40a   : > { %v6939_v10 = vpop.eup %5771  ;;  %v2258_v59 = vmul.f32 1.442695, %v2164_v4  ;;  %v2260_v51 = vmul.f32 1.442695, %v2165_v5 }
 0x40b   : > { %v2088_v48 = vpop.xlane.xlu0 %2087  ;;  %v2359_v1 = vadd.f32 %v6939_v10, %v6937_v9 }
 0x40c   : > { %5785 = vpow2.f32 %v2258_v59  ;;  %v2166_v56 = vsub.f32 %v6743_v15, %v2088_v48  ;;  %v2167_v6 = vsub.f32 %v6745_v61, %v2088_v48 }
 0x40d   : > { %v6945_v12 = vpop.eup %5773  ;;  %5787 = vpow2.f32 %v2260_v51  ;;  %2360 = vadd.xlane.f32.xlu1 %v2359_v1 }
 0x40e   : > { %v6947_v13 = vpop.eup %5775  ;;  %v2262_v45 = vmul.f32 1.442695, %v2166_v56  ;;  %v2264_v62 = vmul.f32 1.442695, %v2167_v6 }
 0x40f   : > { %v2091_v63 = vpop.xlane.xlu1 %2090  ;;  %v2362_v53 = vadd.f32 %v6947_v13, %v6945_v12 }
 0x410   : > { %5789 = vpow2.f32 %v2262_v45  ;;  %v2168_v4 = vsub.f32 %v6749_v18, %v2091_v63  ;;  %v2169_v5 = vsub.f32 %v6751_v19, %v2091_v63 }
 0x411   : > { %v6953_v15 = vpop.eup %5777  ;;  %5791 = vpow2.f32 %v2264_v62  ;;  %2363 = vadd.xlane.f32.xlu0 %v2362_v53 }
 0x412   : > { %v6955_v61 = vpop.eup %5779  ;;  %v2266_v59 = vmul.f32 1.442695, %v2168_v4  ;;  %v2268_v51 = vmul.f32 1.442695, %v2169_v5 }
 0x413   : > { %v2094_v48 = vpop.xlane.xlu0 %2093  ;;  %v2365_v1 = vadd.f32 %v6955_v61, %v6953_v15 }
 0x414   : > { %5793 = vpow2.f32 %v2266_v59  ;;  %v2170_v56 = vsub.f32 %v6755_v21, %v2094_v48  ;;  %v2171_v6 = vsub.f32 %v6757_v22, %v2094_v48 }
 0x415   : > { %v6961_v18 = vpop.eup %5781  ;;  %5795 = vpow2.f32 %v2268_v51  ;;  %2366 = vadd.xlane.f32.xlu1 %v2365_v1 }
 0x416   : > { %v6963_v19 = vpop.eup %5783  ;;  %v2270_v45 = vmul.f32 1.442695, %v2170_v56  ;;  %v2272_v62 = vmul.f32 1.442695, %v2171_v6 }
 0x417   : > { %v2097_v63 = vpop.xlane.xlu1 %2096  ;;  %v2368_v53 = vadd.f32 %v6963_v19, %v6961_v18 }
 0x418   : > { %5797 = vpow2.f32 %v2270_v45  ;;  %v2172_v4 = vsub.f32 %v6761_v23, %v2097_v63  ;;  %v2173_v5 = vsub.f32 %v6763_v24, %v2097_v63 }
 0x419   : > { %v6969_v21 = vpop.eup %5785  ;;  %5799 = vpow2.f32 %v2272_v62  ;;  %2369 = vadd.xlane.f32.xlu0 %v2368_v53 }
 0x41a   : > { %v6971_v22 = vpop.eup %5787  ;;  %v2274_v59 = vmul.f32 1.442695, %v2172_v4  ;;  %v2276_v51 = vmul.f32 1.442695, %v2173_v5 }
 0x41b   : > { %v2100_v48 = vpop.xlane.xlu0 %2099  ;;  %v2371_v1 = vadd.f32 %v6971_v22, %v6969_v21 }
 0x41c   : > { %5801 = vpow2.f32 %v2274_v59  ;;  %v2174_v56 = vsub.f32 %v6767_v26, %v2100_v48  ;;  %v2175_v6 = vsub.f32 %v6769_v27, %v2100_v48 }
 0x41d   : > { %v6977_v23 = vpop.eup %5789  ;;  %5803 = vpow2.f32 %v2276_v51  ;;  %2372 = vadd.xlane.f32.xlu1 %v2371_v1 }
 0x41e   : > { %v6979_v24 = vpop.eup %5791  ;;  %v2278_v45 = vmul.f32 1.442695, %v2174_v56  ;;  %v2280_v62 = vmul.f32 1.442695, %v2175_v6 }
 0x41f   : > { %v2103_v63 = vpop.xlane.xlu1 %2102  ;;  %v2374_v53 = vadd.f32 %v6979_v24, %v6977_v23 }
 0x420   : > { %5805 = vpow2.f32 %v2278_v45  ;;  %v2176_v4 = vsub.f32 %v6773_v29, %v2103_v63  ;;  %v2177_v5 = vsub.f32 %v6775_v32, %v2103_v63 }
 0x421   : > { %v6985_v26 = vpop.eup %5793  ;;  %5807 = vpow2.f32 %v2280_v62  ;;  %2375 = vadd.xlane.f32.xlu0 %v2374_v53 }
 0x422   : > { %v6987_v27 = vpop.eup %5795  ;;  %v2282_v59 = vmul.f32 1.442695, %v2176_v4  ;;  %v2284_v51 = vmul.f32 1.442695, %v2177_v5  ;;  %v7939_v5 = vld [vmem:[#allocation21_spill] sm:$0xff] }
 0x423   : > { %v2106_v48 = vpop.xlane.xlu0 %2105  ;;  %v2377_v1 = vadd.f32 %v6987_v27, %v6985_v26 }
 0x424   : > { %5809 = vpow2.f32 %v2282_v59  ;;  %v2178_v56 = vsub.f32 %v6779_v38, %v2106_v48  ;;  %v2179_v6 = vsub.f32 %v6781_v41, %v2106_v48 }
 0x425   : > { %v6993_v29 = vpop.eup %5797  ;;  %5811 = vpow2.f32 %v2284_v51  ;;  %2378 = vadd.xlane.f32.xlu1 %v2377_v1 }
 0x426   : > { %7938 = vst [vmem:[#allocation27_spill] sm:$0xff] %v6993_v29  ;;  %v6995_v32 = vpop.eup %5799  ;;  %v2286_v45 = vmul.f32 1.442695, %v2178_v56  ;;  %v2288_v62 = vmul.f32 1.442695, %v2179_v6 }
 0x427   : > { %v2109_v63 = vpop.xlane.xlu1 %2108  ;;  %v2380_v53 = vadd.f32 %v6995_v32, %v6993_v29 }
 0x428   : > { %5813 = vpow2.f32 %v2286_v45  ;;  %v2180_v4 = vsub.f32 %v6785_v47, %v2109_v63  ;;  %v2181_v59 = vsub.f32 %v7939_v5, %v2109_v63 }
 0x429   : > { %v7001_v38 = vpop.eup %5801  ;;  %5815 = vpow2.f32 %v2288_v62  ;;  %2381 = vadd.xlane.f32.xlu0 %v2380_v53 }
 0x42a   : > { %v7003_v41 = vpop.eup %5803  ;;  %v2290_v51 = vmul.f32 1.442695, %v2180_v4  ;;  %v2292_v48 = vmul.f32 1.442695, %v2181_v59 }
 0x42b   : > { %v2383_v1 = vadd.f32 %v7003_v41, %v7001_v38 }
 0x42c   : > { %5817 = vpow2.f32 %v2290_v51 }
 0x42d   : > { %v7007_v56 = vpop.eup %5805  ;;  %5819 = vpow2.f32 %v2292_v48  ;;  %2384 = vadd.xlane.f32.xlu1 %v2383_v1 }
 0x42e   : > { %7940 = vst [vmem:[#allocation21_spill] sm:$0xff] %v7007_v56  ;;  %v7009_v6 = vpop.eup %5807 }
 0x42f   : > { %7941 = vst [vmem:[#allocation28_spill] sm:$0xff] %v7009_v6  ;;  %v2386_v47 = vadd.f32 %v7009_v6, %v7007_v56 }
 0x431   : > { %v7013_v45 = vpop.eup %5809  ;;  %2387 = vadd.xlane.f32.xlu0 %v2386_v47 }
 0x432   : > { %7942 = vst [vmem:[#allocation29_spill] sm:$0xff] %v7013_v45  ;;  %v7015_v62 = vpop.eup %5811 }
 0x433   : > { %7943 = vst [vmem:[#allocation30_spill] sm:$0xff] %v7015_v62  ;;  %v2389_v63 = vadd.f32 %v7015_v62, %v7013_v45 }
 0x435   : > { %v7019_v53 = vpop.eup %5813  ;;  %2390 = vadd.xlane.f32.xlu1 %v2389_v63 }
 0x436   : > { %7944 = vst [vmem:[#allocation31_spill] sm:$0xff] %v7019_v53  ;;  %v7021_v4 = vpop.eup %5815 }
 0x437   : > { %7945 = vst [vmem:[#allocation32_spill] sm:$0xff] %v7021_v4  ;;  %v2392_v5 = vadd.f32 %v7021_v4, %v7019_v53 }
 0x439   : > { %v7025_v59 = vpop.eup %5817  ;;  %2393 = vadd.xlane.f32.xlu0 %v2392_v5 }
 0x43a   : > { %7946 = vst [vmem:[#allocation33_spill] sm:$0xff] %v7025_v59  ;;  %v7027_v51 = vpop.eup %5819 }
 0x43b   : > { %7947 = vst [vmem:[#allocation34_spill] sm:$0xff] %v7027_v51  ;;  %v2395_v48 = vadd.f32 %v7027_v51, %v7025_v59 }
 0x43d   : > { %2396 = vadd.xlane.f32.xlu1 %v2395_v48 }
 0x46a   : > { %v2328_v1 = vpop.xlane.xlu0 %2327 }
 0x46b   : > { %5821 = vrcp.f32 %v2328_v1 }
 0x46e   : > { %v2331_v47 = vpop.xlane.xlu1 %2330  ;;  %v2112_v56 = vpop.xlane.xlu0 %2111 }
 0x46f   : > { %5823 = vrcp.f32 %v2331_v47  ;;  %v2182_v63 = vsub.f32 %v6791_v57, %v2112_v56  ;;  %v2183_v45 = vsub.f32 %v6793_v60, %v2112_v56 }
 0x471   : > { %v2294_v62 = vmul.f32 1.442695, %v2182_v63  ;;  %v2296_v53 = vmul.f32 1.442695, %v2183_v45 }
 0x472   : > { %v2334_v4 = vpop.xlane.xlu0 %2333  ;;  %v2115_v6 = vpop.xlane.xlu1 %2114 }
 0x473   : > { %5825 = vpow2.f32 %v2294_v62  ;;  %v2184_v5 = vsub.f32 %v6795_v0, %v2115_v6  ;;  %v2185_v29 = vsub.f32 %v6797_v50, %v2115_v6 }
 0x474   : > { %5827 = vpow2.f32 %v2296_v53 }
 0x475   : > { %v2298_v48 = vmul.f32 1.442695, %v2184_v5  ;;  %v2300_v59 = vmul.f32 1.442695, %v2185_v29  ;;  %5829 = vrcp.f32 %v2334_v4 }
 0x476   : > { %v2337_v1 = vpop.xlane.xlu1 %2336  ;;  %v2118_v51 = vpop.xlane.xlu0 %2117 }
 0x477   : > { %5831 = vpow2.f32 %v2298_v48  ;;  %v2186_v57 = vsub.f32 %v6801_v16, %v2118_v51  ;;  %v2187_v60 = vsub.f32 %v6805_v52, %v2118_v51 }
 0x478   : > { %5833 = vpow2.f32 %v2300_v59  ;;  %v5822_v62 = vpop.eup %5821 }
 0x479   : > { %5835 = vrcp.f32 %v2337_v1  ;;  %v2302_v56 = vmul.f32 1.442695, %v2186_v57  ;;  %v2304_v45 = vmul.f32 1.442695, %v2187_v60  ;;  %v2455_v16 = vmul.f32 %v5822_v62, %v6819_v44 }
 0x47a   : > { %v2340_v47 = vpop.xlane.xlu0 %2339  ;;  %v2121_v0 = vpop.xlane.xlu1 %2120  ;;  %v2454_v63 = vmul.f32 %v5822_v62, %v6817_v35 }
 0x47b   : > { %5837 = vpow2.f32 %v2302_v56  ;;  %v2188_v50 = vsub.f32 %v6809_v14, %v2121_v0  ;;  %v2189_v29 = vsub.f32 %v6813_v28, %v2121_v0 }
 0x47c   : > { %v5824_v6 = vpop.eup %5823  ;;  %5839 = vpow2.f32 %v2304_v45 }
 0x47d   : > { %v2306_v53 = vmul.f32 1.442695, %v2188_v50  ;;  %v2308_v4 = vmul.f32 1.442695, %v2189_v29  ;;  %v2457_v52 = vmul.f32 %v5824_v6, %v6829_v43  ;;  %5841 = vrcp.f32 %v2340_v47 }
 0x47e   : > { %v2343_v59 = vpop.xlane.xlu1 %2342  ;;  %v2124_v51 = vpop.xlane.xlu0 %2123  ;;  %v2456_v5 = vmul.f32 %v5824_v6, %v6827_v8 }
 0x47f   : > { %5843 = vpow2.f32 %v2306_v53  ;;  %v2190_v14 = vsub.f32 %v6823_v31, %v2124_v51  ;;  %v2191_v28 = vsub.f32 %v6835_v25, %v2124_v51  ;;  %v2519_v48 = vpack.c.bf16 %v2457_v52, %v2455_v16 }
 0x480   : > { %v7045_v1 = vpop.eup %5825  ;;  %5845 = vpow2.f32 %v2308_v4  ;;  %v2518_v57 = vpack.c.bf16 %v2456_v5, %v2454_v63  ;;  %v7948_v63 = vld [vmem:[#allocation22_spill] sm:$0xff] }
 0x481   : > { %v7047_v44 = vpop.eup %5827  ;;  %5847 = vrcp.f32 %v2343_v59  ;;  %v2310_v43 = vmul.f32 1.442695, %v2190_v14  ;;  %v2312_v60 = vmul.f32 1.442695, %v2191_v28  ;;  %2678 = vmatprep.mubr.bf16.mxu0 %v2519_v48 }
 0x482   : > { %2679 = vmatmul.mubr.bf16.vlgmr.msra.gmra.mxu0 %v2518_v57  ;;  %v2346_v35 = vpop.xlane.xlu0 %2345  ;;  %v2127_v56 = vpop.xlane.xlu1 %2126  ;;  %v2398_v8 = vadd.f32 %v7047_v44, %v7045_v1 }
 0x483   : > { %v5830_v31 = vpop.eup %5829  ;;  %5849 = vpow2.f32 %v2310_v43  ;;  %v2192_v25 = vsub.f32 %v6847_v42, %v2127_v56  ;;  %v2193_v45 = vsub.f32 %v6859_v54, %v2127_v56 }
 0x484   : > { %v7053_v62 = vpop.eup %5831  ;;  %5851 = vpow2.f32 %v2312_v60  ;;  %2399 = vadd.xlane.f32.xlu0 %v2398_v8  ;;  %v2459_v16 = vmul.f32 %v5830_v31, %v6841_v37  ;;  %v2458_v51 = vmul.f32 %v5830_v31, %v6839_v36 }
 0x485   : > { %v7055_v47 = vpop.eup %5833  ;;  %v2314_v0 = vmul.f32 1.442695, %v2192_v25  ;;  %v2316_v50 = vmul.f32 1.442695, %v2193_v45  ;;  %5853 = vrcp.f32 %v2346_v35 }
 0x486   : > { %v5836_v29 = vpop.eup %5835  ;;  %v2349_v6 = vpop.xlane.xlu1 %2348  ;;  %v2401_v4 = vadd.f32 %v7055_v47, %v7053_v62 }
 0x487   : > { %v2130_v53 = vpop.xlane.xlu0 %2129  ;;  %5855 = vpow2.f32 %v2314_v0  ;;  %v2461_v52 = vmul.f32 %v5836_v29, %v6853_v33  ;;  %v2460_v5 = vmul.f32 %v5836_v29, %v7948_v63 }
 0x488   : > { %v2194_v42 = vsub.f32 %v6871_v11, %v2130_v53  ;;  %v2195_v54 = vsub.f32 %v6883_v39, %v2130_v53  ;;  %v7063_v59 = vpop.eup %5837  ;;  %5857 = vpow2.f32 %v2316_v50  ;;  %2402 = vadd.xlane.f32.xlu1 %v2401_v4 }
 0x489   : > { %v7067_v14 = vpop.eup %5839  ;;  %5859 = vrcp.f32 %v2349_v6  ;;  %v2521_v48 = vpack.c.bf16 %v2461_v52, %v2459_v16  ;;  %v2520_v57 = vpack.c.bf16 %v2460_v5, %v2458_v51  ;;  %v7950_v6 = vld [vmem:[#allocation24_spill] sm:$0xff] }
 0x48a   : > { %v2318_v28 = vmul.f32 1.442695, %v2194_v42  ;;  %v2320_v37 = vmul.f32 1.442695, %v2195_v54  ;;  %v2133_v11 = vpop.xlane.xlu1 %2132  ;;  %v2404_v39 = vadd.f32 %v7067_v14, %v7063_v59  ;;  %v5842_v33 = vpop.eup %5841 }
 0x48b   : > { %2686 = vmatprep.mubr.bf16.mxu0 %v2521_v48  ;;  %v2352_v43 = vpop.xlane.xlu0 %2351  ;;  %v2196_v60 = vsub.f32 %v6895_v17, %v2133_v11  ;;  %v2197_v36 = vsub.f32 %v6907_v2, %v2133_v11  ;;  %v2463_v50 = vmul.f32 %v5842_v33, %v6865_v30  ;;  %v7949_v2 = vld [vmem:[#allocation23_spill] sm:$0xff]  ;;  %v7951_v11 = vld [vmem:[#allocation25_spill] sm:$0xff] }
 0x48c   : > { %5861 = vpow2.f32 %v2318_v28  ;;  %v7073_v35 = vpop.eup %5843  ;;  %2687 = vmatmul.mubr.bf16.gmra.mxu0 %v2520_v57  ;;  %2405 = vadd.xlane.f32.xlu0 %v2404_v39  ;;  %v2462_v29 = vmul.f32 %v5842_v33, %v7949_v2 }
 0x48d   : > { %5863 = vpow2.f32 %v2320_v37  ;;  %v7075_v56 = vpop.eup %5845  ;;  %v2322_v8 = vmul.f32 1.442695, %v2196_v60  ;;  %v2324_v31 = vmul.f32 1.442695, %v2197_v36 }
 0x48e   : > { %v5848_v25 = vpop.eup %5847  ;;  %5865 = vrcp.f32 %v2352_v43  ;;  %v2355_v45 = vpop.xlane.xlu1 %2354  ;;  %v2407_v0 = vadd.f32 %v7075_v56, %v7073_v35 }
 0x48f   : > { %5867 = vpow2.f32 %v2322_v8  ;;  %v2465_v17 = vmul.f32 %v5848_v25, %v6877_v20  ;;  %v2464_v53 = vmul.f32 %v5848_v25, %v7950_v6 }
 0x490   : > { %v7083_v4 = vpop.eup %5849  ;;  %5869 = vpow2.f32 %v2324_v31  ;;  %2408 = vadd.xlane.f32.xlu1 %v2407_v0 }
 0x491   : > { %v7085_v16 = vpop.eup %5851  ;;  %5871 = vrcp.f32 %v2355_v45  ;;  %v2523_v42 = vpack.c.bf16 %v2465_v17, %v2463_v50  ;;  %v2522_v54 = vpack.c.bf16 %v2464_v53, %v2462_v29  ;;  %v7952_v29 = vld [vmem:[#allocation26_spill] sm:$0xff] }
 0x492   : > { %v2358_v52 = vpop.xlane.xlu0 %2357  ;;  %v2410_v30 = vadd.f32 %v7085_v16, %v7083_v4  ;;  %v5854_v51 = vpop.eup %5853 }
 0x493   : > { %2694 = vmatprep.mubr.bf16.mxu0 %v2523_v42  ;;  %5873 = vrcp.f32 %v2358_v52  ;;  %v2467_v48 = vmul.f32 %v5854_v51, %v6889_v49  ;;  %v2466_v39 = vmul.f32 %v5854_v51, %v7951_v11 }
 0x494   : > { %v7089_v20 = vpop.eup %5855  ;;  %2695 = vmatmul.mubr.bf16.gmra.mxu0 %v2522_v54  ;;  %2411 = vadd.xlane.f32.xlu0 %v2410_v30 }
 0x495   : > { %v7091_v63 = vpop.eup %5857 }
 0x496   : > { %v5860_v5 = vpop.eup %5859  ;;  %v2361_v28 = vpop.xlane.xlu1 %2360  ;;  %v2413_v37 = vadd.f32 %v7091_v63, %v7089_v20 }
 0x497   : > { %5875 = vrcp.f32 %v2361_v28  ;;  %v2469_v57 = vmul.f32 %v5860_v5, %v6901_v3  ;;  %v2468_v33 = vmul.f32 %v5860_v5, %v6899_v46 }
 0x498   : > { %2414 = vadd.xlane.f32.xlu1 %v2413_v37 }
 0x499   : > { %v7099_v43 = vpop.eup %5861  ;;  %v2525_v36 = vpack.c.bf16 %v2469_v57, %v2467_v48  ;;  %v2524_v8 = vpack.c.bf16 %v2468_v33, %v2466_v39 }
 0x49a   : > { %v7101_v60 = vpop.eup %5863  ;;  %v2364_v31 = vpop.xlane.xlu0 %2363 }
 0x49b   : > { %v2416_v25 = vadd.f32 %v7101_v60, %v7099_v43  ;;  %v5866_v45 = vpop.eup %5865  ;;  %2702 = vmatprep.mubr.bf16.mxu0 %v2525_v36  ;;  %5877 = vrcp.f32 %v2364_v31 }
 0x49c   : > { %v7105_v49 = vpop.eup %5867  ;;  %2703 = vmatmul.mubr.bf16.gmra.mxu0 %v2524_v8  ;;  %v2471_v17 = vmul.f32 %v5866_v45, %v6913_v55  ;;  %v2470_v6 = vmul.f32 %v5866_v45, %v7952_v29 }
 0x49d   : > { %2417 = vadd.xlane.f32.xlu0 %v2416_v25  ;;  %v7107_v3 = vpop.eup %5869 }
 0x49e   : > { %v5872_v46 = vpop.eup %5871  ;;  %v2367_v0 = vpop.xlane.xlu1 %2366  ;;  %v2419_v50 = vadd.f32 %v7107_v3, %v7105_v49 }
 0x49f   : > { %5879 = vrcp.f32 %v2367_v0  ;;  %v2473_v2 = vmul.f32 %v5872_v46, %v6923_v40  ;;  %v2472_v53 = vmul.f32 %v5872_v46, %v6921_v58  ;;  %v5701_v0 = vld [vmem:[#allocation10 + $0x38] sm:$0xff]  }
 0x4a0   : > { %2420 = vadd.xlane.f32.xlu1 %v2419_v50  ;;  %v5874_v52 = vpop.eup %5873  ;;  %5365 = vmatprep.subr.bf16.mxu1 %v5701_v0 }
 0x4a1   : > { %v2527_v42 = vpack.c.bf16 %v2473_v2, %v2471_v17  ;;  %v2526_v54 = vpack.c.bf16 %v2472_v53, %v2470_v6  ;;  %v2475_v5 = vmul.f32 %v5874_v52, %v6931_v7  ;;  %v2474_v37 = vmul.f32 %v5874_v52, %v6929_v34  ;;  %5366 = vmatpush3.bf16.msra.mxu1 %v5701_v0 }
 0x4a2   : > { %v2370_v30 = vpop.xlane.xlu0 %2369 }
 0x4a3   : > { %2710 = vmatprep.mubr.bf16.mxu0 %v2527_v42  ;;  %5881 = vrcp.f32 %v2370_v30  ;;  %v5704_v42 = vld [vmem:[#allocation10 + $0x20] sm:$0xff]  }
 0x4a4   : > { %v5876_v51 = vpop.eup %5875  ;;  %2711 = vmatmul.mubr.bf16.gmra.mxu0 %v2526_v54 }
 0x4a5   : > { %v2477_v55 = vmul.f32 %v5876_v51, %v6939_v10  ;;  %v2476_v28 = vmul.f32 %v5876_v51, %v6937_v9 }
 0x4a6   : > { %v2373_v40 = vpop.xlane.xlu1 %2372 }
 0x4a7   : > { %5883 = vrcp.f32 %v2373_v40  ;;  %v2529_v58 = vpack.c.bf16 %v2477_v55, %v2475_v5  ;;  %v2528_v48 = vpack.c.bf16 %v2476_v28, %v2474_v37  ;;  %v7953_v37 = vld [vmem:[#allocation27_spill] sm:$0xff] }
 0x4a8   : > { %v5878_v57 = vpop.eup %5877 }
 0x4a9   : > { %2718 = vmatprep.mubr.bf16.mxu0 %v2529_v58  ;;  %v2479_v33 = vmul.f32 %v5878_v57, %v6947_v13  ;;  %v2478_v9 = vmul.f32 %v5878_v57, %v6945_v12 }
 0x4aa   : > { %v2376_v11 = vpop.xlane.xlu0 %2375 }
 0x4ab   : > { %5885 = vrcp.f32 %v2376_v11 }
 0x4ac   : > { %v5880_v39 = vpop.eup %5879  ;;  %2719 = vmatmul.mubr.bf16.gmra.mxu0 %v2528_v48 }
 0x4ad   : > { %v2481_v7 = vmul.f32 %v5880_v39, %v6955_v61  ;;  %v2480_v10 = vmul.f32 %v5880_v39, %v6953_v15  ;;  %v5702_v15 = vld [vmem:[#allocation10 + $0x30] sm:$0xff]  }
 0x4ae   : > { %v2379_v36 = vpop.xlane.xlu1 %2378  ;;  %5367 = vmatprep.subr.bf16.mxu1 %v5702_v15  ;;  %v5706_v39 = vld [vmem:[#allocation10 + $0x10] sm:$0xff]  }
 0x4af   : > { %5887 = vrcp.f32 %v2379_v36  ;;  %v2531_v34 = vpack.c.bf16 %v2481_v7, %v2479_v33  ;;  %v2530_v8 = vpack.c.bf16 %v2480_v10, %v2478_v9  ;;  %5368 = vmatpush3.bf16.msra.mxu1 %v5702_v15  ;;  %v7957_v9 = vld [vmem:[#allocation21_spill] sm:$0xff]  ;;  %v7959_v15 = vld [vmem:[#allocation34_spill] sm:$0xff] }
 0x4b0   : > { %v5882_v31 = vpop.eup %5881 }
 0x4b1   : > { %2726 = vmatprep.mubr.bf16.mxu0 %v2531_v34  ;;  %v2483_v46 = vmul.f32 %v5882_v31, %v6963_v19  ;;  %v2482_v12 = vmul.f32 %v5882_v31, %v6961_v18  ;;  %v5703_v18 = vld [vmem:[#allocation10 + $0x28] sm:$0xff]  }
 0x4b2   : > { %v2382_v25 = vpop.xlane.xlu0 %2381  ;;  %5369 = vmatprep.subr.bf16.mxu1 %v5703_v18 }
 0x4b3   : > { %5889 = vrcp.f32 %v2382_v25  ;;  %5370 = vmatpush3.bf16.msra.mxu1 %v5703_v18 }
 0x4b4   : > { %v5884_v45 = vpop.eup %5883  ;;  %2727 = vmatmul.mubr.bf16.gmra.mxu0 %v2530_v8  ;;  %5371 = vmatprep.subr.bf16.mxu1 %v5704_v42  ;;  %v5707_v8 = vld [vmem:[#allocation10 + $0x8] sm:$0xff]  }
 0x4b5   : > { %v2485_v13 = vmul.f32 %v5884_v45, %v6971_v22  ;;  %v2484_v61 = vmul.f32 %v5884_v45, %v6969_v21 }
 0x4b6   : > { %v2385_v50 = vpop.xlane.xlu1 %2384 }
 0x4b7   : > { %5891 = vrcp.f32 %v2385_v50  ;;  %v2533_v17 = vpack.c.bf16 %v2485_v13, %v2483_v46  ;;  %v2532_v2 = vpack.c.bf16 %v2484_v61, %v2482_v12  ;;  %5372 = vmatpush3.bf16.msra.mxu1 %v5704_v42  ;;  %v5708_v46 = vld [vmem:[#allocation10] sm:$0xff]   ;;  %v7958_v61 = vld [vmem:[#allocation32_spill] sm:$0xff] }
 0x4b8   : > { %v5886_v29 = vpop.eup %5885  ;;  %v7960_v12 = vld [vmem:[#allocation33_spill] sm:$0xff] }
 0x4b9   : > { %2734 = vmatprep.mubr.bf16.mxu0 %v2533_v17  ;;  %v2487_v19 = vmul.f32 %v5886_v29, %v6979_v24  ;;  %v2486_v52 = vmul.f32 %v5886_v29, %v6977_v23  ;;  %v5705_v23 = vld [vmem:[#allocation10 + $0x18] sm:$0xff]  }
 0x4ba   : > { %v2388_v6 = vpop.xlane.xlu0 %2387  ;;  %5373 = vmatprep.subr.bf16.mxu1 %v5705_v23 }
 0x4bb   : > { %5893 = vrcp.f32 %v2388_v6  ;;  %5374 = vmatpush3.bf16.msra.mxu1 %v5705_v23 }
 0x4bc   : > { %v5888_v53 = vpop.eup %5887  ;;  %2735 = vmatmul.mubr.bf16.gmra.mxu0 %v2532_v2  ;;  %5375 = vmatprep.subr.bf16.mxu1 %v5706_v39  ;;  %v7961_v2 = vld [vmem:[#allocation31_spill] sm:$0xff] }
 0x4bd   : > { %v2489_v21 = vmul.f32 %v5888_v53, %v6987_v27  ;;  %v2488_v22 = vmul.f32 %v5888_v53, %v6985_v26 }
 0x4be   : > { %v2391_v54 = vpop.xlane.xlu1 %2390 }
 0x4bf   : > { %5895 = vrcp.f32 %v2391_v54  ;;  %v2535_v30 = vpack.c.bf16 %v2489_v21, %v2487_v19  ;;  %v2534_v51 = vpack.c.bf16 %v2488_v22, %v2486_v52  ;;  %5376 = vmatpush3.bf16.msra.mxu1 %v5706_v39 }
 0x4c0   : > { %v5890_v5 = vpop.eup %5889  ;;  %5377 = vmatprep.subr.bf16.mxu1 %v5707_v8 }
 0x4c1   : > { %2742 = vmatprep.mubr.bf16.mxu0 %v2535_v30  ;;  %v2491_v24 = vmul.f32 %v5890_v5, %v6995_v32  ;;  %v2490_v58 = vmul.f32 %v5890_v5, %v7953_v37  ;;  %v7954_v32 = vld [vmem:[#allocation28_spill] sm:$0xff] }
 0x4c2   : > { %v2394_v55 = vpop.xlane.xlu0 %2393 }
 0x4c3   : > { %5897 = vrcp.f32 %v2394_v55  ;;  %5378 = vmatpush3.bf16.msra.mxu1 %v5707_v8 }
 0x4c4   : > { %v5892_v28 = vpop.eup %5891  ;;  %2743 = vmatmul.mubr.bf16.gmra.mxu0 %v2534_v51  ;;  %5379 = vmatprep.subr.bf16.mxu1 %v5708_v46 }
 0x4c5   : > { %v2493_v26 = vmul.f32 %v5892_v28, %v7003_v41  ;;  %v2492_v27 = vmul.f32 %v5892_v28, %v7001_v38  ;;  %v7955_v41 = vld [vmem:[#allocation30_spill] sm:$0xff]  ;;  %v7956_v38 = vld [vmem:[#allocation29_spill] sm:$0xff] }
 0x4c6   : > { %v2397_v40 = vpop.xlane.xlu1 %2396 }
 0x4c7   : > { %5899 = vrcp.f32 %v2397_v40  ;;  %v2537_v48 = vpack.c.bf16 %v2493_v26, %v2491_v24  ;;  %v2536_v57 = vpack.c.bf16 %v2492_v27, %v2490_v58  ;;  %5380 = vmatpush3.bf16.msra.mxu1 %v5708_v46 }
 0x4c8   : > { %v5894_v11 = vpop.eup %5893 }
 0x4c9   : > { %2750 = vmatprep.mubr.bf16.mxu0 %v2537_v48  ;;  %v2495_v7 = vmul.f32 %v5894_v11, %v7954_v32  ;;  %v2494_v34 = vmul.f32 %v5894_v11, %v7957_v9 }
 0x4cc   : > { %v5896_v33 = vpop.eup %5895  ;;  %2751 = vmatmul.mubr.bf16.gmra.mxu0 %v2536_v57 }
 0x4cd   : > { %v2497_v10 = vmul.f32 %v5896_v33, %v7955_v41  ;;  %v2496_v36 = vmul.f32 %v5896_v33, %v7956_v38 }
 0x4cf   : > { %v2539_v31 = vpack.c.bf16 %v2497_v10, %v2495_v7  ;;  %v2538_v25 = vpack.c.bf16 %v2496_v36, %v2494_v34 }
 0x4d0   : > { %v5898_v45 = vpop.eup %5897 }
 0x4d1   : > { %2758 = vmatprep.mubr.bf16.mxu0 %v2539_v31  ;;  %v2499_v0 = vmul.f32 %v5898_v45, %v7958_v61  ;;  %v2498_v29 = vmul.f32 %v5898_v45, %v7961_v2 }
 0x4d4   : > { %v5900_v13 = vpop.eup %5899  ;;  %2759 = vmatmul.mubr.bf16.gmra.mxu0 %v2538_v25 }
 0x4d5   : > { %v2501_v50 = vmul.f32 %v5900_v13, %v7959_v15  ;;  %v2500_v17 = vmul.f32 %v5900_v13, %v7960_v12 }
 0x4d7   : > { %v2541_v6 = vpack.c.bf16 %v2501_v50, %v2499_v0  ;;  %v2540_v53 = vpack.c.bf16 %v2500_v17, %v2498_v29 }
 0x4d9   : > { %2766 = vmatprep.mubr.bf16.mxu0 %v2541_v6 }
 0x4dc   : > { %2767 = vmatmul.mubr.bf16.gmra.mxu0 %v2540_v53 }
 0x50d   : > { %v2400_v19 = vpop.xlane.xlu0 %2399 }
 0x50e   : > { %5901 = vrcp.f32 %v2400_v19 }
 0x511   : > { %v2403_v21 = vpop.xlane.xlu1 %2402 }
 0x512   : > { %5903 = vrcp.f32 %v2403_v21 }
 0x515   : > { %v2406_v22 = vpop.xlane.xlu0 %2405 }
 0x516   : > { %5905 = vrcp.f32 %v2406_v22 }
 0x519   : > { %v2409_v18 = vpop.xlane.xlu1 %2408 }
 0x51a   : > { %5907 = vrcp.f32 %v2409_v18 }
 0x51b   : > { %v5902_v42 = vpop.eup %5901 }
 0x51c   : > { %v2503_v30 = vmul.f32 %v5902_v42, %v7047_v44  ;;  %v2502_v5 = vmul.f32 %v5902_v42, %v7045_v1 }
 0x51d   : > { %v2412_v54 = vpop.xlane.xlu0 %2411 }
 0x51e   : > { %5909 = vrcp.f32 %v2412_v54 }
 0x51f   : > { %v5904_v52 = vpop.eup %5903 }
 0x520   : > { %v2505_v51 = vmul.f32 %v5904_v52, %v7055_v47  ;;  %v2504_v55 = vmul.f32 %v5904_v52, %v7053_v62 }
 0x521   : > { %v2415_v28 = vpop.xlane.xlu1 %2414 }
 0x522   : > { %5911 = vrcp.f32 %v2415_v28  ;;  %v2543_v24 = vpack.c.bf16 %v2505_v51, %v2503_v30  ;;  %v2542_v26 = vpack.c.bf16 %v2504_v55, %v2502_v5 }
 0x523   : > { %v5906_v27 = vpop.eup %5905 }
 0x524   : > { %2774 = vmatprep.mubr.bf16.mxu0 %v2543_v24  ;;  %v2507_v37 = vmul.f32 %v5906_v27, %v7067_v14  ;;  %v2506_v47 = vmul.f32 %v5906_v27, %v7063_v59 }
 0x525   : > { %2775 = vmatmul.mubr.bf16.gmra.mxu0 %v2542_v26 }
 0x526   : > { %v2418_v23 = vpop.xlane.xlu0 %2417 }
 0x527   : > { %v5908_v40 = vpop.eup %5907  ;;  %5913 = vrcp.f32 %v2418_v23 }
 0x528   : > { %v2509_v44 = vmul.f32 %v5908_v40, %v7075_v56  ;;  %v2508_v1 = vmul.f32 %v5908_v40, %v7073_v35 }
 0x529   : > { %v2421_v58 = vpop.xlane.xlu1 %2420 }
 0x52a   : > { %5915 = vrcp.f32 %v2421_v58  ;;  %v2545_v62 = vpack.c.bf16 %v2509_v44, %v2507_v37  ;;  %v2544_v48 = vpack.c.bf16 %v2508_v1, %v2506_v47 }
 0x52b   : > { %v5910_v57 = vpop.eup %5909 }
 0x52c   : > { %2782 = vmatprep.mubr.bf16.mxu0 %v2545_v62  ;;  %v2511_v39 = vmul.f32 %v5910_v57, %v7085_v16  ;;  %v2510_v14 = vmul.f32 %v5910_v57, %v7083_v4 }
 0x52d   : > { %2783 = vmatmul.mubr.bf16.gmra.mxu0 %v2544_v48 }
 0x52f   : > { %v5912_v11 = vpop.eup %5911 }
 0x530   : > { %v2513_v33 = vmul.f32 %v5912_v11, %v7091_v63  ;;  %v2512_v56 = vmul.f32 %v5912_v11, %v7089_v20 }
 0x532   : > { %v2547_v32 = vpack.c.bf16 %v2513_v33, %v2511_v39  ;;  %v2546_v59 = vpack.c.bf16 %v2512_v56, %v2510_v14 }
 0x534   : > { %2790 = vmatprep.mubr.bf16.mxu0 %v2547_v32  ;;  %v5914_v35 = vpop.eup %5913 }
 0x535   : > { %2791 = vmatmul.mubr.bf16.gmra.mxu0 %v2546_v59  ;;  %v2515_v41 = vmul.f32 %v5914_v35, %v7101_v60  ;;  %v2514_v38 = vmul.f32 %v5914_v35, %v7099_v43 }
 0x537   : > { %v5916_v7 = vpop.eup %5915 }
 0x538   : > { %v2517_v10 = vmul.f32 %v5916_v7, %v7107_v3  ;;  %v2516_v16 = vmul.f32 %v5916_v7, %v7105_v49 }
 0x53a   : > { %v2549_v36 = vpack.c.bf16 %v2517_v10, %v2515_v41  ;;  %v2548_v63 = vpack.c.bf16 %v2516_v16, %v2514_v38 }
 0x53c   : > { %2798 = vmatprep.mubr.bf16.mxu0 %v2549_v36 }
 0x53d   : > { %2799 = vmatmul.mubr.bf16.gmra.mxu0 %v2548_v63 }
 0x542   : > { %v5149_v4 = vpop.f32.mrf.mxu0 }
 0x544   : > { %v5150_v20 = vpop.f32.mrf.mxu0 }
 0x545   : > { %v5151_v8 = vadd.f32 %v5150_v20, %v5149_v4 }
 0x546   : > { %v5152_v9 = vpop.f32.mrf.mxu0 }
 0x548   : > { %v5153_v34 = vpop.f32.mrf.mxu0 }
 0x549   : > { %v5154_v31 = vadd.f32 %v5153_v34, %v5152_v9 }
 0x54b   : > { %v2807_v25 = vpack.c.bf16 %v5154_v31, %v5151_v8 }
 0x54c   : > { %v5155_v45 = vpop.f32.mrf.mxu0 }
 0x54d   : > { %5381 = vmatprep.mubr.bf16.mxu1 %v2807_v25 }
 0x54e   : > { %v5156_v60 = vpop.f32.mrf.mxu0 }
 0x54f   : > { %v5157_v13 = vadd.f32 %v5156_v60, %v5155_v45 }
 0x550   : > { %v5158_v46 = vpop.f32.mrf.mxu0 }
 0x552   : > { %v5159_v3 = vpop.f32.mrf.mxu0 }
 0x553   : > { %v5160_v43 = vadd.f32 %v5159_v3, %v5158_v46 }
 0x554   : > { %v5161_v61 = vpop.f32.mrf.mxu0 }
 0x555   : > { %v2808_v49 = vpack.c.bf16 %v5160_v43, %v5157_v13 }
 0x556   : > { %v5162_v0 = vpop.f32.mrf.mxu0 }
 0x557   : > { %5382 = vmatmul.mubr.bf16.vlgmr.msra.gmra.mxu1 %v2808_v49  ;;  %v5163_v12 = vadd.f32 %v5162_v0, %v5161_v61 }
 0x558   : > { %v5164_v15 = vpop.f32.mrf.mxu0 }
 0x55a   : > { %v5165_v50 = vpop.f32.mrf.mxu0 }
 0x55b   : > { %v5166_v17 = vadd.f32 %v5165_v50, %v5164_v15 }
 0x55c   : > { %v5167_v2 = vpop.f32.mrf.mxu0 }
 0x55d   : > { %v2809_v29 = vpack.c.bf16 %v5166_v17, %v5163_v12 }
 0x55e   : > { %v5168_v6 = vpop.f32.mrf.mxu0 }
 0x55f   : > { %5385 = vmatprep.mubr.bf16.mxu1 %v2809_v29  ;;  %v5169_v21 = vadd.f32 %v5168_v6, %v5167_v2 }
 0x560   : > { %v5170_v53 = vpop.f32.mrf.mxu0 }
 0x562   : > { %v5171_v19 = vpop.f32.mrf.mxu0 }
 0x563   : > { %v5172_v22 = vadd.f32 %v5171_v19, %v5170_v53 }
 0x564   : > { %v5173_v18 = vpop.f32.mrf.mxu0 }
 0x565   : > { %v2810_v42 = vpack.c.bf16 %v5172_v22, %v5169_v21 }
 0x566   : > { %v5174_v54 = vpop.f32.mrf.mxu0 }
 0x567   : > { %5386 = vmatmul.mubr.bf16.gmra.mxu1 %v2810_v42  ;;  %v5175_v51 = vadd.f32 %v5174_v54, %v5173_v18 }
 0x568   : > { %v5176_v52 = vpop.f32.mrf.mxu0 }
 0x56a   : > { %v5177_v30 = vpop.f32.mrf.mxu0 }
 0x56b   : > { %v5178_v5 = vadd.f32 %v5177_v30, %v5176_v52 }
 0x56c   : > { %v5179_v55 = vpop.f32.mrf.mxu0 }
 0x56d   : > { %v2811_v28 = vpack.c.bf16 %v5178_v5, %v5175_v51 }
 0x56e   : > { %v5180_v24 = vpop.f32.mrf.mxu0 }
 0x56f   : > { %5389 = vmatprep.mubr.bf16.mxu1 %v2811_v28  ;;  %v5181_v23 = vadd.f32 %v5180_v24, %v5179_v55 }
 0x570   : > { %v5182_v26 = vpop.f32.mrf.mxu0 }
 0x572   : > { %v5183_v27 = vpop.f32.mrf.mxu0 }
 0x573   : > { %v5184_v40 = vadd.f32 %v5183_v27, %v5182_v26 }
 0x574   : > { %v5185_v37 = vpop.f32.mrf.mxu0 }
 0x575   : > { %v2812_v44 = vpack.c.bf16 %v5184_v40, %v5181_v23 }
 0x576   : > { %v5186_v47 = vpop.f32.mrf.mxu0 }
 0x577   : > { %5390 = vmatmul.mubr.bf16.gmra.mxu1 %v2812_v44  ;;  %v5187_v62 = vadd.f32 %v5186_v47, %v5185_v37 }
 0x578   : > { %v5188_v1 = vpop.f32.mrf.mxu0 }
 0x57a   : > { %v5189_v58 = vpop.f32.mrf.mxu0 }
 0x57b   : > { %v5190_v48 = vadd.f32 %v5189_v58, %v5188_v1 }
 0x57c   : > { %v5191_v57 = vpop.f32.mrf.mxu0 }
 0x57d   : > { %v2813_v11 = vpack.c.bf16 %v5190_v48, %v5187_v62 }
 0x57e   : > { %v5192_v39 = vpop.f32.mrf.mxu0 }
 0x57f   : > { %5393 = vmatprep.mubr.bf16.mxu1 %v2813_v11  ;;  %v5193_v56 = vadd.f32 %v5192_v39, %v5191_v57  ;;  %v7162_v11 = vld [vmem:[%s7870_s4] ss:$0 sm:$0xff] }
 0x580   : > { %v5194_v33 = vpop.f32.mrf.mxu0 }
 0x582   : > { %v5195_v14 = vpop.f32.mrf.mxu0 }
 0x583   : > { %v5196_v32 = vadd.f32 %v5195_v14, %v5194_v33 }
 0x584   : > { %v5197_v59 = vpop.f32.mrf.mxu0 }
 0x585   : > { %v2814_v35 = vpack.c.bf16 %v5196_v32, %v5193_v56 }
 0x586   : > { %v5198_v7 = vpop.f32.mrf.mxu0 }
 0x587   : > { %5394 = vmatmul.mubr.bf16.gmra.mxu1 %v2814_v35  ;;  %v5199_v38 = vadd.f32 %v5198_v7, %v5197_v59 }
 0x588   : > { %v5200_v41 = vpop.f32.mrf.mxu0 }
 0x58a   : > { %v5201_v10 = vpop.f32.mrf.mxu0 }
 0x58b   : > { %v5202_v16 = vadd.f32 %v5201_v10, %v5200_v41 }
 0x58c   : > { %v5203_v36 = vpop.f32.mrf.mxu0 }
 0x58d   : > { %v2815_v63 = vpack.c.bf16 %v5202_v16, %v5199_v38 }
 0x58e   : > { %v5204_v4 = vpop.f32.mrf.mxu0 }
 0x58f   : > { %5397 = vmatprep.mubr.bf16.mxu1 %v2815_v63  ;;  %v5205_v34 = vadd.f32 %v5204_v4, %v5203_v36 }
 0x590   : > { %v5206_v20 = vpop.f32.mrf.mxu0 }
 0x592   : > { %v5207_v9 = vpop.f32.mrf.mxu0 }
 0x593   : > { %v5208_v8 = vadd.f32 %v5207_v9, %v5206_v20 }
 0x594   : > { %v5209_v31 = vpop.f32.mrf.mxu0 }
 0x595   : > { %v2816_v25 = vpack.c.bf16 %v5208_v8, %v5205_v34 }
 0x596   : > { %v5210_v45 = vpop.f32.mrf.mxu0 }
 0x597   : > { %5398 = vmatmul.mubr.bf16.gmra.mxu1 %v2816_v25  ;;  %v5211_v3 = vadd.f32 %v5210_v45, %v5209_v31 }
 0x598   : > { %v5212_v60 = vpop.f32.mrf.mxu0 }
 0x59a   : > { %v5213_v46 = vpop.f32.mrf.mxu0 }
 0x59b   : > { %v5214_v13 = vadd.f32 %v5213_v46, %v5212_v60 }
 0x59c   : > { %v5215_v43 = vpop.f32.mrf.mxu0 }
 0x59d   : > { %v2817_v61 = vpack.c.bf16 %v5214_v13, %v5211_v3 }
 0x59e   : > { %v5216_v49 = vpop.f32.mrf.mxu0 }
 0x59f   : > { %5401 = vmatprep.mubr.bf16.mxu1 %v2817_v61  ;;  %v5217_v50 = vadd.f32 %v5216_v49, %v5215_v43 }
 0x5a0   : > { %v5218_v0 = vpop.f32.mrf.mxu0 }
 0x5a2   : > { %v5219_v15 = vpop.f32.mrf.mxu0 }
 0x5a3   : > { %v5220_v12 = vadd.f32 %v5219_v15, %v5218_v0 }
 0x5a5   : > { %v2818_v17 = vpack.c.bf16 %v5220_v12, %v5217_v50 }
 0x5a7   : > { %5402 = vmatmul.mubr.bf16.gmra.mxu1 %v2818_v17 }
 0x5e5   : > { %v5221_v2 = vpop.f32.mrf.mxu0 }
 0x5e7   : > { %v5222_v29 = vpop.f32.mrf.mxu0 }
 0x5e8   : > { %v5223_v19 = vadd.f32 %v5222_v29, %v5221_v2 }
 0x5e9   : > { %v5224_v6 = vpop.f32.mrf.mxu0 }
 0x5eb   : > { %v5225_v53 = vpop.f32.mrf.mxu0 }
 0x5ec   : > { %v5226_v21 = vadd.f32 %v5225_v53, %v5224_v6 }
 0x5ed   : > { %v5227_v22 = vpop.f32.mrf.mxu0 }
 0x5ee   : > { %v2819_v18 = vpack.c.bf16 %v5226_v21, %v5223_v19 }
 0x5ef   : > { %v5228_v42 = vpop.f32.mrf.mxu0 }
 0x5f0   : > { %5405 = vmatprep.mubr.bf16.mxu1 %v2819_v18  ;;  %v5229_v30 = vadd.f32 %v5228_v42, %v5227_v22 }
 0x5f1   : > { %v5230_v54 = vpop.f32.mrf.mxu0 }
 0x5f3   : > { %v5231_v52 = vpop.f32.mrf.mxu0 }
 0x5f4   : > { %v5232_v51 = vadd.f32 %v5231_v52, %v5230_v54 }
 0x5f5   : > { %v5233_v5 = vpop.f32.mrf.mxu0 }
 0x5f6   : > { %v2820_v55 = vpack.c.bf16 %v5232_v51, %v5229_v30 }
 0x5f7   : > { %v5234_v28 = vpop.f32.mrf.mxu0 }
 0x5f8   : > { %5406 = vmatmul.mubr.bf16.gmra.mxu1 %v2820_v55  ;;  %v5235_v27 = vadd.f32 %v5234_v28, %v5233_v5  ;;  %v5709_v5 = vld [vmem:[#allocation11 + $0x38] sm:$0xff]   ;;  %v5710_v55 = vld [vmem:[#allocation11 + $0x30] sm:$0xff]  }
 0x5f9   : > { %v5236_v24 = vpop.f32.mrf.mxu0  ;;  %5413 = vmatprep.subr.bf16.mxu0 %v5709_v5 }
 0x5fa   : > { %5414 = vmatpush3.bf16.msra.mxu0 %v5709_v5 }
 0x5fb   : > { %v5237_v26 = vpop.f32.mrf.mxu0  ;;  %5415 = vmatprep.subr.bf16.mxu0 %v5710_v55 }
 0x5fc   : > { %v5238_v23 = vadd.f32 %v5237_v26, %v5236_v24 }
 0x5fd   : > { %v5239_v40 = vpop.f32.mrf.mxu0 }
 0x5fe   : > { %v2821_v37 = vpack.c.bf16 %v5238_v23, %v5235_v27  ;;  %5416 = vmatpush3.bf16.msra.mxu0 %v5710_v55 }
 0x5ff   : > { %v5240_v44 = vpop.f32.mrf.mxu0 }
 0x600   : > { %5409 = vmatprep.mubr.bf16.mxu1 %v2821_v37  ;;  %v5241_v58 = vadd.f32 %v5240_v44, %v5239_v40 }
 0x601   : > { %v5242_v47 = vpop.f32.mrf.mxu0 }
 0x603   : > { %v5243_v1 = vpop.f32.mrf.mxu0 }
 0x604   : > { %v5244_v62 = vadd.f32 %v5243_v1, %v5242_v47 }
 0x606   : > { %v2822_v48 = vpack.c.bf16 %v5244_v62, %v5241_v58 }
 0x608   : > { %5410 = vmatmul.mubr.bf16.gmra.mxu1 %v2822_v48 }
 0x617   : > { %v5383_v57 = vpop.f32.mrf.mxu1 }
 0x618   : > { %v7169_v32 = vadd.f32 %v5383_v57, %v7162_v11 }
 0x619   : > { %v2928_v39 = vpop.f32.mrf.mxu1 }
 0x61a   : > { %v7165_v33 = vadd.f32 %v7162_v11, %v2928_v39 }
 0x61b   : > { %v5384_v14 = vpop.f32.mrf.mxu1 }
 0x61c   : > { %3055 = vadd.xlane.f32.xlu0 %v7165_v33  ;;  %v7177_v35 = vadd.f32 %v5384_v14, %v7162_v11 }
 0x61d   : > { %v2931_v56 = vpop.f32.mrf.mxu1 }
 0x61e   : > { %v7172_v59 = vadd.f32 %v7162_v11, %v2931_v56 }
 0x620   : > { %3059 = vadd.xlane.f32.xlu0 %v7169_v32  ;;  %3057 = vadd.xlane.f32.xlu1 %v7172_v59 }
 0x624   : > { %3061 = vadd.xlane.f32.xlu1 %v7177_v35 }
 0x627   : > { %v5387_v7 = vpop.f32.mrf.mxu1 }
 0x628   : > { %v7185_v36 = vadd.f32 %v5387_v7, %v7162_v11 }
 0x629   : > { %v2944_v41 = vpop.f32.mrf.mxu1 }
 0x62a   : > { %v7181_v10 = vadd.f32 %v7162_v11, %v2944_v41 }
 0x62b   : > { %v5388_v38 = vpop.f32.mrf.mxu1 }
 0x62c   : > { %3063 = vadd.xlane.f32.xlu0 %v7181_v10  ;;  %v7193_v4 = vadd.f32 %v5388_v38, %v7162_v11 }
 0x62d   : > { %v2947_v16 = vpop.f32.mrf.mxu1 }
 0x62e   : > { %v7188_v63 = vadd.f32 %v7162_v11, %v2947_v16 }
 0x630   : > { %3067 = vadd.xlane.f32.xlu0 %v7185_v36  ;;  %3065 = vadd.xlane.f32.xlu1 %v7188_v63 }
 0x634   : > { %3069 = vadd.xlane.f32.xlu1 %v7193_v4 }
 0x637   : > { %v5391_v20 = vpop.f32.mrf.mxu1 }
 0x638   : > { %v7201_v25 = vadd.f32 %v5391_v20, %v7162_v11 }
 0x639   : > { %v2960_v9 = vpop.f32.mrf.mxu1 }
 0x63a   : > { %v7197_v34 = vadd.f32 %v7162_v11, %v2960_v9 }
 0x63b   : > { %v5392_v8 = vpop.f32.mrf.mxu1 }
 0x63c   : > { %3071 = vadd.xlane.f32.xlu0 %v7197_v34  ;;  %v7209_v60 = vadd.f32 %v5392_v8, %v7162_v11 }
 0x63d   : > { %v2963_v31 = vpop.f32.mrf.mxu1 }
 0x63e   : > { %v7204_v45 = vadd.f32 %v7162_v11, %v2963_v31 }
 0x640   : > { %3073 = vadd.xlane.f32.xlu1 %v7204_v45  ;;  %3075 = vadd.xlane.f32.xlu0 %v7201_v25 }
 0x644   : > { %3077 = vadd.xlane.f32.xlu1 %v7209_v60 }
 0x647   : > { %v5395_v46 = vpop.f32.mrf.mxu1 }
 0x648   : > { %v7217_v49 = vadd.f32 %v5395_v46, %v7162_v11 }
 0x649   : > { %v2976_v3 = vpop.f32.mrf.mxu1 }
 0x64a   : > { %v7213_v13 = vadd.f32 %v7162_v11, %v2976_v3  ;;  %7963 = vst [vmem:[#allocation23_spill] sm:$0xff] %v7217_v49  ;;  %v5711_v3 = vld [vmem:[#allocation11 + $0x28] sm:$0xff]  }
 0x64b   : > { %v5396_v43 = vpop.f32.mrf.mxu1  ;;  %5417 = vmatprep.subr.bf16.mxu0 %v5711_v3 }
 0x64c   : > { %7962 = vst [vmem:[#allocation22_spill] sm:$0xff] %v7213_v13  ;;  %3079 = vadd.xlane.f32.xlu0 %v7213_v13  ;;  %v7225_v15 = vadd.f32 %v5396_v43, %v7162_v11  ;;  %5418 = vmatpush3.bf16.msra.mxu0 %v5711_v3 }
 0x64d   : > { %v2979_v61 = vpop.f32.mrf.mxu1 }
 0x64e   : > { %v7220_v0 = vadd.f32 %v7162_v11, %v2979_v61  ;;  %7965 = vst [vmem:[#allocation25_spill] sm:$0xff] %v7225_v15 }
 0x650   : > { %7964 = vst [vmem:[#allocation24_spill] sm:$0xff] %v7220_v0  ;;  %3081 = vadd.xlane.f32.xlu1 %v7220_v0  ;;  %3083 = vadd.xlane.f32.xlu0 %v7217_v49 }
 0x654   : > { %3085 = vadd.xlane.f32.xlu1 %v7225_v15 }
 0x657   : > { %v5399_v50 = vpop.f32.mrf.mxu1 }
 0x658   : > { %v7233_v6 = vadd.f32 %v5399_v50, %v7162_v11 }
 0x659   : > { %v2992_v12 = vpop.f32.mrf.mxu1 }
 0x65a   : > { %v7229_v17 = vadd.f32 %v7162_v11, %v2992_v12  ;;  %7967 = vst [vmem:[#allocation27_spill] sm:$0xff] %v7233_v6 }
 0x65b   : > { %v5400_v2 = vpop.f32.mrf.mxu1 }
 0x65c   : > { %7966 = vst [vmem:[#allocation26_spill] sm:$0xff] %v7229_v17  ;;  %3087 = vadd.xlane.f32.xlu0 %v7229_v17  ;;  %v7241_v19 = vadd.f32 %v5400_v2, %v7162_v11 }
 0x65d   : > { %v2995_v29 = vpop.f32.mrf.mxu1 }
 0x65e   : > { %v7236_v53 = vadd.f32 %v7162_v11, %v2995_v29  ;;  %7969 = vst [vmem:[#allocation30_spill] sm:$0xff] %v7241_v19 }
 0x660   : > { %7968 = vst [vmem:[#allocation28_spill] sm:$0xff] %v7236_v53  ;;  %3089 = vadd.xlane.f32.xlu1 %v7236_v53  ;;  %3091 = vadd.xlane.f32.xlu0 %v7233_v6 }
 0x664   : > { %3093 = vadd.xlane.f32.xlu1 %v7241_v19 }
 0x667   : > { %v5403_v21 = vpop.f32.mrf.mxu1 }
 0x668   : > { %v7249_v52 = vadd.f32 %v5403_v21, %v7162_v11 }
 0x669   : > { %v3008_v22 = vpop.f32.mrf.mxu1 }
 0x66a   : > { %v7245_v18 = vadd.f32 %v7162_v11, %v3008_v22  ;;  %7971 = vst [vmem:[#allocation21_spill] sm:$0xff] %v7249_v52 }
 0x66b   : > { %v5404_v42 = vpop.f32.mrf.mxu1 }
 0x66c   : > { %7970 = vst [vmem:[#allocation29_spill] sm:$0xff] %v7245_v18  ;;  %3095 = vadd.xlane.f32.xlu0 %v7245_v18  ;;  %v7257_v51 = vadd.f32 %v5404_v42, %v7162_v11 }
 0x66d   : > { %v3011_v54 = vpop.f32.mrf.mxu1 }
 0x66e   : > { %v7252_v30 = vadd.f32 %v7162_v11, %v3011_v54  ;;  %7973 = vst [vmem:[#allocation34_spill] sm:$0xff] %v7257_v51 }
 0x670   : > { %7972 = vst [vmem:[#allocation32_spill] sm:$0xff] %v7252_v30  ;;  %3097 = vadd.xlane.f32.xlu1 %v7252_v30  ;;  %3099 = vadd.xlane.f32.xlu0 %v7249_v52 }
 0x674   : > { %3101 = vadd.xlane.f32.xlu1 %v7257_v51 }
 0x6a5   : > { %v3056_v23 = vpop.xlane.xlu0 %3055 }
 0x6a6   : > { %v3120_v14 = vmul.f32 0.0078125, %v3056_v23 }
 0x6a8   : > { %v7281_v9 = vsub.f32 %v7165_v33, %v3120_v14 }
 0x6a9   : > { %v3058_v47 = vpop.xlane.xlu1 %3057  ;;  %v3060_v58 = vpop.xlane.xlu0 %3059 }
 0x6aa   : > { %v3122_v38 = vmul.f32 0.0078125, %v3060_v58  ;;  %v3121_v8 = vmul.f32 0.0078125, %v3058_v47  ;;  %v3184_v22 = vmul.f32 %v7281_v9, %v7281_v9 }
 0x6ac   : > { %v7292_v43 = vsub.f32 %v7169_v32, %v3122_v38  ;;  %v7295_v2 = vsub.f32 %v7172_v59, %v3121_v8 }
 0x6ad   : > { %v3062_v62 = vpop.xlane.xlu1 %3061 }
 0x6ae   : > { %v3123_v61 = vmul.f32 0.0078125, %v3062_v62  ;;  %v3186_v5 = vmul.f32 %v7292_v43, %v7292_v43 }
 0x6b0   : > { %v7304_v42 = vsub.f32 %v7177_v35, %v3123_v61 }
 0x6b5   : > { %v3064_v48 = vpop.xlane.xlu0 %3063 }
 0x6b6   : > { %v3124_v29 = vmul.f32 0.0078125, %v3064_v48 }
 0x6b8   : > { %v5407_v28 = vpop.f32.mrf.mxu1  ;;  %v7309_v55 = vsub.f32 %v7181_v10, %v3124_v29 }
 0x6b9   : > { %v7265_v37 = vadd.f32 %v5407_v28, %v7162_v11  ;;  %v3066_v7 = vpop.xlane.xlu1 %3065  ;;  %v3068_v16 = vpop.xlane.xlu0 %3067 }
 0x6ba   : > { %v3024_v24 = vpop.f32.mrf.mxu1  ;;  %v3125_v28 = vmul.f32 0.0078125, %v3066_v7  ;;  %v3188_v48 = vmul.f32 %v7309_v55, %v7309_v55 }
 0x6bb   : > { %v7261_v26 = vadd.f32 %v7162_v11, %v3024_v24  ;;  %7975 = vst [vmem:[#allocation31_spill] sm:$0xff] %v7265_v37  ;;  %v3185_v24 = vmul.f32 %v7295_v2, %v7295_v2 }
 0x6bc   : > { %v5408_v27 = vpop.f32.mrf.mxu1  ;;  %v7319_v58 = vsub.f32 %v7188_v63, %v3125_v28 }
 0x6bd   : > { %7974 = vst [vmem:[#allocation33_spill] sm:$0xff] %v7261_v26  ;;  %3103 = vadd.xlane.f32.xlu0 %v7261_v26  ;;  %v7273_v1 = vadd.f32 %v5408_v27, %v7162_v11  ;;  %v3070_v50 = vpop.xlane.xlu1 %3069 }
 0x6be   : > { %v3027_v40 = vpop.f32.mrf.mxu1  ;;  %v3127_v23 = vmul.f32 0.0078125, %v3070_v50 }
 0x6bf   : > { %v7268_v44 = vadd.f32 %v7162_v11, %v3027_v40  ;;  %7977 = vst [vmem:[#allocation36_spill] sm:$0xff] %v7273_v1  ;;  %v3187_v40 = vmul.f32 %v7304_v42, %v7304_v42 }
 0x6c0   : > { %v7324_v14 = vsub.f32 %v7193_v4, %v3127_v23 }
 0x6c1   : > { %7976 = vst [vmem:[#allocation35_spill] sm:$0xff] %v7268_v44  ;;  %3105 = vadd.xlane.f32.xlu1 %v7268_v44  ;;  %3107 = vadd.xlane.f32.xlu0 %v7265_v37 }
 0x6c2   : > { %v3191_v50 = vmul.f32 %v7324_v14, %v7324_v14 }
 0x6c5   : > { %3109 = vadd.xlane.f32.xlu1 %v7273_v1  ;;  %v3072_v12 = vpop.xlane.xlu0 %3071 }
 0x6c6   : > { %v3128_v62 = vmul.f32 0.0078125, %v3072_v12 }
 0x6c8   : > { %v5411_v57 = vpop.f32.mrf.mxu1 }
 0x6c9   : > { %v7284_v31 = vadd.f32 %v5411_v57, %v7162_v11  ;;  %v3074_v54 = vpop.xlane.xlu1 %3073  ;;  %v3076_v27 = vpop.xlane.xlu0 %3075 }
 0x6ca   : > { %v3040_v39 = vpop.f32.mrf.mxu1  ;;  %v3130_v7 = vmul.f32 0.0078125, %v3076_v27  ;;  %v3129_v38 = vmul.f32 0.0078125, %v3074_v54 }
 0x6cb   : > { %v7277_v56 = vadd.f32 %v7162_v11, %v3040_v39  ;;  %7979 = vst [vmem:[#allocation38_spill] sm:$0xff] %v7284_v31 }
 0x6cc   : > { %v5412_v41 = vpop.f32.mrf.mxu1  ;;  %v7334_v3 = vsub.f32 %v7201_v25, %v3130_v7  ;;  %v7339_v12 = vsub.f32 %v7204_v45, %v3129_v38 }
 0x6cd   : > { %7978 = vst [vmem:[#allocation37_spill] sm:$0xff] %v7277_v56  ;;  %3111 = vadd.xlane.f32.xlu0 %v7277_v56  ;;  %v7298_v21 = vadd.f32 %v5412_v41, %v7162_v11  ;;  %v3078_v57 = vpop.xlane.xlu1 %3077  ;;  %v7327_v41 = vsub.f32 %v7197_v34, %v3128_v62 }
 0x6ce   : > { %v3043_v20 = vpop.f32.mrf.mxu1  ;;  %v3131_v29 = vmul.f32 0.0078125, %v3078_v57  ;;  %v3193_v62 = vmul.f32 %v7339_v12, %v7339_v12 }
 0x6cf   : > { %v7287_v46 = vadd.f32 %v7162_v11, %v3043_v20  ;;  %7981 = vst [vmem:[#allocation40_spill] sm:$0xff] %v7298_v21  ;;  %v3126_v11 = vmul.f32 0.0078125, %v3068_v16  ;;  %v3189_v20 = vmul.f32 %v7319_v58, %v7319_v58  ;;  %v3192_v54 = vmul.f32 %v7327_v41, %v7327_v41 }
 0x6d0   : > { %v7346_v27 = vsub.f32 %v7209_v60, %v3131_v29 }
 0x6d1   : > { %7980 = vst [vmem:[#allocation39_spill] sm:$0xff] %v7287_v46  ;;  %3113 = vadd.xlane.f32.xlu1 %v7287_v46  ;;  %3115 = vadd.xlane.f32.xlu0 %v7284_v31  ;;  %v7316_v47 = vsub.f32 %v7185_v36, %v3126_v11 }
 0x6d3   : > { %v3190_v16 = vmul.f32 %v7316_v47, %v7316_v47 }
 0x6d5   : > { %3117 = vadd.xlane.f32.xlu1 %v7298_v21  ;;  %3216 = vadd.xlane.f32.xlu0 %v3184_v22  ;;  %v3080_v39 = vpop.xlane.xlu0 %3079 }
 0x6d6   : > { %v3132_v22 = vmul.f32 0.0078125, %v3080_v39 }
 0x6d8   : > { %v7349_v23 = vsub.f32 %v7213_v13, %v3132_v22 }
 0x6d9   : > { %3220 = vadd.xlane.f32.xlu0 %v3186_v5  ;;  %3218 = vadd.xlane.f32.xlu1 %v3185_v24  ;;  %v3082_v8 = vpop.xlane.xlu1 %3081  ;;  %v3084_v61 = vpop.xlane.xlu0 %3083  ;;  %v3194_v24 = vmul.f32 %v7334_v3, %v7334_v3 }
 0x6da   : > { %v3134_v5 = vmul.f32 0.0078125, %v3084_v61 }
 0x6dc   : > { %v7354_v57 = vsub.f32 %v7217_v49, %v3134_v5 }
 0x6dd   : > { %3224 = vadd.xlane.f32.xlu0 %v3188_v48  ;;  %3222 = vadd.xlane.f32.xlu1 %v3187_v40  ;;  %v3086_v11 = vpop.xlane.xlu1 %3085  ;;  %v3133_v40 = vmul.f32 0.0078125, %v3082_v8  ;;  %v5712_v48 = vld [vmem:[#allocation11 + $0x20] sm:$0xff]   ;;  %v3195_v8 = vmul.f32 %v7346_v27, %v7346_v27 }
 0x6de   : > { %v3135_v39 = vmul.f32 0.0078125, %v3086_v11  ;;  %5419 = vmatprep.subr.bf16.mxu0 %v5712_v48  ;;  %v3198_v22 = vmul.f32 %v7354_v57, %v7354_v57 }
 0x6df   : > { %v7357_v38 = vsub.f32 %v7220_v0, %v3133_v40  ;;  %5420 = vmatpush3.bf16.msra.mxu0 %v5712_v48  ;;  %v5714_v40 = vld [vmem:[#allocation11 + $0x10] sm:$0xff]  }
 0x6e0   : > { %v7364_v29 = vsub.f32 %v7225_v15, %v3135_v39 }
 0x6e1   : > { %3228 = vadd.xlane.f32.xlu0 %v3190_v16  ;;  %3226 = vadd.xlane.f32.xlu1 %v3189_v20  ;;  %v3196_v20 = vmul.f32 %v7349_v23, %v7349_v23 }
 0x6e5   : > { %3232 = vadd.xlane.f32.xlu0 %v3192_v54  ;;  %3230 = vadd.xlane.f32.xlu1 %v3191_v50  ;;  %v3088_v28 = vpop.xlane.xlu0 %3087  ;;  %v5713_v50 = vld [vmem:[#allocation11 + $0x18] sm:$0xff]  }
 0x6e6   : > { %v3136_v16 = vmul.f32 0.0078125, %v3088_v28  ;;  %v3197_v28 = vmul.f32 %v7357_v38, %v7357_v38  ;;  %5421 = vmatprep.subr.bf16.mxu0 %v5713_v50 }
 0x6e7   : > { %5422 = vmatpush3.bf16.msra.mxu0 %v5713_v50 }
 0x6e8   : > { %v7369_v54 = vsub.f32 %v7229_v17, %v3136_v16  ;;  %5423 = vmatprep.subr.bf16.mxu0 %v5714_v40 }
 0x6e9   : > { %3236 = vadd.xlane.f32.xlu0 %v3194_v24  ;;  %3234 = vadd.xlane.f32.xlu1 %v3193_v62  ;;  %v3090_v7 = vpop.xlane.xlu1 %3089  ;;  %v3092_v61 = vpop.xlane.xlu0 %3091  ;;  %v3199_v62 = vmul.f32 %v7364_v29, %v7364_v29 }
 0x6ea   : > { %v3138_v5 = vmul.f32 0.0078125, %v3092_v61  ;;  %v3137_v11 = vmul.f32 0.0078125, %v3090_v7  ;;  %v3200_v7 = vmul.f32 %v7369_v54, %v7369_v54 }
 0x6eb   : > { %5424 = vmatpush3.bf16.msra.mxu0 %v5714_v40  ;;  %v5716_v40 = vld [vmem:[#allocation11] sm:$0xff]  }
 0x6ec   : > { %v7376_v48 = vsub.f32 %v7233_v6, %v3138_v5  ;;  %v7379_v39 = vsub.f32 %v7236_v53, %v3137_v11 }
 0x6ed   : > { %3240 = vadd.xlane.f32.xlu0 %v3196_v20  ;;  %3238 = vadd.xlane.f32.xlu1 %v3195_v8  ;;  %v3094_v24 = vpop.xlane.xlu1 %3093  ;;  %v5715_v8 = vld [vmem:[#allocation11 + $0x8] sm:$0xff]  }
 0x6ee   : > { %v3139_v16 = vmul.f32 0.0078125, %v3094_v24  ;;  %v3201_v5 = vmul.f32 %v7379_v39, %v7379_v39  ;;  %5425 = vmatprep.subr.bf16.mxu0 %v5715_v8 }
 0x6ef   : > { %5426 = vmatpush3.bf16.msra.mxu0 %v5715_v8 }
 0x6f0   : > { %v7384_v50 = vsub.f32 %v7241_v19, %v3139_v16  ;;  %5427 = vmatprep.subr.bf16.mxu0 %v5716_v40 }
 0x6f1   : > { %3244 = vadd.xlane.f32.xlu0 %v3198_v22  ;;  %3242 = vadd.xlane.f32.xlu1 %v3197_v28  ;;  %v3202_v22 = vmul.f32 %v7376_v48, %v7376_v48 }
 0x6f3   : > { %5428 = vmatpush3.bf16.msra.mxu0 %v5716_v40 }
 0x6f5   : > { %v3096_v20 = vpop.xlane.xlu0 %3095  ;;  %3248 = vadd.xlane.f32.xlu0 %v3200_v7  ;;  %3246 = vadd.xlane.f32.xlu1 %v3199_v62 }
 0x6f6   : > { %v3140_v61 = vmul.f32 0.0078125, %v3096_v20  ;;  %v3203_v20 = vmul.f32 %v7384_v50, %v7384_v50 }
 0x6f8   : > { %v7391_v11 = vsub.f32 %v7245_v18, %v3140_v61 }
 0x6f9   : > { %v3100_v28 = vpop.xlane.xlu0 %3099  ;;  %v3098_v24 = vpop.xlane.xlu1 %3097  ;;  %3252 = vadd.xlane.f32.xlu0 %v3202_v22  ;;  %3250 = vadd.xlane.f32.xlu1 %v3201_v5 }
 0x6fa   : > { %v3142_v62 = vmul.f32 0.0078125, %v3100_v28  ;;  %v3141_v7 = vmul.f32 0.0078125, %v3098_v24  ;;  %v3204_v16 = vmul.f32 %v7391_v11, %v7391_v11 }
 0x6fc   : > { %v7398_v15 = vsub.f32 %v7249_v52, %v3142_v62  ;;  %v7401_v61 = vsub.f32 %v7252_v30, %v3141_v7 }
 0x6fd   : > { %v3102_v8 = vpop.xlane.xlu1 %3101  ;;  %3256 = vadd.xlane.f32.xlu0 %v3204_v16  ;;  %3254 = vadd.xlane.f32.xlu1 %v3203_v20 }
 0x6fe   : > { %v3143_v22 = vmul.f32 0.0078125, %v3102_v8  ;;  %v3206_v5 = vmul.f32 %v7398_v15, %v7398_v15  ;;  %v3205_v28 = vmul.f32 %v7401_v61, %v7401_v61 }
 0x700   : > { %v7408_v24 = vsub.f32 %v7257_v51, %v3143_v22 }
 0x701   : > { %3260 = vadd.xlane.f32.xlu0 %v3206_v5  ;;  %3258 = vadd.xlane.f32.xlu1 %v3205_v28 }
 0x702   : > { %v3207_v62 = vmul.f32 %v7408_v24, %v7408_v24 }
 0x705   : > { %3262 = vadd.xlane.f32.xlu1 %v3207_v62 }
 0x746   : > { %v3104_v40 = vpop.xlane.xlu0 %3103 }
 0x747   : > { %v3144_v7 = vmul.f32 0.0078125, %v3104_v40 }
 0x749   : > { %v7413_v16 = vsub.f32 %v7261_v26, %v3144_v7 }
 0x74a   : > { %v3108_v20 = vpop.xlane.xlu0 %3107  ;;  %v3106_v8 = vpop.xlane.xlu1 %3105 }
 0x74b   : > { %v3146_v52 = vmul.f32 0.0078125, %v3108_v20  ;;  %v3145_v30 = vmul.f32 0.0078125, %v3106_v8  ;;  %v3208_v18 = vmul.f32 %v7413_v16, %v7413_v16 }
 0x74d   : > { %v7418_v22 = vsub.f32 %v7265_v37, %v3146_v52  ;;  %v7421_v5 = vsub.f32 %v7268_v44, %v3145_v30  ;;  %3264 = vadd.xlane.f32.xlu0 %v3208_v18 }
 0x74e   : > { %v3110_v28 = vpop.xlane.xlu1 %3109 }
 0x74f   : > { %v3147_v62 = vmul.f32 0.0078125, %v3110_v28  ;;  %v3210_v40 = vmul.f32 %v7418_v22, %v7418_v22  ;;  %v3209_v7 = vmul.f32 %v7421_v5, %v7421_v5 }
 0x751   : > { %v7428_v20 = vsub.f32 %v7273_v1, %v3147_v62  ;;  %3268 = vadd.xlane.f32.xlu0 %v3210_v40  ;;  %3266 = vadd.xlane.f32.xlu1 %v3209_v7 }
 0x753   : > { %v3211_v52 = vmul.f32 %v7428_v20, %v7428_v20 }
 0x755   : > { %3270 = vadd.xlane.f32.xlu1 %v3211_v52 }
 0x756   : > { %v3112_v30 = vpop.xlane.xlu0 %3111 }
 0x757   : > { %v3148_v8 = vmul.f32 0.0078125, %v3112_v30 }
 0x759   : > { %v7433_v18 = vsub.f32 %v7277_v56, %v3148_v8 }
 0x75a   : > { %v3116_v28 = vpop.xlane.xlu0 %3115  ;;  %v3114_v37 = vpop.xlane.xlu1 %3113 }
 0x75b   : > { %v3150_v44 = vmul.f32 0.0078125, %v3116_v28  ;;  %v3149_v26 = vmul.f32 0.0078125, %v3114_v37  ;;  %v3212_v51 = vmul.f32 %v7433_v18, %v7433_v18 }
 0x75d   : > { %v7438_v62 = vsub.f32 %v7284_v31, %v3150_v44  ;;  %v7441_v40 = vsub.f32 %v7287_v46, %v3149_v26  ;;  %3272 = vadd.xlane.f32.xlu0 %v3212_v51 }
 0x75e   : > { %v3217_v7 = vpop.xlane.xlu0 %3216  ;;  %v3118_v52 = vpop.xlane.xlu1 %3117 }
 0x75f   : > { %v3280_v30 = vmul.f32 0.0078125, %v3217_v7  ;;  %v3151_v1 = vmul.f32 0.0078125, %v3118_v52  ;;  %v3214_v8 = vmul.f32 %v7438_v62, %v7438_v62  ;;  %v3213_v37 = vmul.f32 %v7441_v40, %v7441_v40 }
 0x761   : > { %v7448_v28 = vsub.f32 %v7298_v21, %v3151_v1  ;;  %3276 = vadd.xlane.f32.xlu0 %v3214_v8  ;;  %3274 = vadd.xlane.f32.xlu1 %v3213_v37  ;;  %v3312_v44 = vadd.f32 1e-05, %v3280_v30 }
 0x762   : > { %v3221_v31 = vpop.xlane.xlu0 %3220  ;;  %v3219_v26 = vpop.xlane.xlu1 %3218 }
 0x763   : > { %v3282_v46 = vmul.f32 0.0078125, %v3221_v31  ;;  %v3281_v51 = vmul.f32 0.0078125, %v3219_v26  ;;  %v3215_v7 = vmul.f32 %v7448_v28, %v7448_v28  ;;  %5917 = vrsqrt.f32 %v3312_v44 }
 0x765   : > { %v3313_v52 = vadd.f32 1e-05, %v3281_v51  ;;  %3278 = vadd.xlane.f32.xlu1 %v3215_v7  ;;  %v3314_v56 = vadd.f32 1e-05, %v3282_v46 }
 0x766   : > { %v3225_v19 = vpop.xlane.xlu0 %3224  ;;  %v3223_v49 = vpop.xlane.xlu1 %3222 }
 0x767   : > { %v3284_v6 = vmul.f32 0.0078125, %v3225_v19  ;;  %v3283_v0 = vmul.f32 0.0078125, %v3223_v49  ;;  %5919 = vrsqrt.f32 %v3313_v52 }
 0x768   : > { %5921 = vrsqrt.f32 %v3314_v56 }
 0x769   : > { %v3315_v1 = vadd.f32 1e-05, %v3283_v0  ;;  %v3316_v8 = vadd.f32 1e-05, %v3284_v6 }
 0x76a   : > { %v3229_v30 = vpop.xlane.xlu0 %3228  ;;  %v3227_v37 = vpop.xlane.xlu1 %3226 }
 0x76b   : > { %v3286_v21 = vmul.f32 0.0078125, %v3229_v30  ;;  %v3285_v31 = vmul.f32 0.0078125, %v3227_v37  ;;  %5923 = vrsqrt.f32 %v3315_v1 }
 0x76c   : > { %5925 = vrsqrt.f32 %v3316_v8 }
 0x76d   : > { %v3317_v26 = vadd.f32 1e-05, %v3285_v31  ;;  %v3318_v53 = vadd.f32 1e-05, %v3286_v21 }
 0x76e   : > { %v3233_v51 = vpop.xlane.xlu0 %3232  ;;  %v3231_v7 = vpop.xlane.xlu1 %3230 }
 0x76f   : > { %v3288_v44 = vmul.f32 0.0078125, %v3233_v51  ;;  %v3287_v46 = vmul.f32 0.0078125, %v3231_v7  ;;  %5927 = vrsqrt.f32 %v3317_v26 }
 0x770   : > { %5929 = vrsqrt.f32 %v3318_v53  ;;  %v5918_v56 = vpop.eup %5917 }
 0x771   : > { %v3319_v13 = vadd.f32 1e-05, %v3287_v46  ;;  %v3320_v49 = vadd.f32 1e-05, %v3288_v44  ;;  %v3376_v31 = vmul.f32 %v5918_v56, %v7281_v9 }
 0x772   : > { %v3237_v19 = vpop.xlane.xlu0 %3236  ;;  %v3235_v0 = vpop.xlane.xlu1 %3234 }
 0x773   : > { %v3290_v6 = vmul.f32 0.0078125, %v3237_v19  ;;  %v3289_v52 = vmul.f32 0.0078125, %v3235_v0  ;;  %5931 = vrsqrt.f32 %v3319_v13 }
 0x774   : > { %v5920_v30 = vpop.eup %5919  ;;  %5933 = vrsqrt.f32 %v3320_v49 }
 0x775   : > { %v3321_v37 = vadd.f32 1e-05, %v3289_v52  ;;  %v3322_v1 = vadd.f32 1e-05, %v3290_v6  ;;  %v3377_v51 = vmul.f32 %v5920_v30, %v7295_v2  ;;  %v5922_v26 = vpop.eup %5921 }
 0x776   : > { %v3241_v8 = vpop.xlane.xlu0 %3240  ;;  %v3239_v21 = vpop.xlane.xlu1 %3238  ;;  %v3378_v19 = vmul.f32 %v5922_v26, %v7292_v43 }
 0x777   : > { %v3292_v7 = vmul.f32 0.0078125, %v3241_v8  ;;  %v3291_v53 = vmul.f32 0.0078125, %v3239_v21  ;;  %5935 = vrsqrt.f32 %v3321_v37  ;;  %v3408_v44 = vpack.c.bf16 %v3377_v51, %v3376_v31 }
 0x778   : > { %v5924_v46 = vpop.eup %5923  ;;  %5937 = vrsqrt.f32 %v3322_v1 }
 0x779   : > { %v3323_v17 = vadd.f32 1e-05, %v3291_v53  ;;  %v3379_v13 = vmul.f32 %v5924_v46, %v7304_v42  ;;  %v3324_v49 = vadd.f32 1e-05, %v3292_v7  ;;  %5429 = vmatprep.mubr.bf16.mxu0 %v3408_v44  ;;  %v5926_v52 = vpop.eup %5925 }
 0x77a   : > { %v3245_v0 = vpop.xlane.xlu0 %3244  ;;  %v3243_v6 = vpop.xlane.xlu1 %3242  ;;  %v3380_v43 = vmul.f32 %v5926_v52, %v7309_v55 }
 0x77b   : > { %v3294_v9 = vmul.f32 0.0078125, %v3245_v0  ;;  %v3293_v56 = vmul.f32 0.0078125, %v3243_v6  ;;  %5939 = vrsqrt.f32 %v3323_v17  ;;  %v3409_v2 = vpack.c.bf16 %v3379_v13, %v3378_v19 }
 0x77c   : > { %v5928_v30 = vpop.eup %5927  ;;  %5941 = vrsqrt.f32 %v3324_v49 }
 0x77d   : > { %v3325_v8 = vadd.f32 1e-05, %v3293_v56  ;;  %v3326_v37 = vadd.f32 1e-05, %v3294_v9  ;;  %5430 = vmatmul.mubr.bf16.vlgmr.msra.gmra.mxu0 %v3409_v2  ;;  %v3381_v42 = vmul.f32 %v5928_v30, %v7319_v58  ;;  %v5930_v1 = vpop.eup %5929 }
 0x77e   : > { %v3249_v21 = vpop.xlane.xlu0 %3248  ;;  %v3247_v31 = vpop.xlane.xlu1 %3246  ;;  %v3382_v13 = vmul.f32 %v5930_v1, %v7316_v47 }
 0x77f   : > { %v3296_v51 = vmul.f32 0.0078125, %v3249_v21  ;;  %v3295_v26 = vmul.f32 0.0078125, %v3247_v31  ;;  %5943 = vrsqrt.f32 %v3325_v8  ;;  %v3410_v7 = vpack.c.bf16 %v3381_v42, %v3380_v43 }
 0x780   : > { %v5932_v53 = vpop.eup %5931  ;;  %5945 = vrsqrt.f32 %v3326_v37 }
 0x781   : > { %v3327_v44 = vadd.f32 1e-05, %v3295_v26  ;;  %v3328_v17 = vadd.f32 1e-05, %v3296_v51  ;;  %5433 = vmatprep.mubr.bf16.mxu0 %v3410_v7  ;;  %v3383_v49 = vmul.f32 %v5932_v53, %v7324_v14  ;;  %v5934_v0 = vpop.eup %5933 }
 0x782   : > { %v3253_v46 = vpop.xlane.xlu0 %3252  ;;  %v3251_v19 = vpop.xlane.xlu1 %3250  ;;  %v3384_v8 = vmul.f32 %v5934_v0, %v7327_v41 }
 0x783   : > { %v3298_v55 = vmul.f32 0.0078125, %v3253_v46  ;;  %v3297_v6 = vmul.f32 0.0078125, %v3251_v19  ;;  %5947 = vrsqrt.f32 %v3327_v44  ;;  %v3411_v58 = vpack.c.bf16 %v3383_v49, %v3382_v13 }
 0x784   : > { %v5936_v52 = vpop.eup %5935  ;;  %5949 = vrsqrt.f32 %v3328_v17 }
 0x785   : > { %v3329_v9 = vadd.f32 1e-05, %v3297_v6  ;;  %v3330_v56 = vadd.f32 1e-05, %v3298_v55  ;;  %5434 = vmatmul.mubr.bf16.gmra.mxu0 %v3411_v58  ;;  %v3385_v37 = vmul.f32 %v5936_v52, %v7339_v12  ;;  %v5938_v21 = vpop.eup %5937 }
 0x786   : > { %v3257_v2 = vpop.xlane.xlu0 %3256  ;;  %v3255_v30 = vpop.xlane.xlu1 %3254  ;;  %v3386_v7 = vmul.f32 %v5938_v21, %v7334_v3 }
 0x787   : > { %v3300_v47 = vmul.f32 0.0078125, %v3257_v2  ;;  %v3299_v31 = vmul.f32 0.0078125, %v3255_v30  ;;  %5951 = vrsqrt.f32 %v3329_v9  ;;  %v3412_v14 = vpack.c.bf16 %v3385_v37, %v3384_v8 }
 0x788   : > { %v5940_v43 = vpop.eup %5939  ;;  %5953 = vrsqrt.f32 %v3330_v56 }
 0x789   : > { %v3331_v42 = vadd.f32 1e-05, %v3299_v31  ;;  %v3332_v1 = vadd.f32 1e-05, %v3300_v47  ;;  %5437 = vmatprep.mubr.bf16.mxu0 %v3412_v14  ;;  %v3387_v53 = vmul.f32 %v5940_v43, %v7346_v27  ;;  %v5942_v44 = vpop.eup %5941 }
 0x78a   : > { %v3261_v51 = vpop.xlane.xlu0 %3260  ;;  %v3259_v26 = vpop.xlane.xlu1 %3258  ;;  %v3388_v0 = vmul.f32 %v5942_v44, %v7349_v23  ;;  %v5719_v44 = vld [vmem:[#allocation13 + $0x28] sm:$0xff]  }
 0x78b   : > { %v3302_v41 = vmul.f32 0.0078125, %v3261_v51  ;;  %v3301_v17 = vmul.f32 0.0078125, %v3259_v26  ;;  %5955 = vrsqrt.f32 %v3331_v42  ;;  %v3413_v12 = vpack.c.bf16 %v3387_v53, %v3386_v7 }
 0x78c   : > { %v5944_v46 = vpop.eup %5943  ;;  %5957 = vrsqrt.f32 %v3332_v1 }
 0x78d   : > { %v3334_v19 = vadd.f32 1e-05, %v3302_v41  ;;  %v3333_v13 = vadd.f32 1e-05, %v3301_v17  ;;  %5438 = vmatmul.mubr.bf16.gmra.mxu0 %v3413_v12  ;;  %v3389_v55 = vmul.f32 %v5944_v46, %v7357_v38  ;;  %v5946_v6 = vpop.eup %5945 }
 0x78e   : > { %v3263_v49 = vpop.xlane.xlu1 %3262  ;;  %v3390_v9 = vmul.f32 %v5946_v6, %v7354_v57 }
 0x78f   : > { %v3303_v58 = vmul.f32 0.0078125, %v3263_v49  ;;  %5959 = vrsqrt.f32 %v3333_v13  ;;  %v3414_v3 = vpack.c.bf16 %v3389_v55, %v3388_v0  ;;  %v5723_v55 = vld [vmem:[#allocation13 + $0x8] sm:$0xff]  }
 0x790   : > { %v5948_v27 = vpop.eup %5947  ;;  %5961 = vrsqrt.f32 %v3334_v19 }
 0x791   : > { %v3335_v52 = vadd.f32 1e-05, %v3303_v58  ;;  %5441 = vmatprep.mubr.bf16.mxu0 %v3414_v3  ;;  %v3391_v56 = vmul.f32 %v5948_v27, %v7364_v29  ;;  %v5950_v2 = vpop.eup %5949  ;;  %v5724_v27 = vld [vmem:[#allocation13] sm:$0xff]  }
 0x792   : > { %v3392_v23 = vmul.f32 %v5950_v2, %v7369_v54 }
 0x793   : > { %5963 = vrsqrt.f32 %v3335_v52  ;;  %v3415_v30 = vpack.c.bf16 %v3391_v56, %v3390_v9 }
 0x794   : > { %v5952_v8 = vpop.eup %5951 }
 0x795   : > { %5442 = vmatmul.mubr.bf16.gmra.mxu0 %v3415_v30  ;;  %v3393_v38 = vmul.f32 %v5952_v8, %v7379_v39  ;;  %v5954_v37 = vpop.eup %5953 }
 0x796   : > { %v3394_v31 = vmul.f32 %v5954_v37, %v7376_v48  ;;  %v5717_v48 = vld [vmem:[#allocation13 + $0x38] sm:$0xff]  }
 0x797   : > { %v3416_v21 = vpack.c.bf16 %v3393_v38, %v3392_v23  ;;  %5461 = vmatprep.subr.bf16.mxu1 %v5717_v48 }
 0x798   : > { %v5956_v47 = vpop.eup %5955  ;;  %5462 = vmatpush3.bf16.msra.mxu1 %v5717_v48 }
 0x799   : > { %5445 = vmatprep.mubr.bf16.mxu0 %v3416_v21  ;;  %v3395_v14 = vmul.f32 %v5956_v47, %v7384_v50  ;;  %v5958_v57 = vpop.eup %5957  ;;  %v5718_v50 = vld [vmem:[#allocation13 + $0x30] sm:$0xff]  }
 0x79a   : > { %v3396_v1 = vmul.f32 %v5958_v57, %v7391_v11  ;;  %5463 = vmatprep.subr.bf16.mxu1 %v5718_v50  ;;  %v5720_v11 = vld [vmem:[#allocation13 + $0x20] sm:$0xff]  }
 0x79b   : > { %v3417_v43 = vpack.c.bf16 %v3395_v14, %v3394_v31 }
 0x79c   : > { %v5960_v29 = vpop.eup %5959  ;;  %5464 = vmatpush3.bf16.msra.mxu1 %v5718_v50 }
 0x79d   : > { %v5962_v42 = vpop.eup %5961  ;;  %5446 = vmatmul.mubr.bf16.gmra.mxu0 %v3417_v43  ;;  %v3397_v51 = vmul.f32 %v5960_v29, %v7401_v61  ;;  %5465 = vmatprep.subr.bf16.mxu1 %v5719_v44  ;;  %v5721_v61 = vld [vmem:[#allocation13 + $0x18] sm:$0xff]  }
 0x79e   : > { %v3398_v39 = vmul.f32 %v5962_v42, %v7398_v15 }
 0x79f   : > { %v3418_v26 = vpack.c.bf16 %v3397_v51, %v3396_v1 }
 0x7a0   : > { %v5964_v54 = vpop.eup %5963  ;;  %5466 = vmatpush3.bf16.msra.mxu1 %v5719_v44 }
 0x7a1   : > { %v3399_v7 = vmul.f32 %v5964_v54, %v7408_v24  ;;  %5449 = vmatprep.mubr.bf16.mxu0 %v3418_v26  ;;  %5467 = vmatprep.subr.bf16.mxu1 %v5720_v11  ;;  %v5722_v24 = vld [vmem:[#allocation13 + $0x10] sm:$0xff]  }
 0x7a3   : > { %v3419_v53 = vpack.c.bf16 %v3399_v7, %v3398_v39 }
 0x7a4   : > { %5468 = vmatpush3.bf16.msra.mxu1 %v5720_v11 }
 0x7a5   : > { %5450 = vmatmul.mubr.bf16.gmra.mxu0 %v3419_v53  ;;  %5469 = vmatprep.subr.bf16.mxu1 %v5721_v61 }
 0x7a8   : > { %5470 = vmatpush3.bf16.msra.mxu1 %v5721_v61 }
 0x7a9   : > { %5471 = vmatprep.subr.bf16.mxu1 %v5722_v24 }
 0x7ac   : > { %5472 = vmatpush3.bf16.msra.mxu1 %v5722_v24 }
 0x7ad   : > { %5473 = vmatprep.subr.bf16.mxu1 %v5723_v55 }
 0x7b0   : > { %5474 = vmatpush3.bf16.msra.mxu1 %v5723_v55 }
 0x7b1   : > { %5475 = vmatprep.subr.bf16.mxu1 %v5724_v27 }
 0x7b4   : > { %5476 = vmatpush3.bf16.msra.mxu1 %v5724_v27 }
 0x7d6   : > { %v3265_v41 = vpop.xlane.xlu0 %3264 }
 0x7d7   : > { %v3304_v15 = vmul.f32 0.0078125, %v3265_v41 }
 0x7d9   : > { %v3336_v17 = vadd.f32 1e-05, %v3304_v15 }
 0x7da   : > { %v3269_v12 = vpop.xlane.xlu0 %3268  ;;  %v3267_v46 = vpop.xlane.xlu1 %3266 }
 0x7db   : > { %v3306_v19 = vmul.f32 0.0078125, %v3269_v12  ;;  %v3305_v13 = vmul.f32 0.0078125, %v3267_v46  ;;  %5965 = vrsqrt.f32 %v3336_v17 }
 0x7dd   : > { %v3338_v49 = vadd.f32 1e-05, %v3306_v19  ;;  %v3337_v0 = vadd.f32 1e-05, %v3305_v13 }
 0x7de   : > { %v3271_v6 = vpop.xlane.xlu1 %3270 }
 0x7df   : > { %v3307_v58 = vmul.f32 0.0078125, %v3271_v6  ;;  %5967 = vrsqrt.f32 %v3337_v0 }
 0x7e0   : > { %5969 = vrsqrt.f32 %v3338_v49 }
 0x7e1   : > { %v3339_v3 = vadd.f32 1e-05, %v3307_v58 }
 0x7e3   : > { %5971 = vrsqrt.f32 %v3339_v3 }
 0x7e6   : > { %v3273_v52 = vpop.xlane.xlu0 %3272 }
 0x7e7   : > { %v3308_v9 = vmul.f32 0.0078125, %v3273_v52 }
 0x7e8   : > { %v5966_v8 = vpop.eup %5965 }
 0x7e9   : > { %v3340_v56 = vadd.f32 1e-05, %v3308_v9  ;;  %v3400_v57 = vmul.f32 %v5966_v8, %v7413_v16 }
 0x7ea   : > { %v3277_v2 = vpop.xlane.xlu0 %3276  ;;  %v3275_v30 = vpop.xlane.xlu1 %3274 }
 0x7eb   : > { %v3310_v23 = vmul.f32 0.0078125, %v3277_v2  ;;  %v3309_v38 = vmul.f32 0.0078125, %v3275_v30  ;;  %5973 = vrsqrt.f32 %v3340_v56 }
 0x7ec   : > { %v5968_v37 = vpop.eup %5967 }
 0x7ed   : > { %v3342_v21 = vadd.f32 1e-05, %v3310_v23  ;;  %v3341_v47 = vadd.f32 1e-05, %v3309_v38  ;;  %v5970_v31 = vpop.eup %5969  ;;  %v3401_v43 = vmul.f32 %v5968_v37, %v7421_v5 }
 0x7ee   : > { %v3279_v14 = vpop.xlane.xlu1 %3278  ;;  %v3402_v54 = vmul.f32 %v5970_v31, %v7418_v22 }
 0x7ef   : > { %v3311_v29 = vmul.f32 0.0078125, %v3279_v14  ;;  %5975 = vrsqrt.f32 %v3341_v47  ;;  %v3420_v1 = vpack.c.bf16 %v3401_v43, %v3400_v57 }
 0x7f0   : > { %v5972_v42 = vpop.eup %5971  ;;  %5977 = vrsqrt.f32 %v3342_v21 }
 0x7f1   : > { %v3343_v51 = vadd.f32 1e-05, %v3311_v29  ;;  %v3403_v26 = vmul.f32 %v5972_v42, %v7428_v20  ;;  %5453 = vmatprep.mubr.bf16.mxu0 %v3420_v1  ;;  %v7487_v20 = vld [vmem:[%s7872_s6] ss:$0 sm:$0xff] }
 0x7f3   : > { %5979 = vrsqrt.f32 %v3343_v51  ;;  %v3421_v39 = vpack.c.bf16 %v3403_v26, %v3402_v54 }
 0x7f5   : > { %5454 = vmatmul.mubr.bf16.gmra.mxu0 %v3421_v39 }
 0x7f8   : > { %v5974_v7 = vpop.eup %5973 }
 0x7f9   : > { %v3404_v16 = vmul.f32 %v5974_v7, %v7433_v18 }
 0x7fc   : > { %v5976_v53 = vpop.eup %5975 }
 0x7fd   : > { %v5978_v48 = vpop.eup %5977  ;;  %v3405_v5 = vmul.f32 %v5976_v53, %v7441_v40 }
 0x7fe   : > { %v3406_v11 = vmul.f32 %v5978_v48, %v7438_v62 }
 0x7ff   : > { %v3422_v44 = vpack.c.bf16 %v3405_v5, %v3404_v16 }
 0x800   : > { %v5980_v50 = vpop.eup %5979 }
 0x801   : > { %v3407_v61 = vmul.f32 %v5980_v50, %v7448_v28  ;;  %5457 = vmatprep.mubr.bf16.mxu0 %v3422_v44 }
 0x803   : > { %v3423_v22 = vpack.c.bf16 %v3407_v61, %v3406_v11 }
 0x805   : > { %5458 = vmatmul.mubr.bf16.gmra.mxu0 %v3423_v22 }
 0x83d   : > { %v5431_v41 = vpop.f32.mrf.mxu0 }
 0x83e   : > { %v7490_v15 = vadd.f32 %v5431_v41, %v7487_v20 }
 0x83f   : > { %v3529_v18 = vpop.f32.mrf.mxu0 }
 0x840   : > { %v3690_v40 = vmul.f32 0.044715, %v7490_v15  ;;  %v7494_v24 = vadd.f32 %v7487_v20, %v3529_v18 }
 0x841   : > { %v5432_v62 = vpop.f32.mrf.mxu0 }
 0x842   : > { %v3722_v28 = vmul.f32 %v3690_v40, %v7490_v15  ;;  %v3688_v17 = vmul.f32 0.044715, %v7494_v24  ;;  %v7499_v12 = vadd.f32 %v5432_v62, %v7487_v20 }
 0x843   : > { %v3532_v46 = vpop.f32.mrf.mxu0 }
 0x844   : > { %v3754_v19 = vmul.f32 %v3722_v28, %v7490_v15  ;;  %v3720_v13 = vmul.f32 %v3688_v17, %v7494_v24  ;;  %v3691_v49 = vmul.f32 0.044715, %v7499_v12  ;;  %v7505_v0 = vadd.f32 %v7487_v20, %v3532_v46 }
 0x845   : > { %v5435_v55 = vpop.f32.mrf.mxu0 }
 0x846   : > { %v3786_v6 = vadd.f32 %v3754_v19, %v7490_v15  ;;  %v3752_v58 = vmul.f32 %v3720_v13, %v7494_v24  ;;  %v3723_v3 = vmul.f32 %v3691_v49, %v7499_v12  ;;  %v7511_v27 = vadd.f32 %v5435_v55, %v7487_v20 }
 0x847   : > { %v3689_v52 = vmul.f32 0.044715, %v7505_v0  ;;  %v3545_v9 = vpop.f32.mrf.mxu0 }
 0x848   : > { %v3818_v56 = vmul.f32 0.7978846, %v3786_v6  ;;  %v3755_v2 = vmul.f32 %v3723_v3, %v7499_v12  ;;  %v3694_v30 = vmul.f32 0.044715, %v7511_v27  ;;  %v7517_v8 = vadd.f32 %v7487_v20, %v3545_v9 }
 0x849   : > { %v3721_v23 = vmul.f32 %v3689_v52, %v7505_v0  ;;  %v5436_v38 = vpop.f32.mrf.mxu0  ;;  %v3784_v37 = vadd.f32 %v3752_v58, %v7494_v24 }
 0x84a   : > { %v3787_v21 = vadd.f32 %v3755_v2, %v7499_v12  ;;  %v3726_v47 = vmul.f32 %v3694_v30, %v7511_v27  ;;  %v3692_v31 = vmul.f32 0.044715, %v7517_v8  ;;  %5981 = vtanh.f32 %v3818_v56 }
 0x84b   : > { %v3753_v14 = vmul.f32 %v3721_v23, %v7505_v0  ;;  %v7526_v57 = vadd.f32 %v5436_v38, %v7487_v20  ;;  %v3548_v43 = vpop.f32.mrf.mxu0  ;;  %v3816_v29 = vmul.f32 0.7978846, %v3784_v37 }
 0x84c   : > { %v3819_v42 = vmul.f32 0.7978846, %v3787_v21  ;;  %v3758_v1 = vmul.f32 %v3726_v47, %v7511_v27  ;;  %v3724_v51 = vmul.f32 %v3692_v31, %v7517_v8  ;;  %v7531_v54 = vadd.f32 %v7487_v20, %v3548_v43 }
 0x84d   : > { %v3695_v26 = vmul.f32 0.044715, %v7526_v57  ;;  %v5439_v39 = vpop.f32.mrf.mxu0  ;;  %v3785_v7 = vadd.f32 %v3753_v14, %v7505_v0  ;;  %5983 = vtanh.f32 %v3816_v29  ;;  %v3658_v29 = vmul.f32 0.5, %v7490_v15 }
 0x84e   : > { %5985 = vtanh.f32 %v3819_v42  ;;  %v3790_v53 = vadd.f32 %v3758_v1, %v7511_v27  ;;  %v3756_v48 = vmul.f32 %v3724_v51, %v7517_v8  ;;  %v3693_v16 = vmul.f32 0.044715, %v7531_v54 }
 0x84f   : > { %v3727_v5 = vmul.f32 %v3695_v26, %v7526_v57  ;;  %v7540_v50 = vadd.f32 %v5439_v39, %v7487_v20  ;;  %v3561_v44 = vpop.f32.mrf.mxu0  ;;  %v3817_v11 = vmul.f32 0.7978846, %v3785_v7  ;;  %v3659_v42 = vmul.f32 0.5, %v7499_v12 }
 0x850   : > { %v3725_v61 = vmul.f32 %v3693_v16, %v7531_v54  ;;  %v7544_v22 = vadd.f32 %v7487_v20, %v3561_v44  ;;  %v3788_v41 = vadd.f32 %v3756_v48, %v7517_v8  ;;  %v3822_v28 = vmul.f32 0.7978846, %v3790_v53 }
 0x851   : > { %v3759_v18 = vmul.f32 %v3727_v5, %v7526_v57  ;;  %v3698_v40 = vmul.f32 0.044715, %v7540_v50  ;;  %v5440_v62 = vpop.f32.mrf.mxu0  ;;  %5987 = vtanh.f32 %v3817_v11  ;;  %v3656_v1 = vmul.f32 0.5, %v7494_v24 }
 0x852   : > { %v3757_v17 = vmul.f32 %v3725_v61, %v7531_v54  ;;  %v7551_v46 = vadd.f32 %v5440_v62, %v7487_v20  ;;  %v3820_v49 = vmul.f32 0.7978846, %v3788_v41  ;;  %v3696_v6 = vmul.f32 0.044715, %v7544_v22 }
 0x853   : > { %v3791_v19 = vadd.f32 %v3759_v18, %v7526_v57  ;;  %v3564_v13 = vpop.f32.mrf.mxu0  ;;  %v3730_v55 = vmul.f32 %v3698_v40, %v7540_v50  ;;  %v3657_v12 = vmul.f32 0.5, %v7505_v0  ;;  %v7584_v41 = vmul.f32 0.5, %v7511_v27 }
 0x854   : > { %v3699_v58 = vmul.f32 0.044715, %v7551_v46  ;;  %v3789_v3 = vadd.f32 %v3757_v17, %v7531_v54  ;;  %v7559_v9 = vadd.f32 %v7487_v20, %v3564_v13  ;;  %5989 = vtanh.f32 %v3820_v49 }
 0x855   : > { %v3823_v52 = vmul.f32 0.7978846, %v3791_v19  ;;  %v5443_v56 = vpop.f32.mrf.mxu0  ;;  %5991 = vtanh.f32 %v3822_v28  ;;  %v3762_v21 = vmul.f32 %v3730_v55, %v7540_v50  ;;  %v3728_v47 = vmul.f32 %v3696_v6, %v7544_v22 }
 0x856   : > { %v3731_v2 = vmul.f32 %v3699_v58, %v7551_v46  ;;  %v7563_v30 = vadd.f32 %v5443_v56, %v7487_v20  ;;  %v3821_v38 = vmul.f32 0.7978846, %v3789_v3  ;;  %v3697_v31 = vmul.f32 0.044715, %v7559_v9 }
 0x857   : > { %5993 = vtanh.f32 %v3823_v52  ;;  %v3577_v23 = vpop.f32.mrf.mxu0  ;;  %v5982_v37 = vpop.eup %5981  ;;  %v3794_v5 = vadd.f32 %v3762_v21, %v7540_v50  ;;  %v3760_v15 = vmul.f32 %v3728_v47, %v7544_v22  ;;  %v3660_v62 = vmul.f32 0.5, %v7517_v8 }
 0x858   : > { %5995 = vtanh.f32 %v3821_v38  ;;  %v3763_v26 = vmul.f32 %v3731_v2, %v7551_v46  ;;  %v3702_v39 = vmul.f32 0.044715, %v7563_v30  ;;  %v7574_v7 = vadd.f32 %v7487_v20, %v3577_v23 }
 0x859   : > { %v5444_v14 = vpop.f32.mrf.mxu0  ;;  %v3882_v24 = vadd.f32 1.0, %v5982_v37  ;;  %v3729_v44 = vmul.f32 %v3697_v31, %v7559_v9  ;;  %v3661_v28 = vmul.f32 0.5, %v7531_v54  ;;  %v3663_v17 = vmul.f32 0.5, %v7526_v57 }
 0x85a   : > { %v5984_v43 = vpop.eup %5983  ;;  %v7577_v53 = vadd.f32 %v5444_v14, %v7487_v20  ;;  %v3795_v19 = vadd.f32 %v3763_v26, %v7551_v46  ;;  %v3734_v0 = vmul.f32 %v3702_v39, %v7563_v30  ;;  %v3700_v13 = vmul.f32 0.044715, %v7574_v7 }
 0x85b   : > { %v5986_v51 = vpop.eup %5985  ;;  %v3580_v48 = vpop.f32.mrf.mxu0  ;;  %v3880_v61 = vadd.f32 1.0, %v5984_v43  ;;  %v3826_v27 = vmul.f32 0.7978846, %v3794_v5  ;;  %v3792_v3 = vadd.f32 %v3760_v15, %v7544_v22  ;;  %v3914_v8 = vmul.f32 %v3882_v24, %v3658_v29 }
 0x85c   : > { %v3883_v16 = vadd.f32 1.0, %v5986_v51  ;;  %v3703_v40 = vmul.f32 0.044715, %v7577_v53  ;;  %v7594_v58 = vadd.f32 %v7487_v20, %v3580_v48  ;;  %v3761_v54 = vmul.f32 %v3729_v44, %v7559_v9 }
 0x85d   : > { %v5447_v11 = vpop.f32.mrf.mxu0  ;;  %v3912_v57 = vmul.f32 %v3880_v61, %v3656_v1  ;;  %v3827_v31 = vmul.f32 0.7978846, %v3795_v19  ;;  %v3766_v14 = vmul.f32 %v3734_v0, %v7563_v30  ;;  %v3732_v43 = vmul.f32 %v3700_v13, %v7574_v7 }
 0x85e   : > { %v5988_v18 = vpop.eup %5987  ;;  %v3915_v6 = vmul.f32 %v3883_v16, %v3659_v42  ;;  %v3735_v23 = vmul.f32 %v3703_v40, %v7577_v53  ;;  %v7600_v38 = vadd.f32 %v5447_v11, %v7487_v20  ;;  %5997 = vtanh.f32 %v3826_v27 }
 0x85f   : > { %v3593_v49 = vpop.f32.mrf.mxu0  ;;  %v3881_v55 = vadd.f32 1.0, %v5988_v18  ;;  %v3701_v26 = vmul.f32 0.044715, %v7594_v58  ;;  %5999 = vtanh.f32 %v3827_v31  ;;  %v3798_v40 = vadd.f32 %v3766_v14, %v7563_v30 }
 0x860   : > { %v7603_v37 = vadd.f32 %v7487_v20, %v3593_v49  ;;  %v3945_v51 = vpack.c.bf16 %v3915_v6, %v3914_v8  ;;  %v3767_v44 = vmul.f32 %v3735_v23, %v7577_v53  ;;  %v3706_v11 = vmul.f32 0.044715, %v7600_v38 }
 0x861   : > { %v5448_v52 = vpop.f32.mrf.mxu0  ;;  %v3913_v56 = vmul.f32 %v3881_v55, %v3657_v12  ;;  %v5990_v2 = vpop.eup %5989  ;;  %v3793_v12 = vadd.f32 %v3761_v54, %v7559_v9  ;;  %v3764_v19 = vmul.f32 %v3732_v43, %v7574_v7  ;;  %v3733_v49 = vmul.f32 %v3701_v26, %v7594_v58 }
 0x862   : > { %v7606_v21 = vadd.f32 %v5448_v52, %v7487_v20  ;;  %v5992_v47 = vpop.eup %5991  ;;  %v3884_v5 = vadd.f32 1.0, %v5990_v2  ;;  %v3704_v61 = vmul.f32 0.044715, %v7603_v37  ;;  %v3799_v2 = vadd.f32 %v3767_v44, %v7577_v53 }
 0x863   : > { %v3596_v29 = vpop.f32.mrf.mxu0  ;;  %v3944_v42 = vpack.c.bf16 %v3913_v56, %v3912_v57  ;;  %v3886_v18 = vadd.f32 1.0, %v5992_v47  ;;  %v3824_v56 = vmul.f32 0.7978846, %v3792_v3  ;;  %v3738_v23 = vmul.f32 %v3706_v11, %v7600_v38 }
 0x864   : > { %v5994_v1 = vpop.eup %5993  ;;  %v7612_v39 = vadd.f32 %v7487_v20, %v3596_v29  ;;  %v3707_v48 = vmul.f32 0.044715, %v7606_v21  ;;  %v3916_v52 = vmul.f32 %v3884_v5, %v3660_v62  ;;  %v3736_v47 = vmul.f32 %v3704_v61, %v7603_v37 }
 0x865   : > { %5477 = vmatprep.mubr.bf16.mxu1 %v3944_v42  ;;  %v5451_v16 = vpop.f32.mrf.mxu0  ;;  %v3887_v15 = vadd.f32 1.0, %v5994_v1  ;;  %v5996_v24 = vpop.eup %5995  ;;  %v3918_v31 = vmul.f32 %v3886_v18, %v7584_v41  ;;  %v3825_v42 = vmul.f32 0.7978846, %v3793_v12  ;;  %v3765_v41 = vmul.f32 %v3733_v49, %v7594_v58 }
 0x866   : > { %5478 = vmatmul.mubr.bf16.vlgmr.msra.gmra.mxu1 %v3945_v51  ;;  %v3885_v13 = vadd.f32 1.0, %v5996_v24  ;;  %v3705_v55 = vmul.f32 0.044715, %v7612_v39  ;;  %v3739_v8 = vmul.f32 %v3707_v48, %v7606_v21  ;;  %v7632_v14 = vadd.f32 %v5451_v16, %v7487_v20 }
 0x867   : > { %v3609_v0 = vpop.f32.mrf.mxu0  ;;  %v3919_v27 = vmul.f32 %v3887_v15, %v3663_v17  ;;  %v3830_v51 = vmul.f32 0.7978846, %v3798_v40  ;;  %6001 = vtanh.f32 %v3824_v56  ;;  %v3831_v48 = vmul.f32 0.7978846, %v3799_v2 }
 0x868   : > { %v7624_v6 = vadd.f32 %v7487_v20, %v3609_v0  ;;  %v3917_v57 = vmul.f32 %v3885_v13, %v3661_v28  ;;  %v3737_v62 = vmul.f32 %v3705_v55, %v7612_v39  ;;  %v3771_v26 = vmul.f32 %v3739_v8, %v7606_v21 }
 0x869   : > { %v5452_v54 = vpop.f32.mrf.mxu0  ;;  %v3947_v1 = vpack.c.bf16 %v3919_v27, %v3918_v31  ;;  %v3770_v15 = vmul.f32 %v3738_v23, %v7600_v38  ;;  %v3710_v12 = vmul.f32 0.044715, %v7632_v14  ;;  %6003 = vtanh.f32 %v3825_v42 }
 0x86a   : > { %v7635_v43 = vadd.f32 %v5452_v54, %v7487_v20  ;;  %v3946_v29 = vpack.c.bf16 %v3917_v57, %v3916_v52  ;;  %v3708_v28 = vmul.f32 0.044715, %v7624_v6  ;;  %v3768_v24 = vmul.f32 %v3736_v47, %v7603_v37 }
 0x86b   : > { %v3612_v17 = vpop.f32.mrf.mxu0  ;;  %v3769_v44 = vmul.f32 %v3737_v62, %v7612_v39  ;;  %v5998_v18 = vpop.eup %5997  ;;  %6005 = vtanh.f32 %v3830_v51  ;;  %v3803_v40 = vadd.f32 %v3771_v26, %v7606_v21  ;;  %v3796_v0 = vadd.f32 %v3764_v19, %v7574_v7 }
 0x86c   : > { %v7640_v3 = vadd.f32 %v7487_v20, %v3612_v17  ;;  %5481 = vmatprep.mubr.bf16.mxu1 %v3946_v29  ;;  %v3711_v16 = vmul.f32 0.044715, %v7635_v43  ;;  %v3740_v11 = vmul.f32 %v3708_v28, %v7624_v6  ;;  %v3797_v13 = vadd.f32 %v3765_v41, %v7594_v58  ;;  %v6000_v52 = vpop.eup %5999 }
 0x86d   : > { %6007 = vtanh.f32 %v3831_v48  ;;  %v3802_v55 = vadd.f32 %v3770_v15, %v7600_v38  ;;  %v3742_v27 = vmul.f32 %v3710_v12, %v7632_v14  ;;  %v3828_v8 = vmul.f32 0.7978846, %v3796_v0 }
 0x86e   : > { %v3709_v5 = vmul.f32 0.044715, %v7640_v3  ;;  %5482 = vmatmul.mubr.bf16.gmra.mxu1 %v3947_v1  ;;  %v3743_v49 = vmul.f32 %v3711_v16, %v7635_v43  ;;  %v3829_v54 = vmul.f32 0.7978846, %v3797_v13  ;;  %v3772_v57 = vmul.f32 %v3740_v11, %v7624_v6 }
 0x86f   : > { %v3800_v2 = vadd.f32 %v3768_v24, %v7603_v37  ;;  %v3801_v19 = vadd.f32 %v3769_v44, %v7612_v39  ;;  %v3835_v23 = vmul.f32 0.7978846, %v3803_v40  ;;  %6009 = vtanh.f32 %v3828_v8 }
 0x870   : > { %v3741_v61 = vmul.f32 %v3709_v5, %v7640_v3  ;;  %v3775_v47 = vmul.f32 %v3743_v49, %v7635_v43  ;;  %6011 = vtanh.f32 %v3829_v54  ;;  %v3834_v29 = vmul.f32 0.7978846, %v3802_v55 }
 0x871   : > { %v3832_v31 = vmul.f32 0.7978846, %v3800_v2  ;;  %v3833_v17 = vmul.f32 0.7978846, %v3801_v19  ;;  %v3774_v42 = vmul.f32 %v3742_v27, %v7632_v14  ;;  %v3804_v62 = vadd.f32 %v3772_v57, %v7624_v6 }
 0x872   : > { %v3773_v56 = vmul.f32 %v3741_v61, %v7640_v3  ;;  %v3891_v1 = vadd.f32 1.0, %v6000_v52  ;;  %v3807_v41 = vadd.f32 %v3775_v47, %v7635_v43  ;;  %v3667_v12 = vmul.f32 0.5, %v7551_v46 }
 0x873   : > { %6013 = vtanh.f32 %v3832_v31  ;;  %v3836_v26 = vmul.f32 0.7978846, %v3804_v62  ;;  %v3806_v15 = vadd.f32 %v3774_v42, %v7632_v14  ;;  %v3890_v24 = vadd.f32 1.0, %v5998_v18 }
 0x874   : > { %v3805_v28 = vadd.f32 %v3773_v56, %v7640_v3  ;;  %6015 = vtanh.f32 %v3833_v17  ;;  %v6002_v51 = vpop.eup %6001  ;;  %v3664_v44 = vmul.f32 0.5, %v7544_v22  ;;  %v3665_v11 = vmul.f32 0.5, %v7559_v9 }
 0x875   : > { %6017 = vtanh.f32 %v3835_v23  ;;  %v3888_v16 = vadd.f32 1.0, %v6002_v51  ;;  %v3839_v0 = vmul.f32 0.7978846, %v3807_v41  ;;  %v3666_v13 = vmul.f32 0.5, %v7540_v50 }
 0x876   : > { %v3837_v48 = vmul.f32 0.7978846, %v3805_v28  ;;  %6019 = vtanh.f32 %v3834_v29  ;;  %v6004_v5 = vpop.eup %6003  ;;  %v3923_v49 = vmul.f32 %v3891_v1, %v3667_v12  ;;  %v3838_v54 = vmul.f32 0.7978846, %v3806_v15 }
 0x877   : > { %6021 = vtanh.f32 %v3836_v26  ;;  %v3889_v61 = vadd.f32 1.0, %v6004_v5  ;;  %v3920_v27 = vmul.f32 %v3888_v16, %v3664_v44  ;;  %v3922_v52 = vmul.f32 %v3890_v24, %v3666_v13 }
 0x878   : > { %6023 = vtanh.f32 %v3837_v48  ;;  %v6006_v40 = vpop.eup %6005  ;;  %v3668_v9 = vmul.f32 0.5, %v7574_v7  ;;  %v3669_v2 = vmul.f32 0.5, %v7594_v58  ;;  %v3671_v23 = vmul.f32 0.5, %v7577_v53 }
 0x879   : > { %v3921_v8 = vmul.f32 %v3889_v61, %v3665_v11  ;;  %6025 = vtanh.f32 %v3839_v0  ;;  %v3949_v18 = vpack.c.bf16 %v3923_v49, %v3922_v52  ;;  %v3894_v47 = vadd.f32 1.0, %v6006_v40 }
 0x87a   : > { %v6008_v55 = vpop.eup %6007  ;;  %6027 = vtanh.f32 %v3838_v54  ;;  %v3670_v17 = vmul.f32 0.5, %v7563_v30  ;;  %v3672_v7 = vmul.f32 0.5, %v7603_v37  ;;  %v3673_v58 = vmul.f32 0.5, %v7612_v39 }
 0x87b   : > { %v3948_v57 = vpack.c.bf16 %v3921_v8, %v3920_v27  ;;  %v3895_v56 = vadd.f32 1.0, %v6008_v55  ;;  %v3677_v11 = vmul.f32 0.5, %v7640_v3  ;;  %v3675_v37 = vmul.f32 0.5, %v7606_v21 }
 0x87c   : > { %v6010_v46 = vpop.eup %6009  ;;  %v3926_v16 = vmul.f32 %v3894_v47, %v3670_v17  ;;  %v3676_v0 = vmul.f32 0.5, %v7624_v6  ;;  %v3674_v49 = vmul.f32 0.5, %v7600_v38  ;;  %v3678_v21 = vmul.f32 0.5, %v7632_v14 }
 0x87d   : > { %v6012_v22 = vpop.eup %6011  ;;  %5485 = vmatprep.mubr.bf16.mxu1 %v3948_v57  ;;  %v3892_v19 = vadd.f32 1.0, %v6010_v46  ;;  %v3927_v28 = vmul.f32 %v3895_v56, %v3671_v23 }
 0x87e   : > { %5486 = vmatmul.mubr.bf16.gmra.mxu1 %v3949_v18  ;;  %v3893_v50 = vadd.f32 1.0, %v6012_v22  ;;  %v3679_v18 = vmul.f32 0.5, %v7635_v43 }
 0x87f   : > { %v3924_v42 = vmul.f32 %v3892_v19, %v3668_v9  ;;  %v3951_v30 = vpack.c.bf16 %v3927_v28, %v3926_v16 }
 0x880   : > { %v6014_v31 = vpop.eup %6013  ;;  %v3925_v62 = vmul.f32 %v3893_v50, %v3669_v2 }
 0x881   : > { %v6016_v29 = vpop.eup %6015  ;;  %v3896_v1 = vadd.f32 1.0, %v6014_v31 }
 0x882   : > { %v6018_v51 = vpop.eup %6017  ;;  %v3897_v41 = vadd.f32 1.0, %v6016_v29  ;;  %v3950_v48 = vpack.c.bf16 %v3925_v62, %v3924_v42 }
 0x883   : > { %v6020_v26 = vpop.eup %6019  ;;  %v3928_v53 = vmul.f32 %v3896_v1, %v3672_v7  ;;  %v3899_v24 = vadd.f32 1.0, %v6018_v51 }
 0x884   : > { %v6022_v5 = vpop.eup %6021  ;;  %v3929_v15 = vmul.f32 %v3897_v41, %v3673_v58  ;;  %5489 = vmatprep.mubr.bf16.mxu1 %v3950_v48  ;;  %v3898_v39 = vadd.f32 1.0, %v6020_v26 }
 0x885   : > { %v6024_v12 = vpop.eup %6023  ;;  %v3900_v61 = vadd.f32 1.0, %v6022_v5  ;;  %v3931_v55 = vmul.f32 %v3899_v24, %v3675_v37 }
 0x886   : > { %v3952_v44 = vpack.c.bf16 %v3929_v15, %v3928_v53  ;;  %v3901_v40 = vadd.f32 1.0, %v6024_v12  ;;  %5490 = vmatmul.mubr.bf16.gmra.mxu1 %v3951_v30  ;;  %v6026_v27 = vpop.eup %6025  ;;  %v3930_v54 = vmul.f32 %v3898_v39, %v3674_v49 }
 0x887   : > { %v3932_v8 = vmul.f32 %v3900_v61, %v3676_v0  ;;  %v6028_v52 = vpop.eup %6027  ;;  %v3903_v3 = vadd.f32 1.0, %v6026_v27 }
 0x888   : > { %5493 = vmatprep.mubr.bf16.mxu1 %v3952_v44  ;;  %v3933_v13 = vmul.f32 %v3901_v40, %v3677_v11  ;;  %v3953_v46 = vpack.c.bf16 %v3931_v55, %v3930_v54  ;;  %v3902_v56 = vadd.f32 1.0, %v6028_v52 }
 0x889   : > { %v3935_v22 = vmul.f32 %v3903_v3, %v3679_v18 }
 0x88a   : > { %v3954_v57 = vpack.c.bf16 %v3933_v13, %v3932_v8  ;;  %v3934_v6 = vmul.f32 %v3902_v56, %v3678_v21 }
 0x88c   : > { %v3955_v9 = vpack.c.bf16 %v3935_v22, %v3934_v6 }
 0x88e   : > { %5494 = vmatmul.mubr.bf16.gmra.mxu1 %v3953_v46 }
 0x88f   : > { %5497 = vmatprep.mubr.bf16.mxu1 %v3954_v57 }
 0x896   : > { %5498 = vmatmul.mubr.bf16.gmra.mxu1 %v3955_v9 }
 0x8b5   : > { %v5455_v38 = vpop.f32.mrf.mxu0 }
 0x8b6   : > { %v7685_v2 = vadd.f32 %v5455_v38, %v7487_v20 }
 0x8b7   : > { %v3625_v19 = vpop.f32.mrf.mxu0 }
 0x8b8   : > { %v3714_v50 = vmul.f32 0.044715, %v7685_v2  ;;  %v3626_v23 = vadd.f32 %v7487_v20, %v3625_v19 }
 0x8b9   : > { %v5456_v47 = vpop.f32.mrf.mxu0 }
 0x8ba   : > { %v3746_v43 = vmul.f32 %v3714_v50, %v7685_v2  ;;  %v3712_v31 = vmul.f32 0.044715, %v3626_v23  ;;  %v3637_v17 = vadd.f32 %v5456_v47, %v7487_v20 }
 0x8bb   : > { %v3628_v14 = vpop.f32.mrf.mxu0 }
 0x8bc   : > { %v3778_v29 = vmul.f32 %v3746_v43, %v7685_v2  ;;  %v3744_v42 = vmul.f32 %v3712_v31, %v3626_v23  ;;  %v3715_v62 = vmul.f32 0.044715, %v3637_v17  ;;  %v3629_v28 = vadd.f32 %v7487_v20, %v3628_v14 }
 0x8be   : > { %v3810_v1 = vadd.f32 %v3778_v29, %v7685_v2  ;;  %v3776_v51 = vmul.f32 %v3744_v42, %v3626_v23  ;;  %v3747_v7 = vmul.f32 %v3715_v62, %v3637_v17  ;;  %v3713_v58 = vmul.f32 0.044715, %v3629_v28 }
 0x8bf   : > { %v3680_v62 = vmul.f32 0.5, %v3626_v23 }
 0x8c0   : > { %v3779_v41 = vmul.f32 %v3747_v7, %v3637_v17  ;;  %v3745_v26 = vmul.f32 %v3713_v58, %v3629_v28  ;;  %v3808_v48 = vadd.f32 %v3776_v51, %v3626_v23  ;;  %v3842_v16 = vmul.f32 0.7978846, %v3810_v1 }
 0x8c1   : > { %v3683_v1 = vmul.f32 0.5, %v3637_v17  ;;  %v3681_v7 = vmul.f32 0.5, %v3629_v28 }
 0x8c2   : > { %v3811_v5 = vadd.f32 %v3779_v41, %v3637_v17  ;;  %v3777_v53 = vmul.f32 %v3745_v26, %v3629_v28  ;;  %v3840_v15 = vmul.f32 0.7978846, %v3808_v48  ;;  %v3682_v26 = vmul.f32 0.5, %v7685_v2 }
 0x8c4   : > { %v3843_v12 = vmul.f32 0.7978846, %v3811_v5  ;;  %v3809_v30 = vadd.f32 %v3777_v53, %v3629_v28  ;;  %6029 = vtanh.f32 %v3840_v15 }
 0x8c5   : > { %6031 = vtanh.f32 %v3842_v16  ;;  %v5459_v24 = vpop.f32.mrf.mxu0 }
 0x8c6   : > { %6033 = vtanh.f32 %v3843_v12  ;;  %v7695_v44 = vadd.f32 %v5459_v24, %v7487_v20  ;;  %v3841_v11 = vmul.f32 0.7978846, %v3809_v30 }
 0x8c7   : > { %v3641_v61 = vpop.f32.mrf.mxu0 }
 0x8c8   : > { %v3718_v40 = vmul.f32 0.044715, %v7695_v44  ;;  %v3642_v37 = vadd.f32 %v7487_v20, %v3641_v61  ;;  %6035 = vtanh.f32 %v3841_v11 }
 0x8c9   : > { %v5460_v39 = vpop.f32.mrf.mxu0 }
 0x8ca   : > { %v3750_v0 = vmul.f32 %v3718_v40, %v7695_v44  ;;  %v3716_v13 = vmul.f32 0.044715, %v3642_v37  ;;  %v3653_v49 = vadd.f32 %v5460_v39, %v7487_v20  ;;  %v3684_v39 = vmul.f32 0.5, %v3642_v37 }
 0x8cb   : > { %v3644_v55 = vpop.f32.mrf.mxu0 }
 0x8cc   : > { %v3782_v27 = vmul.f32 %v3750_v0, %v7695_v44  ;;  %v3748_v8 = vmul.f32 %v3716_v13, %v3642_v37  ;;  %v3719_v54 = vmul.f32 0.044715, %v3653_v49  ;;  %v3645_v52 = vadd.f32 %v7487_v20, %v3644_v55 }
 0x8cd   : > { %v3687_v28 = vmul.f32 0.5, %v3653_v49  ;;  %v3686_v13 = vmul.f32 0.5, %v7695_v44 }
 0x8ce   : > { %v3814_v57 = vadd.f32 %v3782_v27, %v7695_v44  ;;  %v3780_v46 = vmul.f32 %v3748_v8, %v3642_v37  ;;  %v3751_v3 = vmul.f32 %v3719_v54, %v3653_v49  ;;  %v3717_v18 = vmul.f32 0.044715, %v3645_v52 }
 0x8cf   : > { %v3685_v0 = vmul.f32 0.5, %v3645_v52 }
 0x8d0   : > { %v3846_v56 = vmul.f32 0.7978846, %v3814_v57  ;;  %v3783_v21 = vmul.f32 %v3751_v3, %v3653_v49  ;;  %v3749_v22 = vmul.f32 %v3717_v18, %v3645_v52  ;;  %v3812_v9 = vadd.f32 %v3780_v46, %v3642_v37  ;;  %v7709_v18 = vld [vmem:[%s7874_s8] ss:$0 sm:$0xff] }
 0x8d1   : > { %v6030_v6 = vpop.eup %6029 }
 0x8d2   : > { %v6032_v38 = vpop.eup %6031  ;;  %v3815_v19 = vadd.f32 %v3783_v21, %v3653_v49  ;;  %v3781_v50 = vmul.f32 %v3749_v22, %v3645_v52  ;;  %6037 = vtanh.f32 %v3846_v56  ;;  %v3844_v43 = vmul.f32 0.7978846, %v3812_v9 }
 0x8d3   : > { %v6034_v47 = vpop.eup %6033  ;;  %v3904_v14 = vadd.f32 1.0, %v6030_v6  ;;  %v3906_v51 = vadd.f32 1.0, %v6032_v38 }
 0x8d4   : > { %v3847_v31 = vmul.f32 0.7978846, %v3815_v19  ;;  %v3907_v29 = vadd.f32 1.0, %v6034_v47  ;;  %v3813_v20 = vadd.f32 %v3781_v50, %v3645_v52  ;;  %6039 = vtanh.f32 %v3844_v43 }
 0x8d5   : > { %v6036_v42 = vpop.eup %6035  ;;  %v3936_v16 = vmul.f32 %v3904_v14, %v3680_v62  ;;  %v3938_v53 = vmul.f32 %v3906_v51, %v3682_v26 }
 0x8d6   : > { %6041 = vtanh.f32 %v3847_v31  ;;  %v3905_v58 = vadd.f32 1.0, %v6036_v42  ;;  %v3845_v41 = vmul.f32 0.7978846, %v3813_v20  ;;  %v3939_v48 = vmul.f32 %v3907_v29, %v3683_v1 }
 0x8d8   : > { %v3937_v5 = vmul.f32 %v3905_v58, %v3681_v7  ;;  %6043 = vtanh.f32 %v3845_v41  ;;  %v3957_v12 = vpack.c.bf16 %v3939_v48, %v3938_v53 }
 0x8da   : > { %v3956_v15 = vpack.c.bf16 %v3937_v5, %v3936_v16 }
 0x8dc   : > { %5501 = vmatprep.mubr.bf16.mxu1 %v3956_v15 }
 0x8dd   : > { %5502 = vmatmul.mubr.bf16.gmra.mxu1 %v3957_v12 }
 0x8df   : > { %v6038_v30 = vpop.eup %6037 }
 0x8e0   : > { %v3910_v40 = vadd.f32 1.0, %v6038_v30 }
 0x8e1   : > { %v6040_v23 = vpop.eup %6039 }
 0x8e2   : > { %v3908_v24 = vadd.f32 1.0, %v6040_v23  ;;  %v3942_v54 = vmul.f32 %v3910_v40, %v3686_v13 }
 0x8e3   : > { %v6042_v17 = vpop.eup %6041 }
 0x8e4   : > { %v3911_v11 = vadd.f32 1.0, %v6042_v17  ;;  %v3940_v27 = vmul.f32 %v3908_v24, %v3684_v39  ;;  %v7982_v24 = vld [vmem:[#allocation26_spill] sm:$0xff] }
 0x8e5   : > { %v6044_v61 = vpop.eup %6043 }
 0x8e6   : > { %v3909_v2 = vadd.f32 1.0, %v6044_v61  ;;  %v3943_v55 = vmul.f32 %v3911_v11, %v3687_v28  ;;  %v7983_v61 = vld [vmem:[#allocation22_spill] sm:$0xff] }
 0x8e8   : > { %v3941_v8 = vmul.f32 %v3909_v2, %v3685_v0  ;;  %v3959_v46 = vpack.c.bf16 %v3943_v55, %v3942_v54  ;;  %v7986_v54 = vld [vmem:[#allocation27_spill] sm:$0xff] }
 0x8ea   : > { %v3958_v57 = vpack.c.bf16 %v3941_v8, %v3940_v27  ;;  %v7985_v27 = vld [vmem:[#allocation24_spill] sm:$0xff] }
 0x8ec   : > { %5505 = vmatprep.mubr.bf16.mxu1 %v3958_v57 }
 0x8ed   : > { %5506 = vmatmul.mubr.bf16.gmra.mxu1 %v3959_v46 }
 0x926   : > { %v5479_v3 = vpop.f32.mrf.mxu1 }
 0x927   : > { %v4074_v6 = vadd.f32 %v5479_v3, %v7709_v18 }
 0x928   : > { %v4065_v49 = vpop.f32.mrf.mxu1 }
 0x929   : > { %v4066_v37 = vadd.f32 %v7709_v18, %v4065_v49  ;;  %v4194_v19 = vadd.f32 %v4074_v6, %v7169_v32  ;;  %v7987_v49 = vld [vmem:[#allocation23_spill] sm:$0xff]  ;;  %v7989_v6 = vld [vmem:[#allocation25_spill] sm:$0xff] }
 0x92a   : > { %v5480_v52 = vpop.f32.mrf.mxu1 }
 0x92b   : > { %v4192_v44 = vadd.f32 %v4066_v37, %v7165_v33  ;;  %v4077_v50 = vadd.f32 %v5480_v52, %v7709_v18 }
 0x92c   : > { %v4068_v56 = vpop.f32.mrf.mxu1 }
 0x92d   : > { %v4069_v21 = vadd.f32 %v7709_v18, %v4068_v56  ;;  %4224 = vxpose.xlu0.b32.start [1/16] %v4192_v44, 128  ;;  %v4195_v43 = vadd.f32 %v4077_v50, %v7177_v35  ;;  %v7988_v44 = vld [vmem:[#allocation30_spill] sm:$0xff] }
 0x92e   : > { %v5483_v22 = vpop.f32.mrf.mxu1 }
 0x92f   : > { %v4193_v9 = vadd.f32 %v4069_v21, %v7172_v59  ;;  %v4090_v59 = vadd.f32 %v5483_v22, %v7709_v18 }
 0x930   : > { %v4081_v38 = vpop.f32.mrf.mxu1 }
 0x931   : > { %4225 = vxpose.xlu0.b32.cont [2/16] %v4193_v9, 128  ;;  %v4082_v33 = vadd.f32 %v7709_v18, %v4081_v38  ;;  %v4198_v32 = vadd.f32 %v4090_v59, %v7185_v36  ;;  %v7990_v38 = vld [vmem:[#allocation29_spill] sm:$0xff]  ;;  %v7993_v59 = vld [vmem:[#allocation34_spill] sm:$0xff] }
 0x932   : > { %v5484_v47 = vpop.f32.mrf.mxu1 }
 0x933   : > { %v4196_v14 = vadd.f32 %v4082_v33, %v7181_v10  ;;  %v4093_v42 = vadd.f32 %v5484_v47, %v7709_v18 }
 0x934   : > { %v4084_v31 = vpop.f32.mrf.mxu1 }
 0x935   : > { %4226 = vxpose.xlu0.b32.cont [3/16] %v4194_v19, 128  ;;  %v4085_v29 = vadd.f32 %v7709_v18, %v4084_v31  ;;  %v4199_v1 = vadd.f32 %v4093_v42, %v7193_v4  ;;  %v7992_v31 = vld [vmem:[#allocation21_spill] sm:$0xff] }
 0x937   : > { %v4197_v20 = vadd.f32 %v4085_v29, %v7188_v63 }
 0x939   : > { %4227 = vxpose.xlu0.b32.cont [4/16] %v4195_v43, 128  ;;  %v7991_v43 = vld [vmem:[#allocation32_spill] sm:$0xff] }
 0x93d   : > { %4228 = vxpose.xlu0.b32.cont [5/16] %v4196_v14, 128 }
 0x93e   : > { %v5487_v62 = vpop.f32.mrf.mxu1 }
 0x93f   : > { %v4106_v36 = vadd.f32 %v5487_v62, %v7709_v18 }
 0x940   : > { %v4097_v35 = vpop.f32.mrf.mxu1 }
 0x941   : > { %4229 = vxpose.xlu0.b32.cont [6/16] %v4197_v20, 128  ;;  %v4098_v51 = vadd.f32 %v7709_v18, %v4097_v35  ;;  %v4202_v4 = vadd.f32 %v4106_v36, %v7201_v25 }
 0x942   : > { %v5488_v10 = vpop.f32.mrf.mxu1 }
 0x943   : > { %v4200_v58 = vadd.f32 %v4098_v51, %v7197_v34  ;;  %v4109_v53 = vadd.f32 %v5488_v10, %v7709_v18 }
 0x944   : > { %v4100_v7 = vpop.f32.mrf.mxu1 }
 0x945   : > { %4230 = vxpose.xlu0.b32.cont [7/16] %v4198_v32, 128  ;;  %v4101_v41 = vadd.f32 %v7709_v18, %v4100_v7  ;;  %v4203_v34 = vadd.f32 %v4109_v53, %v7209_v60  ;;  %v7984_v60 = vld [vmem:[#allocation28_spill] sm:$0xff] }
 0x946   : > { %v5491_v63 = vpop.f32.mrf.mxu1 }
 0x947   : > { %v4201_v48 = vadd.f32 %v4101_v41, %v7204_v45  ;;  %v4122_v55 = vadd.f32 %v5491_v63, %v7709_v18  ;;  %v7995_v41 = vld [vmem:[#allocation35_spill] sm:$0xff] }
 0x948   : > { %v4113_v26 = vpop.f32.mrf.mxu1 }
 0x949   : > { %4231 = vxpose.xlu0.b32.cont [8/16] %v4199_v1, 128  ;;  %v4114_v30 = vadd.f32 %v7709_v18, %v4113_v26  ;;  %v4206_v37 = vadd.f32 %v4122_v55, %v7987_v49  ;;  %v7994_v1 = vld [vmem:[#allocation33_spill] sm:$0xff]  ;;  %v7996_v26 = vld [vmem:[#allocation31_spill] sm:$0xff] }
 0x94a   : > { %v5492_v16 = vpop.f32.mrf.mxu1 }
 0x94b   : > { %v4204_v28 = vadd.f32 %v4114_v30, %v7983_v61  ;;  %v4125_v52 = vadd.f32 %v5492_v16, %v7709_v18 }
 0x94c   : > { %v4116_v5 = vpop.f32.mrf.mxu1 }
 0x94d   : > { %4232 = vxpose.xlu0.b32.cont [9/16] %v4200_v58, 128  ;;  %v4117_v25 = vadd.f32 %v7709_v18, %v4116_v5  ;;  %v4207_v9 = vadd.f32 %v4125_v52, %v7989_v6 }
 0x94e   : > { %v5495_v15 = vpop.f32.mrf.mxu1 }
 0x94f   : > { %v4138_v0 = vadd.f32 %v5495_v15, %v7709_v18  ;;  %v4205_v8 = vadd.f32 %v4117_v25, %v7985_v27 }
 0x950   : > { %v4129_v12 = vpop.f32.mrf.mxu1 }
 0x951   : > { %4233 = vxpose.xlu0.b32.cont [10/16] %v4201_v48, 128  ;;  %v4130_v23 = vadd.f32 %v7709_v18, %v4129_v12  ;;  %v4210_v57 = vadd.f32 %v4138_v0, %v7986_v54 }
 0x952   : > { %v5496_v17 = vpop.f32.mrf.mxu1 }
 0x953   : > { %v4208_v11 = vadd.f32 %v4130_v23, %v7982_v24  ;;  %v4141_v46 = vadd.f32 %v5496_v17, %v7709_v18  ;;  %v7998_v23 = vld [vmem:[#allocation37_spill] sm:$0xff] }
 0x954   : > { %v4132_v45 = vpop.f32.mrf.mxu1 }
 0x955   : > { %4234 = vxpose.xlu0.b32.cont [11/16] %v4202_v4, 128  ;;  %v4133_v40 = vadd.f32 %v7709_v18, %v4132_v45  ;;  %4256 = vxpose.xlu1.b32.start [1/16] %v4208_v11, 128  ;;  %v4211_v56 = vadd.f32 %v4141_v46, %v7988_v44  ;;  %v7997_v4 = vld [vmem:[#allocation36_spill] sm:$0xff] }
 0x956   : > { %v5499_v39 = vpop.f32.mrf.mxu1 }
 0x957   : > { %v4209_v2 = vadd.f32 %v4133_v40, %v7984_v60  ;;  %v4154_v47 = vadd.f32 %v5499_v39, %v7709_v18  ;;  %v8000_v39 = vld [vmem:[#allocation38_spill] sm:$0xff] }
 0x958   : > { %v4145_v13 = vpop.f32.mrf.mxu1 }
 0x959   : > { %4235 = vxpose.xlu0.b32.cont [12/16] %v4203_v34, 128  ;;  %4257 = vxpose.xlu1.b32.cont [2/16] %v4209_v2, 128  ;;  %v4146_v21 = vadd.f32 %v7709_v18, %v4145_v13  ;;  %v4214_v14 = vadd.f32 %v4154_v47, %v7992_v31  ;;  %v8001_v13 = vld [vmem:[#allocation40_spill] sm:$0xff] }
 0x95a   : > { %v5500_v3 = vpop.f32.mrf.mxu1 }
 0x95b   : > { %v4212_v19 = vadd.f32 %v4146_v21, %v7990_v38  ;;  %v4157_v29 = vadd.f32 %v5500_v3, %v7709_v18 }
 0x95c   : > { %v4148_v22 = vpop.f32.mrf.mxu1 }
 0x95d   : > { %4236 = vxpose.xlu0.b32.cont [13/16] %v4204_v28, 128  ;;  %4258 = vxpose.xlu1.b32.cont [3/16] %v4210_v57, 128  ;;  %v4149_v50 = vadd.f32 %v7709_v18, %v4148_v22  ;;  %v4215_v20 = vadd.f32 %v4157_v29, %v7993_v59  ;;  %v7999_v28 = vld [vmem:[#allocation39_spill] sm:$0xff] }
 0x95f   : > { %v4213_v33 = vadd.f32 %v4149_v50, %v7991_v43 }
 0x961   : > { %4237 = vxpose.xlu0.b32.cont [14/16] %v4205_v8, 128  ;;  %4259 = vxpose.xlu1.b32.cont [4/16] %v4211_v56, 128 }
 0x965   : > { %4238 = vxpose.xlu0.b32.cont [15/16] %v4206_v37, 128  ;;  %4260 = vxpose.xlu1.b32.cont [5/16] %v4212_v19, 128 }
 0x969   : > { %4239 = vxpose.xlu0.b32.end [16/16] %v4207_v9, 128  ;;  %4261 = vxpose.xlu1.b32.cont [6/16] %v4213_v33, 128 }
 0x96d   : > { %4262 = vxpose.xlu1.b32.cont [7/16] %v4214_v14, 128 }
 0x971   : > { %4263 = vxpose.xlu1.b32.cont [8/16] %v4215_v20, 128 }
 0x99d   : > { %v5503_v32 = vpop.f32.mrf.mxu1 }
 0x99e   : > { %v4170_v58 = vadd.f32 %v5503_v32, %v7709_v18 }
 0x99f   : > { %v4161_v42 = vpop.f32.mrf.mxu1 }
 0x9a0   : > { %v4162_v62 = vadd.f32 %v7709_v18, %v4161_v42  ;;  %v4218_v36 = vadd.f32 %v4170_v58, %v7996_v26 }
 0x9a1   : > { %v5504_v35 = vpop.f32.mrf.mxu1 }
 0x9a2   : > { %v4216_v51 = vadd.f32 %v4162_v62, %v7994_v1  ;;  %v4173_v48 = vadd.f32 %v5504_v35, %v7709_v18 }
 0x9a3   : > { %v4164_v10 = vpop.f32.mrf.mxu1 }
 0x9a4   : > { %v4165_v7 = vadd.f32 %v7709_v18, %v4164_v10  ;;  %4264 = vxpose.xlu1.b32.cont [9/16] %v4216_v51, 128  ;;  %v4219_v53 = vadd.f32 %v4173_v48, %v7997_v4 }
 0x9a6   : > { %v4217_v63 = vadd.f32 %v4165_v7, %v7995_v41 }
 0x9a8   : > { %4265 = vxpose.xlu1.b32.cont [10/16] %v4217_v63, 128 }
 0x9a9   : > { %v4240_v16 = vpop.trf.xlu0 }
 0x9aa   : > { %4288 = vst [vmem:[%s7768_s29] sm:$0xff] %v4240_v16 }
 0x9ac   : > { %4266 = vxpose.xlu1.b32.cont [11/16] %v4218_v36, 128 }
 0x9ad   : > { %v5507_v5 = vpop.f32.mrf.mxu1  ;;  %v4241_v15 = vpop.trf.xlu0 }
 0x9ae   : > { %4290 = vst [vmem:[%s7768_s29 + $0x10] sm:$0xff] %v4241_v15  ;;  %v4186_v61 = vadd.f32 %v5507_v5, %v7709_v18 }
 0x9af   : > { %v4177_v12 = vpop.f32.mrf.mxu1 }
 0x9b0   : > { %v4178_v34 = vadd.f32 %v7709_v18, %v4177_v12  ;;  %4267 = vxpose.xlu1.b32.cont [12/16] %v4219_v53, 128  ;;  %v4222_v0 = vadd.f32 %v4186_v61, %v8000_v39 }
 0x9b1   : > { %v5508_v30 = vpop.f32.mrf.mxu1  ;;  %v4242_v24 = vpop.trf.xlu0 }
 0x9b2   : > { %v4220_v17 = vadd.f32 %v4178_v34, %v7998_v23  ;;  %4292 = vst [vmem:[%s7768_s29 + $0x20] sm:$0xff] %v4242_v24  ;;  %v4189_v60 = vadd.f32 %v5508_v30, %v7709_v18 }
 0x9b3   : > { %v4180_v11 = vpop.f32.mrf.mxu1 }
 0x9b4   : > { %v4181_v45 = vadd.f32 %v7709_v18, %v4180_v11  ;;  %4268 = vxpose.xlu1.b32.cont [13/16] %v4220_v17, 128  ;;  %v4223_v55 = vadd.f32 %v4189_v60, %v8001_v13 }
 0x9b5   : > { %v4243_v40 = vpop.trf.xlu0 }
 0x9b6   : > { %v4221_v25 = vadd.f32 %v4181_v45, %v7999_v28  ;;  %4294 = vst [vmem:[%s7768_s29 + $0x30] sm:$0xff] %v4243_v40 }
 0x9b8   : > { %4269 = vxpose.xlu1.b32.cont [14/16] %v4221_v25, 128 }
 0x9b9   : > { %v4244_v2 = vpop.trf.xlu0 }
 0x9ba   : > { %4296 = vst [vmem:[%s7768_s29 + $0x40] sm:$0xff] %v4244_v2 }
 0x9bc   : > { %4270 = vxpose.xlu1.b32.cont [15/16] %v4222_v0, 128 }
 0x9bd   : > { %v4245_v27 = vpop.trf.xlu0 }
 0x9be   : > { %4298 = vst [vmem:[%s7768_s29 + $0x50] sm:$0xff] %v4245_v27 }
 0x9c0   : > { %4271 = vxpose.xlu1.b32.end [16/16] %v4223_v55, 128 }
 0x9c1   : > { %v4246_v8 = vpop.trf.xlu0 }
 0x9c2   : > { %4300 = vst [vmem:[%s7768_s29 + $0x60] sm:$0xff] %v4246_v8 }
 0x9c5   : > { %v4247_v54 = vpop.trf.xlu0 }
 0x9c6   : > { %4302 = vst [vmem:[%s7768_s29 + $0x70] sm:$0xff] %v4247_v54 }
 0x9c9   : > { %v4248_v57 = vpop.trf.xlu0 }
 0x9ca   : > { %4304 = vst [vmem:[%s7768_s29 + $0x80] sm:$0xff] %v4248_v57 }
 0x9cd   : > { %v4249_v18 = vpop.trf.xlu0 }
 0x9ce   : > { %4306 = vst [vmem:[%s7768_s29 + $0x90] sm:$0xff] %v4249_v18 }
 0x9d1   : > { %v4250_v46 = vpop.trf.xlu0 }
 0x9d2   : > { %4308 = vst [vmem:[%s7768_s29 + $0xa0] sm:$0xff] %v4250_v46 }
 0x9d5   : > { %v4251_v3 = vpop.trf.xlu0 }
 0x9d6   : > { %4310 = vst [vmem:[%s7768_s29 + $0xb0] sm:$0xff] %v4251_v3 }
 0x9d9   : > { %v4252_v49 = vpop.trf.xlu0 }
 0x9da   : > { %4312 = vst [vmem:[%s7768_s29 + $0xc0] sm:$0xff] %v4252_v49 }
 0x9dd   : > { %v4253_v37 = vpop.trf.xlu0 }
 0x9de   : > { %4314 = vst [vmem:[%s7768_s29 + $0xd0] sm:$0xff] %v4253_v37 }
 0x9e1   : > { %v4254_v52 = vpop.trf.xlu0 }
 0x9e2   : > { %4316 = vst [vmem:[%s7768_s29 + $0xe0] sm:$0xff] %v4254_v52 }
 0x9e5   : > { %v4255_v44 = vpop.trf.xlu0 }
 0x9e6   : > { %4318 = vst [vmem:[%s7768_s29 + $0xf0] sm:$0xff] %v4255_v44 }
 0xa00   : > { %v4272_v56 = vpop.trf.xlu1 }
 0xa01   : > { %4289 = vst [vmem:[%s7768_s29 + $0x8] sm:$0xff] %v4272_v56 }
 0xa04   : > { %v4273_v21 = vpop.trf.xlu1 }
 0xa05   : > { %4291 = vst [vmem:[%s7768_s29 + $0x18] sm:$0xff] %v4273_v21 }
 0xa08   : > { %v4274_v22 = vpop.trf.xlu1 }
 0xa09   : > { %4293 = vst [vmem:[%s7768_s29 + $0x28] sm:$0xff] %v4274_v22 }
 0xa0c   : > { %v4275_v6 = vpop.trf.xlu1 }
 0xa0d   : > { %4295 = vst [vmem:[%s7768_s29 + $0x38] sm:$0xff] %v4275_v6 }
 0xa10   : > { %v4276_v9 = vpop.trf.xlu1 }
 0xa11   : > { %4297 = vst [vmem:[%s7768_s29 + $0x48] sm:$0xff] %v4276_v9 }
 0xa14   : > { %v4277_v38 = vpop.trf.xlu1 }
 0xa15   : > { %4299 = vst [vmem:[%s7768_s29 + $0x58] sm:$0xff] %v4277_v38 }
 0xa18   : > { %v4278_v19 = vpop.trf.xlu1 }
 0xa19   : > { %4301 = vst [vmem:[%s7768_s29 + $0x68] sm:$0xff] %v4278_v19 }
 0xa1c   : > { %v4279_v50 = vpop.trf.xlu1 }
 0xa1d   : > { %4303 = vst [vmem:[%s7768_s29 + $0x78] sm:$0xff] %v4279_v50 }
 0xa20   : > { %v4280_v47 = vpop.trf.xlu1 }
 0xa21   : > { %4305 = vst [vmem:[%s7768_s29 + $0x88] sm:$0xff] %v4280_v47 }
 0xa24   : > { %v4281_v43 = vpop.trf.xlu1 }
 0xa25   : > { %4307 = vst [vmem:[%s7768_s29 + $0x98] sm:$0xff] %v4281_v43 }
 0xa28   : > { %v4282_v33 = vpop.trf.xlu1 }
 0xa29   : > { %4309 = vst [vmem:[%s7768_s29 + $0xa8] sm:$0xff] %v4282_v33 }
 0xa2c   : > { %v4283_v31 = vpop.trf.xlu1 }
 0xa2d   : > { %4311 = vst [vmem:[%s7768_s29 + $0xb8] sm:$0xff] %v4283_v31 }
 0xa30   : > { %v4284_v14 = vpop.trf.xlu1 }
 0xa31   : > { %4313 = vst [vmem:[%s7768_s29 + $0xc8] sm:$0xff] %v4284_v14 }
 0xa34   : > { %v4285_v29 = vpop.trf.xlu1 }
 0xa35   : > { %4315 = vst [vmem:[%s7768_s29 + $0xd8] sm:$0xff] %v4285_v29 }
 0xa38   : > { %v4286_v59 = vpop.trf.xlu1 }
 0xa39   : > { %4317 = vst [vmem:[%s7768_s29 + $0xe8] sm:$0xff] %v4286_v59 }
 0xa3c   : > { %v4287_v20 = vpop.trf.xlu1 }
 0xa3d   : > { %4319 = vst [vmem:[%s7768_s29 + $0xf8] sm:$0xff] %v4287_v20 }
 0xa3e   : > { %6190 = shalt.err (!%p6187_p13)
}
 0xa3f   : > { %s6191_s19 = scalar_lea.hbm %s7815_s22, 4096  ;;  %s6195_s18 = scalar_lea.hbm %s7875_s9, 8192 }
 0xa40   : > { %p6192_p10 = scmp.ne.s32.totalorder %s7815_s22, %s6191_s19  ;;  %p6196_p6 = scmp.lt.s32.totalorder %s7815_s22, %s7875_s9 }
 0xa41   : > { %p6197_p3 = scmp.lt.s32.totalorder %s6195_s18, %s6191_s19 }
 0xa42   : > { %p6193_p12 = pnand %p6192_p10, %p6443_p7 }
 0xa43   : > { %p6198_p5 = por %p6197_p3, %p6196_p6 }
 0xa44   : > { %p6194_p0 = pneg %p6193_p12 }
 0xa46   : > { %p6199_p4 = pnand %p6198_p5, %p6194_p0 }
 0xa48   : > { %6202 = shalt.err (!%p6199_p4)
}
 0xa49   : > { %s6280_s27 = smov 256   ;;  %s6281_s16 = smov 16  }
 0xa4a   : > { %5527 = dma.vmem_to_hbm [thread:$0]  (%p6443_p7), %s7817_s30, 4096, %s7815_s22, %s4321_s28, %s6280_s27, %s6280_s27, %s6281_s16  }
 0xa4b PF: > { %s8002_s5 = sld [smem:[#allocation19_spill]]  ;;  %p8005_p9 = scmp.ge.s32.totalorder %s6265_s14, 2 }
 0xa4c   : > { %s8003_s1 = sld [smem:[#allocation20_spill]] }
 0xa51   : > { %s4351_s12 = sand.u32 1, %s8002_s5  }
 0xa52   : > { %p8004_p8 = scmp.ne.s32.totalorder %s8003_s1, 0  ;;  %s4352_s3 = scalar_lea.sflag [#allocation7], %s4351_s12 }
 0xa54   : > { %p5547_p11 = pnand %p8005_p9, %p8004_p8 }
 0xa56   : > { %p5548_p2 = pneg %p5547_p11 }
 0xa58   : > { %6240 = dma.done.wait (%p5548_p2), %s4352_s3, 4096  }
 0xa59   : > { %6242 = vsyncadd (%p5548_p2), %s4352_s3, 4294963200  ;;  %s27_s14 = sadd.s32 1, %s6265_s14   ;;  %s8006_s30 = smov %s6249_s10 }
 0xa5a   : > { %p24_p1 = scmp.ge.s32.totalorder %s27_s14, 4   ;;  %s8007_s10 = smov %s6253_s11 }
 0xa5b   : > { %s8008_s11 = smov %s6452_s26  ;;  %s8009_s12 = smov %s6261_s13 }
 0xa5c   : > { %s8010_s13 = smov %s8012_s25  ;;  %26 = sbr.rel (!%p24_p1) target bundleno = 12 (0xc), region = 122 }
 0xa61   :  { %4357 = vsyncpa [#allocation6], 1 }
 0xa62   :  { %4359 = vsyncpa [#allocation6 + $0x1], 1 }
 0xa63   :  { %4360 = vsyncpa [#allocation9], 1 }
 0xa64   :  { %4361 = vsyncpa [#allocation12], 1 }
 0xa65   :  { %4362 = vsyncpa [#allocation7], 1 }
 0xa66   :  { %4364 = vsyncpa [#allocation7 + $0x1], 1 }

</bundles_post_ra>
